<compile_context>
chip_gen: v7x
topology: tpu7x:2x2x1
jax: 0.10.0
libtpu: 0.0.40
codegen_flags: <defaults>
</compile_context>

<pallas_src>
import math

import jax
import jax.numpy as jnp
from jax.experimental import pallas as pl
from jax.experimental.pallas import tpu as pltpu

# ---------------- small synthetic GPT-2 config ----------------
B, T, S = 2, 8, 16          # batch, decoder seq, encoder seq
D, H, L = 32, 4, 2          # hidden, heads, layers
HD = D // H                 # head dim
V = 128                     # vocab size
FF = 4 * D                  # MLP hidden
MAXPOS = 16                 # max positions (>= T)
EPS = 1e-5                  # GPT-2 layernorm eps
NEG = -1e30                 # large negative for masking (f32-safe)
SCALE = 1.0 / math.sqrt(HD)

assert T & (T - 1) == 0 and S & (S - 1) == 0, "mask construction uses power-of-two shifts"
LOG2T = T.bit_length() - 1
LOG2S = S.bit_length() - 1

PARAM_ORDER = (
    "wte", "wpe", "lnf_g", "lnf_b",
    "ln1_g", "ln1_b", "attn_w", "attn_b", "attn_proj_w", "attn_proj_b",
    "lnx_g", "lnx_b", "q_w", "q_b", "ckv_w", "ckv_b", "cproj_w", "cproj_b",
    "ln2_g", "ln2_b", "fc_w", "fc_b", "fcproj_w", "fcproj_b",
)
# matmul weights pre-cast to bf16 in the wrapper (halves weight DMA, removes in-kernel casts)
BF16_WEIGHTS = frozenset(
    {"wte", "attn_w", "attn_proj_w", "q_w", "ckv_w", "cproj_w", "fc_w", "fcproj_w"})


# ---------------- in-kernel helpers (pure jnp, traced inside the fused kernel) ----------------
def _mm(a, b, trans_b=False):
    """MXU matmul with f32 accumulation.  Weights arrive pre-cast to bf16, so their astype is a
    trace-time no-op; only activation operands pay a (required) bf16 cast."""
    dn = (((1,), (1,)), ((), ())) if trans_b else (((1,), (0,)), ((), ()))
    return jax.lax.dot_general(a.astype(jnp.bfloat16), b.astype(jnp.bfloat16), dn,
                               preferred_element_type=jnp.float32)


def _ln(x, g, b):
    mu = jnp.mean(x, axis=-1, keepdims=True)
    var = jnp.mean(jnp.square(x - mu), axis=-1, keepdims=True)
    return (x - mu) * jax.lax.rsqrt(var + EPS) * g + b


def _gelu_new(y):
    # GPT-2 "gelu_new" (tanh approximation)
    return 0.5 * y * (1.0 + jnp.tanh(math.sqrt(2.0 / math.pi) * (y + 0.044715 * y * y * y)))


def _softmax_approx(s):
    # attention-internal softmax: EUP approx reciprocal (free slot)
    m = jnp.max(s, axis=-1, keepdims=True)
    e = jnp.exp(s - m)
    return e * pl.reciprocal(jnp.sum(e, axis=-1, keepdims=True), approx=True)


def _attention(q, k, v, mask):
    """Multi-head attention with all batch rows fused into each head's matmuls.
    q: (Nq, D), k/v: (Nk, D), mask: (Nq, Nk) bool, batch-block-diagonal (+ causal for self-attn).
    Per head: ONE score matmul + ONE PV matmul over the whole (chunk) batch -> 2*H matmuls
    instead of 2*B*H; head outputs assembled with a single lane concat (vreg-resident, no
    VMEM scratch / masked sub-lane stores)."""
    outs = []
    for hh in range(H):
        lo = hh * HD
        qh = q[:, lo:lo + HD]
        kh = k[:, lo:lo + HD]
        vh = v[:, lo:lo + HD]
        s = _mm(qh, kh, trans_b=True) * SCALE           # (Nq, Nk) f32
        s = jnp.where(mask, s, NEG)
        outs.append(_mm(_softmax_approx(s), vh))        # (Nq, HD)
    return jnp.concatenate(outs, axis=-1)               # (Nq, D), head-interleaved layout


# ---------------- the single fused kernel (parameterized by the per-core batch chunk) ----------------
def _make_kernel(BC):
    Nq = BC * T          # decoder rows handled by this grid step
    Nk = BC * S          # encoder rows handled by this grid step

    def kernel(cap_ref, enc_ref,
               wte_ref, wpe_ref, lnf_g_ref, lnf_b_ref,
               ln1_g_ref, ln1_b_ref, attn_w_ref, attn_b_ref,
               attn_proj_w_ref, attn_proj_b_ref,
               lnx_g_ref, lnx_b_ref, q_w_ref, q_b_ref,
               ckv_w_ref, ckv_b_ref, cproj_w_ref, cproj_b_ref,
               ln2_g_ref, ln2_b_ref, fc_w_ref, fc_b_ref,
               fcproj_w_ref, fcproj_b_ref,
               probs_ref, loss_ref):
        # ---- loop-invariant masks: built ONCE, reused by every layer / head (hoisted iotas) ----
        ri = jax.lax.broadcasted_iota(jnp.int32, (Nq, Nq), 0)
        ci = jax.lax.broadcasted_iota(jnp.int32, (Nq, Nq), 1)
        self_mask = ((ri >> LOG2T) == (ci >> LOG2T)) & (ri >= ci)   # causal within each batch block
        rj = jax.lax.broadcasted_iota(jnp.int32, (Nq, Nk), 0)
        cj = jax.lax.broadcasted_iota(jnp.int32, (Nq, Nk), 1)
        cross_mask = (rj >> LOG2T) == (cj >> LOG2S)                 # batch-block-diagonal

        # ---- embeddings: in-kernel gather via one one-hot matmul (no host gather) ----
        cap = cap_ref[...]                                          # (Nq, 1) int32
        col_v = jax.lax.broadcasted_iota(jnp.int32, (Nq, V), 1)
        onehot = (col_v == cap).astype(jnp.float32)                 # reused for the CE target pick
        tok = _mm(onehot, wte_ref[...])                             # (Nq, D) exact 0/1 gather of bf16 wte
        pos = wpe_ref[pl.ds(0, T), :]                               # (T, D)
        h = (tok.reshape(BC, T, D) + pos[None]).reshape(Nq, D)      # broadcast add (no concat copy)

        enc = enc_ref[...].astype(jnp.bfloat16)                     # cast once, reused every layer

        for l in range(L):                                          # static unroll; weights stay VMEM-resident
            # ---------- causal self-attention ----------
            hn = _ln(h, ln1_g_ref[l], ln1_b_ref[l])
            qkv = _mm(hn, attn_w_ref[l]) + attn_b_ref[l]            # (Nq, 3D) vreg-resident
            a_out = _attention(qkv[:, :D], qkv[:, D:2 * D], qkv[:, 2 * D:], self_mask)
            h = h + _mm(a_out, attn_proj_w_ref[l]) + attn_proj_b_ref[l]

            # ---------- cross-attention over the encoder output ----------
            hn = _ln(h, lnx_g_ref[l], lnx_b_ref[l])
            q = _mm(hn, q_w_ref[l]) + q_b_ref[l]                    # (Nq, D)
            kv = _mm(enc, ckv_w_ref[l]) + ckv_b_ref[l]              # (Nk, 2D)
            x_out = _attention(q, kv[:, :D], kv[:, D:], cross_mask)
            h = h + _mm(x_out, cproj_w_ref[l]) + cproj_b_ref[l]

            # ---------- MLP (gelu_new) ----------
            hn = _ln(h, ln2_g_ref[l], ln2_b_ref[l])
            m = _gelu_new(_mm(hn, fc_w_ref[l]) + fc_b_ref[l])       # (Nq, FF)
            h = h + _mm(m, fcproj_w_ref[l]) + fcproj_b_ref[l]

        # ---------- final LN + tied LM head (contract against wte directly, trans_b; no bias) ----------
        hn = _ln(h, lnf_g_ref[...], lnf_b_ref[...])
        logits = _mm(hn, wte_ref[...], trans_b=True)                # (Nq, V) lane-dense (V = 128)
        e = jnp.exp(logits - jnp.max(logits, axis=-1, keepdims=True))
        probs = e / jnp.sum(e, axis=-1, keepdims=True)              # exact divide (user-visible output)
        probs_ref[...] = probs

        # CrossEntropyLoss applied to the already-softmaxed logits, no label shift (faithful quirk).
        # probs in [0, 1] => exp is bounded in [1, e]; no max-subtract needed before the lse.
        lse = jnp.log(jnp.sum(jnp.exp(probs), axis=-1, keepdims=True))
        picked = jnp.sum(probs * onehot, axis=-1, keepdims=True)
        chunk_loss = jnp.mean(lse - picked)                         # per-chunk partial mean
        loss_ref[...] = jnp.zeros((8, 128), jnp.float32) + chunk_loss

    return kernel


# ---------------- parameter init (deterministic, synthetic, stacked per-block arrays) ----------------
def init_params(key):
    def nrm(k, shape):
        return 0.02 * jax.random.normal(k, shape, jnp.float32)

    keys = jax.random.split(key, 9)
    ones = lambda shape: jnp.ones(shape, jnp.float32)
    zeros = lambda shape: jnp.zeros(shape, jnp.float32)
    return {
        "wte": nrm(keys[0], (V, D)),
        "wpe": nrm(keys[1], (MAXPOS, D)),
        "lnf_g": ones((1, D)), "lnf_b": zeros((1, D)),
        "ln1_g": ones((L, 1, D)), "ln1_b": zeros((L, 1, D)),
        "attn_w": nrm(keys[2], (L, D, 3 * D)), "attn_b": zeros((L, 1, 3 * D)),
        "attn_proj_w": nrm(keys[3], (L, D, D)), "attn_proj_b": zeros((L, 1, D)),
        "lnx_g": ones((L, 1, D)), "lnx_b": zeros((L, 1, D)),
        "q_w": nrm(keys[4], (L, D, D)), "q_b": zeros((L, 1, D)),
        "ckv_w": nrm(keys[5], (L, D, 2 * D)), "ckv_b": zeros((L, 1, 2 * D)),
        "cproj_w": nrm(keys[6], (L, D, D)), "cproj_b": zeros((L, 1, D)),
        "ln2_g": ones((L, 1, D)), "ln2_b": zeros((L, 1, D)),
        "fc_w": nrm(keys[7], (L, D, FF)), "fc_b": zeros((L, 1, FF)),
        "fcproj_w": nrm(keys[8], (L, FF, D)), "fcproj_b": zeros((L, 1, D)),
    }


# ---------------- forward pass: ONE fused pallas_call ----------------
def _num_batch_chunks():
    # v7x has 2 TensorCores per chip -> shard the batch across them via a "parallel" grid axis.
    # v5e / v6e are single-TC: keep one chunk (grid of size 1 -> no per-step pipeline overhead).
    try:
        kind = jax.devices()[0].device_kind.lower()
    except Exception:
        return 1
    if ("v7" in kind or "7x" in kind) and B % 2 == 0:
        return 2
    return 1


def gpt2_decoder_forward(params, encoder_output, caption):
    NC = _num_batch_chunks()      # grid size (1 on v5e/v6e, 2 on v7x)
    BC = B // NC                  # batch elements per grid step / TensorCore

    cap2d = caption.reshape(B * T, 1).astype(jnp.int32)
    enc2d = encoder_output.reshape(B * S, D).astype(jnp.float32)

    # pre-cast all matmul weights (incl. the tied wte) to bf16 once, outside the kernel
    weights = [params[k].astype(jnp.bfloat16) if k in BF16_WEIGHTS else params[k]
               for k in PARAM_ORDER]

    def full_spec(arr):           # whole-array block, same block for every grid step (no re-DMA)
        nd = arr.ndim
        return pl.BlockSpec(arr.shape, lambda c, _nd=nd: (0,) * _nd)

    in_specs = ([pl.BlockSpec((BC * T, 1), lambda c: (c, 0)),       # caption chunk
                 pl.BlockSpec((BC * S, D), lambda c: (c, 0))]       # encoder chunk
                + [full_spec(w) for w in weights])
    out_specs = (pl.BlockSpec((BC * T, V), lambda c: (c, 0)),       # probs chunk (lane-dense, V = 128)
                 pl.BlockSpec((8, 128), lambda c: (c, 0)))          # per-chunk loss partial (broadcast)

    probs, loss = pl.pallas_call(
        _make_kernel(BC),
        grid=(NC,),
        in_specs=in_specs,
        out_specs=out_specs,
        out_shape=(jax.ShapeDtypeStruct((B * T, V), jnp.float32),
                   jax.ShapeDtypeStruct((NC * 8, 128), jnp.float32)),
        compiler_params=pltpu.CompilerParams(dimension_semantics=("parallel",)),
    )(cap2d, enc2d, *weights)

    # chunks have equal row counts, so the mean of the per-chunk means is the global mean
    return {"logits": probs.reshape(B, T, V), "loss": jnp.mean(loss)}


# ---------------- main ----------------
if __name__ == "__main__":
    key = jax.random.PRNGKey(0)
    kp, ke, kc = jax.random.split(key, 3)

    params = init_params(kp)
    encoder_output = jax.random.normal(ke, (B, S, D), jnp.float32)   # (2, 16, 32)
    caption = jax.random.randint(kc, (B, T), 0, V, jnp.int32)        # (2, 8)

    out = jax.jit(gpt2_decoder_forward)(params, encoder_output, caption)
    jax.block_until_ready(out)

    assert out["logits"].shape == (B, T, V)
    assert out["loss"].shape == ()
    assert bool(jnp.isfinite(out["loss"]))
    print("KERNEL_OK")
</pallas_src>

<mosaic_0001>
module attributes {stable_mosaic.version = 11 : i64} {
  func.func @kernel(%arg0: i32, %arg1: memref<16x1xi32, #tpu.memory_space<vmem>>, %arg2: memref<32x32xf32, #tpu.memory_space<vmem>>, %arg3: memref<128x32xbf16, #tpu.memory_space<vmem>>, %arg4: memref<16x32xf32, #tpu.memory_space<vmem>>, %arg5: memref<1x32xf32, #tpu.memory_space<vmem>>, %arg6: memref<1x32xf32, #tpu.memory_space<vmem>>, %arg7: memref<2x1x32xf32, #tpu.memory_space<vmem>>, %arg8: memref<2x1x32xf32, #tpu.memory_space<vmem>>, %arg9: memref<2x32x96xbf16, #tpu.memory_space<vmem>>, %arg10: memref<2x1x96xf32, #tpu.memory_space<vmem>>, %arg11: memref<2x32x32xbf16, #tpu.memory_space<vmem>>, %arg12: memref<2x1x32xf32, #tpu.memory_space<vmem>>, %arg13: memref<2x1x32xf32, #tpu.memory_space<vmem>>, %arg14: memref<2x1x32xf32, #tpu.memory_space<vmem>>, %arg15: memref<2x32x32xbf16, #tpu.memory_space<vmem>>, %arg16: memref<2x1x32xf32, #tpu.memory_space<vmem>>, %arg17: memref<2x32x64xbf16, #tpu.memory_space<vmem>>, %arg18: memref<2x1x64xf32, #tpu.memory_space<vmem>>, %arg19: memref<2x32x32xbf16, #tpu.memory_space<vmem>>, %arg20: memref<2x1x32xf32, #tpu.memory_space<vmem>>, %arg21: memref<2x1x32xf32, #tpu.memory_space<vmem>>, %arg22: memref<2x1x32xf32, #tpu.memory_space<vmem>>, %arg23: memref<2x32x128xbf16, #tpu.memory_space<vmem>>, %arg24: memref<2x1x128xf32, #tpu.memory_space<vmem>>, %arg25: memref<2x128x32xbf16, #tpu.memory_space<vmem>>, %arg26: memref<2x1x32xf32, #tpu.memory_space<vmem>>, %arg27: memref<16x128xf32, #tpu.memory_space<vmem>>, %arg28: memref<8x128xf32, #tpu.memory_space<vmem>>) attributes {dimension_semantics = [#tpu.dimension_semantics<parallel>], iteration_bounds = array<i64: 1>, scalar_prefetch = 0 : i64, scratch_operands = 0 : i64, tpu.core_type = #tpu.core_type<tc>, window_params = [{transform_indices = @transform_0, window_bounds = array<i64: 16, 1>}, {transform_indices = @transform_1, window_bounds = array<i64: 32, 32>}, {pipeline_mode = #tpu.pipeline_mode<synchronous>, transform_indices = @transform_2, window_bounds = array<i64: 128, 32>}, {pipeline_mode = #tpu.pipeline_mode<synchronous>, transform_indices = @transform_3, window_bounds = array<i64: 16, 32>}, {pipeline_mode = #tpu.pipeline_mode<synchronous>, transform_indices = @transform_4, window_bounds = array<i64: 1, 32>}, {pipeline_mode = #tpu.pipeline_mode<synchronous>, transform_indices = @transform_5, window_bounds = array<i64: 1, 32>}, {pipeline_mode = #tpu.pipeline_mode<synchronous>, transform_indices = @transform_6, window_bounds = array<i64: 2, 1, 32>}, {pipeline_mode = #tpu.pipeline_mode<synchronous>, transform_indices = @transform_7, window_bounds = array<i64: 2, 1, 32>}, {pipeline_mode = #tpu.pipeline_mode<synchronous>, transform_indices = @transform_8, window_bounds = array<i64: 2, 32, 96>}, {pipeline_mode = #tpu.pipeline_mode<synchronous>, transform_indices = @transform_9, window_bounds = array<i64: 2, 1, 96>}, {pipeline_mode = #tpu.pipeline_mode<synchronous>, transform_indices = @transform_10, window_bounds = array<i64: 2, 32, 32>}, {pipeline_mode = #tpu.pipeline_mode<synchronous>, transform_indices = @transform_11, window_bounds = array<i64: 2, 1, 32>}, {pipeline_mode = #tpu.pipeline_mode<synchronous>, transform_indices = @transform_12, window_bounds = array<i64: 2, 1, 32>}, {pipeline_mode = #tpu.pipeline_mode<synchronous>, transform_indices = @transform_13, window_bounds = array<i64: 2, 1, 32>}, {pipeline_mode = #tpu.pipeline_mode<synchronous>, transform_indices = @transform_14, window_bounds = array<i64: 2, 32, 32>}, {pipeline_mode = #tpu.pipeline_mode<synchronous>, transform_indices = @transform_15, window_bounds = array<i64: 2, 1, 32>}, {pipeline_mode = #tpu.pipeline_mode<synchronous>, transform_indices = @transform_16, window_bounds = array<i64: 2, 32, 64>}, {pipeline_mode = #tpu.pipeline_mode<synchronous>, transform_indices = @transform_17, window_bounds = array<i64: 2, 1, 64>}, {pipeline_mode = #tpu.pipeline_mode<synchronous>, transform_indices = @transform_18, window_bounds = array<i64: 2, 32, 32>}, {pipeline_mode = #tpu.pipeline_mode<synchronous>, transform_indices = @transform_19, window_bounds = array<i64: 2, 1, 32>}, {pipeline_mode = #tpu.pipeline_mode<synchronous>, transform_indices = @transform_20, window_bounds = array<i64: 2, 1, 32>}, {pipeline_mode = #tpu.pipeline_mode<synchronous>, transform_indices = @transform_21, window_bounds = array<i64: 2, 1, 32>}, {pipeline_mode = #tpu.pipeline_mode<synchronous>, transform_indices = @transform_22, window_bounds = array<i64: 2, 32, 128>}, {pipeline_mode = #tpu.pipeline_mode<synchronous>, transform_indices = @transform_23, window_bounds = array<i64: 2, 1, 128>}, {pipeline_mode = #tpu.pipeline_mode<synchronous>, transform_indices = @transform_24, window_bounds = array<i64: 2, 128, 32>}, {pipeline_mode = #tpu.pipeline_mode<synchronous>, transform_indices = @transform_25, window_bounds = array<i64: 2, 1, 32>}, {transform_indices = @transform_26, window_bounds = array<i64: 16, 128>}, {transform_indices = @transform_27, window_bounds = array<i64: 8, 128>}]} {
    %0 = tpu.iota {dimensions = array<i32: 0>} : vector<16x16xi32>
    %1 = tpu.iota {dimensions = array<i32: 1>} : vector<16x16xi32>
    %c3_i32 = arith.constant 3 : i32
    %2 = vector.broadcast %c3_i32 : i32 to vector<16x16xi32>
    %3 = arith.shrsi %0, %2 : vector<16x16xi32>
    %c3_i32_0 = arith.constant 3 : i32
    %4 = vector.broadcast %c3_i32_0 : i32 to vector<16x16xi32>
    %5 = arith.shrsi %1, %4 : vector<16x16xi32>
    %6 = arith.cmpi eq, %3, %5 : vector<16x16xi32>
    %7 = arith.cmpi sge, %0, %1 : vector<16x16xi32>
    %8 = arith.andi %6, %7 : vector<16x16xi1>
    %9 = tpu.iota {dimensions = array<i32: 0>} : vector<16x32xi32>
    %10 = tpu.iota {dimensions = array<i32: 1>} : vector<16x32xi32>
    %c3_i32_1 = arith.constant 3 : i32
    %11 = vector.broadcast %c3_i32_1 : i32 to vector<16x32xi32>
    %12 = arith.shrsi %9, %11 : vector<16x32xi32>
    %c4_i32 = arith.constant 4 : i32
    %13 = vector.broadcast %c4_i32 : i32 to vector<16x32xi32>
    %14 = arith.shrsi %10, %13 : vector<16x32xi32>
    %15 = arith.cmpi eq, %12, %14 : vector<16x32xi32>
    %c0 = arith.constant 0 : index
    %c0_2 = arith.constant 0 : index
    %16 = vector.load %arg1[%c0, %c0_2] : memref<16x1xi32, #tpu.memory_space<vmem>>, vector<16x1xi32>
    %17 = tpu.iota {dimensions = array<i32: 1>} : vector<16x128xi32>
    %18 = vector.broadcast %16 : vector<16x1xi32> to vector<16x128xi32>
    %19 = arith.cmpi eq, %17, %18 : vector<16x128xi32>
    %20 = arith.extui %19 : vector<16x128xi1> to vector<16x128xi32>
    %21 = arith.sitofp %20 : vector<16x128xi32> to vector<16x128xf32>
    %c0_3 = arith.constant 0 : index
    %c0_4 = arith.constant 0 : index
    %22 = vector.load %arg3[%c0_3, %c0_4] : memref<128x32xbf16, #tpu.memory_space<vmem>>, vector<128x32xbf16>
    %23 = arith.truncf %21 : vector<16x128xf32> to vector<16x128xbf16>
    %cst = arith.constant dense<0.000000e+00> : vector<16x32xf32>
    %24 = tpu.matmul %23, %22, %cst {dimension_numbers = #tpu.dot_dimension_numbers<[1], [0], [0], [1], [0, 0, 1, 1], [], []>} : vector<16x128xbf16>, vector<128x32xbf16>, vector<16x32xf32> -> vector<16x32xf32>
    %c0_5 = arith.constant 0 : index
    %c0_6 = arith.constant 0 : index
    %25 = vector.load %arg4[%c0_5, %c0_6] : memref<16x32xf32, #tpu.memory_space<vmem>>, vector<8x32xf32>
    %26 = vector.shape_cast %24 : vector<16x32xf32> to vector<2x8x32xf32>
    %27 = vector.shape_cast %25 : vector<8x32xf32> to vector<1x8x32xf32>
    %28 = vector.broadcast %27 : vector<1x8x32xf32> to vector<2x8x32xf32>
    %29 = arith.addf %26, %28 : vector<2x8x32xf32>
    %30 = vector.shape_cast %29 : vector<2x8x32xf32> to vector<16x32xf32>
    %c0_7 = arith.constant 0 : index
    %c0_8 = arith.constant 0 : index
    %31 = vector.load %arg2[%c0_7, %c0_8] : memref<32x32xf32, #tpu.memory_space<vmem>>, vector<32x32xf32>
    %32 = arith.truncf %31 : vector<32x32xf32> to vector<32x32xbf16>
    %c0_9 = arith.constant 0 : index
    %c0_10 = arith.constant 0 : index
    %c0_11 = arith.constant 0 : index
    %33 = vector.load %arg7[%c0_9, %c0_10, %c0_11] : memref<2x1x32xf32, #tpu.memory_space<vmem>>, vector<1x1x32xf32>
    %34 = vector.shape_cast %33 : vector<1x1x32xf32> to vector<1x32xf32>
    %c0_12 = arith.constant 0 : index
    %c0_13 = arith.constant 0 : index
    %c0_14 = arith.constant 0 : index
    %35 = vector.load %arg8[%c0_12, %c0_13, %c0_14] : memref<2x1x32xf32, #tpu.memory_space<vmem>>, vector<1x1x32xf32>
    %36 = vector.shape_cast %35 : vector<1x1x32xf32> to vector<1x32xf32>
    %cst_15 = arith.constant dense<0.000000e+00> : vector<16xf32>
    %37 = vector.multi_reduction <add>, %30, %cst_15 [1] : vector<16x32xf32> to vector<16xf32>
    %38 = vector.shape_cast %37 : vector<16xf32> to vector<16x1xf32>
    %cst_16 = arith.constant 3.200000e+01 : f32
    %39 = vector.broadcast %cst_16 : f32 to vector<16x1xf32>
    %40 = arith.divf %38, %39 : vector<16x1xf32>
    %41 = vector.broadcast %40 : vector<16x1xf32> to vector<16x32xf32>
    %42 = arith.subf %30, %41 : vector<16x32xf32>
    %43 = arith.mulf %42, %42 : vector<16x32xf32>
    %cst_17 = arith.constant dense<0.000000e+00> : vector<16xf32>
    %44 = vector.multi_reduction <add>, %43, %cst_17 [1] : vector<16x32xf32> to vector<16xf32>
    %45 = vector.shape_cast %44 : vector<16xf32> to vector<16x1xf32>
    %cst_18 = arith.constant 3.200000e+01 : f32
    %46 = vector.broadcast %cst_18 : f32 to vector<16x1xf32>
    %47 = arith.divf %45, %46 : vector<16x1xf32>
    %48 = vector.broadcast %40 : vector<16x1xf32> to vector<16x32xf32>
    %49 = arith.subf %30, %48 : vector<16x32xf32>
    %cst_19 = arith.constant 9.99999974E-6 : f32
    %50 = vector.broadcast %cst_19 : f32 to vector<16x1xf32>
    %51 = arith.addf %47, %50 : vector<16x1xf32>
    %52 = math.rsqrt %51 : vector<16x1xf32>
    %53 = vector.broadcast %52 : vector<16x1xf32> to vector<16x32xf32>
    %54 = arith.mulf %49, %53 : vector<16x32xf32>
    %55 = vector.broadcast %34 : vector<1x32xf32> to vector<16x32xf32>
    %56 = arith.mulf %54, %55 : vector<16x32xf32>
    %57 = vector.broadcast %36 : vector<1x32xf32> to vector<16x32xf32>
    %58 = arith.addf %56, %57 : vector<16x32xf32>
    %c0_20 = arith.constant 0 : index
    %c0_21 = arith.constant 0 : index
    %c0_22 = arith.constant 0 : index
    %59 = vector.load %arg9[%c0_20, %c0_21, %c0_22] : memref<2x32x96xbf16, #tpu.memory_space<vmem>>, vector<1x32x96xbf16>
    %60 = vector.shape_cast %59 : vector<1x32x96xbf16> to vector<32x96xbf16>
    %61 = arith.truncf %58 : vector<16x32xf32> to vector<16x32xbf16>
    %cst_23 = arith.constant dense<0.000000e+00> : vector<16x96xf32>
    %62 = tpu.matmul %61, %60, %cst_23 {dimension_numbers = #tpu.dot_dimension_numbers<[1], [0], [0], [1], [0, 0, 1, 1], [], []>} : vector<16x32xbf16>, vector<32x96xbf16>, vector<16x96xf32> -> vector<16x96xf32>
    %c0_24 = arith.constant 0 : index
    %c0_25 = arith.constant 0 : index
    %c0_26 = arith.constant 0 : index
    %63 = vector.load %arg10[%c0_24, %c0_25, %c0_26] : memref<2x1x96xf32, #tpu.memory_space<vmem>>, vector<1x1x96xf32>
    %64 = vector.shape_cast %63 : vector<1x1x96xf32> to vector<1x96xf32>
    %65 = vector.broadcast %64 : vector<1x96xf32> to vector<16x96xf32>
    %66 = arith.addf %62, %65 : vector<16x96xf32>
    %67 = vector.extract_strided_slice %66 {offsets = [0, 0], sizes = [16, 32], strides = [1, 1]} : vector<16x96xf32> to vector<16x32xf32>
    %68 = vector.extract_strided_slice %66 {offsets = [0, 32], sizes = [16, 32], strides = [1, 1]} : vector<16x96xf32> to vector<16x32xf32>
    %69 = vector.extract_strided_slice %66 {offsets = [0, 64], sizes = [16, 32], strides = [1, 1]} : vector<16x96xf32> to vector<16x32xf32>
    %70 = vector.extract_strided_slice %67 {offsets = [0, 0], sizes = [16, 8], strides = [1, 1]} : vector<16x32xf32> to vector<16x8xf32>
    %71 = vector.extract_strided_slice %68 {offsets = [0, 0], sizes = [16, 8], strides = [1, 1]} : vector<16x32xf32> to vector<16x8xf32>
    %72 = vector.extract_strided_slice %69 {offsets = [0, 0], sizes = [16, 8], strides = [1, 1]} : vector<16x32xf32> to vector<16x8xf32>
    %73 = arith.truncf %70 : vector<16x8xf32> to vector<16x8xbf16>
    %74 = arith.truncf %71 : vector<16x8xf32> to vector<16x8xbf16>
    %cst_27 = arith.constant dense<0.000000e+00> : vector<16x16xf32>
    %75 = tpu.matmul %73, %74, %cst_27 {dimension_numbers = #tpu.dot_dimension_numbers<[1], [1], [0], [0], [0, 0, 1, 0], [], []>} : vector<16x8xbf16>, vector<16x8xbf16>, vector<16x16xf32> -> vector<16x16xf32>
    %cst_28 = arith.constant 0.353553385 : f32
    %76 = vector.broadcast %cst_28 : f32 to vector<16x16xf32>
    %77 = arith.mulf %75, %76 : vector<16x16xf32>
    %cst_29 = arith.constant -1.000000e+30 : f32
    %78 = vector.broadcast %cst_29 : f32 to vector<16x16xf32>
    %79 = arith.select %8, %77, %78 : vector<16x16xi1>, vector<16x16xf32>
    %cst_30 = arith.constant dense<0xFF800000> : vector<16xf32>
    %80 = vector.multi_reduction <maximumf>, %79, %cst_30 [1] : vector<16x16xf32> to vector<16xf32>
    %81 = vector.shape_cast %80 : vector<16xf32> to vector<16x1xf32>
    %82 = vector.broadcast %81 : vector<16x1xf32> to vector<16x16xf32>
    %83 = arith.subf %79, %82 : vector<16x16xf32>
    %84 = math.exp %83 : vector<16x16xf32>
    %cst_31 = arith.constant dense<0.000000e+00> : vector<16xf32>
    %85 = vector.multi_reduction <add>, %84, %cst_31 [1] : vector<16x16xf32> to vector<16xf32>
    %86 = vector.shape_cast %85 : vector<16xf32> to vector<16x1xf32>
    %87 = tpu.reciprocal %86 {approx = true} : vector<16x1xf32> -> vector<16x1xf32>
    %88 = vector.broadcast %87 : vector<16x1xf32> to vector<16x16xf32>
    %89 = arith.mulf %84, %88 : vector<16x16xf32>
    %90 = arith.truncf %89 : vector<16x16xf32> to vector<16x16xbf16>
    %91 = arith.truncf %72 : vector<16x8xf32> to vector<16x8xbf16>
    %cst_32 = arith.constant dense<0.000000e+00> : vector<16x8xf32>
    %92 = tpu.matmul %90, %91, %cst_32 {dimension_numbers = #tpu.dot_dimension_numbers<[1], [0], [0], [1], [0, 0, 1, 1], [], []>} : vector<16x16xbf16>, vector<16x8xbf16>, vector<16x8xf32> -> vector<16x8xf32>
    %93 = vector.extract_strided_slice %67 {offsets = [0, 8], sizes = [16, 8], strides = [1, 1]} : vector<16x32xf32> to vector<16x8xf32>
    %94 = vector.extract_strided_slice %68 {offsets = [0, 8], sizes = [16, 8], strides = [1, 1]} : vector<16x32xf32> to vector<16x8xf32>
    %95 = vector.extract_strided_slice %69 {offsets = [0, 8], sizes = [16, 8], strides = [1, 1]} : vector<16x32xf32> to vector<16x8xf32>
    %96 = arith.truncf %93 : vector<16x8xf32> to vector<16x8xbf16>
    %97 = arith.truncf %94 : vector<16x8xf32> to vector<16x8xbf16>
    %cst_33 = arith.constant dense<0.000000e+00> : vector<16x16xf32>
    %98 = tpu.matmul %96, %97, %cst_33 {dimension_numbers = #tpu.dot_dimension_numbers<[1], [1], [0], [0], [0, 0, 1, 0], [], []>} : vector<16x8xbf16>, vector<16x8xbf16>, vector<16x16xf32> -> vector<16x16xf32>
    %cst_34 = arith.constant 0.353553385 : f32
    %99 = vector.broadcast %cst_34 : f32 to vector<16x16xf32>
    %100 = arith.mulf %98, %99 : vector<16x16xf32>
    %cst_35 = arith.constant -1.000000e+30 : f32
    %101 = vector.broadcast %cst_35 : f32 to vector<16x16xf32>
    %102 = arith.select %8, %100, %101 : vector<16x16xi1>, vector<16x16xf32>
    %cst_36 = arith.constant dense<0xFF800000> : vector<16xf32>
    %103 = vector.multi_reduction <maximumf>, %102, %cst_36 [1] : vector<16x16xf32> to vector<16xf32>
    %104 = vector.shape_cast %103 : vector<16xf32> to vector<16x1xf32>
    %105 = vector.broadcast %104 : vector<16x1xf32> to vector<16x16xf32>
    %106 = arith.subf %102, %105 : vector<16x16xf32>
    %107 = math.exp %106 : vector<16x16xf32>
    %cst_37 = arith.constant dense<0.000000e+00> : vector<16xf32>
    %108 = vector.multi_reduction <add>, %107, %cst_37 [1] : vector<16x16xf32> to vector<16xf32>
    %109 = vector.shape_cast %108 : vector<16xf32> to vector<16x1xf32>
    %110 = tpu.reciprocal %109 {approx = true} : vector<16x1xf32> -> vector<16x1xf32>
    %111 = vector.broadcast %110 : vector<16x1xf32> to vector<16x16xf32>
    %112 = arith.mulf %107, %111 : vector<16x16xf32>
    %113 = arith.truncf %112 : vector<16x16xf32> to vector<16x16xbf16>
    %114 = arith.truncf %95 : vector<16x8xf32> to vector<16x8xbf16>
    %cst_38 = arith.constant dense<0.000000e+00> : vector<16x8xf32>
    %115 = tpu.matmul %113, %114, %cst_38 {dimension_numbers = #tpu.dot_dimension_numbers<[1], [0], [0], [1], [0, 0, 1, 1], [], []>} : vector<16x16xbf16>, vector<16x8xbf16>, vector<16x8xf32> -> vector<16x8xf32>
    %116 = vector.extract_strided_slice %67 {offsets = [0, 16], sizes = [16, 8], strides = [1, 1]} : vector<16x32xf32> to vector<16x8xf32>
    %117 = vector.extract_strided_slice %68 {offsets = [0, 16], sizes = [16, 8], strides = [1, 1]} : vector<16x32xf32> to vector<16x8xf32>
    %118 = vector.extract_strided_slice %69 {offsets = [0, 16], sizes = [16, 8], strides = [1, 1]} : vector<16x32xf32> to vector<16x8xf32>
    %119 = arith.truncf %116 : vector<16x8xf32> to vector<16x8xbf16>
    %120 = arith.truncf %117 : vector<16x8xf32> to vector<16x8xbf16>
    %cst_39 = arith.constant dense<0.000000e+00> : vector<16x16xf32>
    %121 = tpu.matmul %119, %120, %cst_39 {dimension_numbers = #tpu.dot_dimension_numbers<[1], [1], [0], [0], [0, 0, 1, 0], [], []>} : vector<16x8xbf16>, vector<16x8xbf16>, vector<16x16xf32> -> vector<16x16xf32>
    %cst_40 = arith.constant 0.353553385 : f32
    %122 = vector.broadcast %cst_40 : f32 to vector<16x16xf32>
    %123 = arith.mulf %121, %122 : vector<16x16xf32>
    %cst_41 = arith.constant -1.000000e+30 : f32
    %124 = vector.broadcast %cst_41 : f32 to vector<16x16xf32>
    %125 = arith.select %8, %123, %124 : vector<16x16xi1>, vector<16x16xf32>
    %cst_42 = arith.constant dense<0xFF800000> : vector<16xf32>
    %126 = vector.multi_reduction <maximumf>, %125, %cst_42 [1] : vector<16x16xf32> to vector<16xf32>
    %127 = vector.shape_cast %126 : vector<16xf32> to vector<16x1xf32>
    %128 = vector.broadcast %127 : vector<16x1xf32> to vector<16x16xf32>
    %129 = arith.subf %125, %128 : vector<16x16xf32>
    %130 = math.exp %129 : vector<16x16xf32>
    %cst_43 = arith.constant dense<0.000000e+00> : vector<16xf32>
    %131 = vector.multi_reduction <add>, %130, %cst_43 [1] : vector<16x16xf32> to vector<16xf32>
    %132 = vector.shape_cast %131 : vector<16xf32> to vector<16x1xf32>
    %133 = tpu.reciprocal %132 {approx = true} : vector<16x1xf32> -> vector<16x1xf32>
    %134 = vector.broadcast %133 : vector<16x1xf32> to vector<16x16xf32>
    %135 = arith.mulf %130, %134 : vector<16x16xf32>
    %136 = arith.truncf %135 : vector<16x16xf32> to vector<16x16xbf16>
    %137 = arith.truncf %118 : vector<16x8xf32> to vector<16x8xbf16>
    %cst_44 = arith.constant dense<0.000000e+00> : vector<16x8xf32>
    %138 = tpu.matmul %136, %137, %cst_44 {dimension_numbers = #tpu.dot_dimension_numbers<[1], [0], [0], [1], [0, 0, 1, 1], [], []>} : vector<16x16xbf16>, vector<16x8xbf16>, vector<16x8xf32> -> vector<16x8xf32>
    %139 = vector.extract_strided_slice %67 {offsets = [0, 24], sizes = [16, 8], strides = [1, 1]} : vector<16x32xf32> to vector<16x8xf32>
    %140 = vector.extract_strided_slice %68 {offsets = [0, 24], sizes = [16, 8], strides = [1, 1]} : vector<16x32xf32> to vector<16x8xf32>
    %141 = vector.extract_strided_slice %69 {offsets = [0, 24], sizes = [16, 8], strides = [1, 1]} : vector<16x32xf32> to vector<16x8xf32>
    %142 = arith.truncf %139 : vector<16x8xf32> to vector<16x8xbf16>
    %143 = arith.truncf %140 : vector<16x8xf32> to vector<16x8xbf16>
    %cst_45 = arith.constant dense<0.000000e+00> : vector<16x16xf32>
    %144 = tpu.matmul %142, %143, %cst_45 {dimension_numbers = #tpu.dot_dimension_numbers<[1], [1], [0], [0], [0, 0, 1, 0], [], []>} : vector<16x8xbf16>, vector<16x8xbf16>, vector<16x16xf32> -> vector<16x16xf32>
    %cst_46 = arith.constant 0.353553385 : f32
    %145 = vector.broadcast %cst_46 : f32 to vector<16x16xf32>
    %146 = arith.mulf %144, %145 : vector<16x16xf32>
    %cst_47 = arith.constant -1.000000e+30 : f32
    %147 = vector.broadcast %cst_47 : f32 to vector<16x16xf32>
    %148 = arith.select %8, %146, %147 : vector<16x16xi1>, vector<16x16xf32>
    %cst_48 = arith.constant dense<0xFF800000> : vector<16xf32>
    %149 = vector.multi_reduction <maximumf>, %148, %cst_48 [1] : vector<16x16xf32> to vector<16xf32>
    %150 = vector.shape_cast %149 : vector<16xf32> to vector<16x1xf32>
    %151 = vector.broadcast %150 : vector<16x1xf32> to vector<16x16xf32>
    %152 = arith.subf %148, %151 : vector<16x16xf32>
    %153 = math.exp %152 : vector<16x16xf32>
    %cst_49 = arith.constant dense<0.000000e+00> : vector<16xf32>
    %154 = vector.multi_reduction <add>, %153, %cst_49 [1] : vector<16x16xf32> to vector<16xf32>
    %155 = vector.shape_cast %154 : vector<16xf32> to vector<16x1xf32>
    %156 = tpu.reciprocal %155 {approx = true} : vector<16x1xf32> -> vector<16x1xf32>
    %157 = vector.broadcast %156 : vector<16x1xf32> to vector<16x16xf32>
    %158 = arith.mulf %153, %157 : vector<16x16xf32>
    %159 = arith.truncf %158 : vector<16x16xf32> to vector<16x16xbf16>
    %160 = arith.truncf %141 : vector<16x8xf32> to vector<16x8xbf16>
    %cst_50 = arith.constant dense<0.000000e+00> : vector<16x8xf32>
    %161 = tpu.matmul %159, %160, %cst_50 {dimension_numbers = #tpu.dot_dimension_numbers<[1], [0], [0], [1], [0, 0, 1, 1], [], []>} : vector<16x16xbf16>, vector<16x8xbf16>, vector<16x8xf32> -> vector<16x8xf32>
    %162 = tpu.concatenate %92, %115, %138, %161 in 1 : vector<16x8xf32>, vector<16x8xf32>, vector<16x8xf32>, vector<16x8xf32> -> vector<16x32xf32>
    %c0_51 = arith.constant 0 : index
    %c0_52 = arith.constant 0 : index
    %c0_53 = arith.constant 0 : index
    %163 = vector.load %arg11[%c0_51, %c0_52, %c0_53] : memref<2x32x32xbf16, #tpu.memory_space<vmem>>, vector<1x32x32xbf16>
    %164 = vector.shape_cast %163 : vector<1x32x32xbf16> to vector<32x32xbf16>
    %165 = arith.truncf %162 : vector<16x32xf32> to vector<16x32xbf16>
    %cst_54 = arith.constant dense<0.000000e+00> : vector<16x32xf32>
    %166 = tpu.matmul %165, %164, %cst_54 {dimension_numbers = #tpu.dot_dimension_numbers<[1], [0], [0], [1], [0, 0, 1, 1], [], []>} : vector<16x32xbf16>, vector<32x32xbf16>, vector<16x32xf32> -> vector<16x32xf32>
    %167 = arith.addf %30, %166 : vector<16x32xf32>
    %c0_55 = arith.constant 0 : index
    %c0_56 = arith.constant 0 : index
    %c0_57 = arith.constant 0 : index
    %168 = vector.load %arg12[%c0_55, %c0_56, %c0_57] : memref<2x1x32xf32, #tpu.memory_space<vmem>>, vector<1x1x32xf32>
    %169 = vector.shape_cast %168 : vector<1x1x32xf32> to vector<1x32xf32>
    %170 = vector.broadcast %169 : vector<1x32xf32> to vector<16x32xf32>
    %171 = arith.addf %167, %170 : vector<16x32xf32>
    %c0_58 = arith.constant 0 : index
    %c0_59 = arith.constant 0 : index
    %c0_60 = arith.constant 0 : index
    %172 = vector.load %arg13[%c0_58, %c0_59, %c0_60] : memref<2x1x32xf32, #tpu.memory_space<vmem>>, vector<1x1x32xf32>
    %173 = vector.shape_cast %172 : vector<1x1x32xf32> to vector<1x32xf32>
    %c0_61 = arith.constant 0 : index
    %c0_62 = arith.constant 0 : index
    %c0_63 = arith.constant 0 : index
    %174 = vector.load %arg14[%c0_61, %c0_62, %c0_63] : memref<2x1x32xf32, #tpu.memory_space<vmem>>, vector<1x1x32xf32>
    %175 = vector.shape_cast %174 : vector<1x1x32xf32> to vector<1x32xf32>
    %cst_64 = arith.constant dense<0.000000e+00> : vector<16xf32>
    %176 = vector.multi_reduction <add>, %171, %cst_64 [1] : vector<16x32xf32> to vector<16xf32>
    %177 = vector.shape_cast %176 : vector<16xf32> to vector<16x1xf32>
    %cst_65 = arith.constant 3.200000e+01 : f32
    %178 = vector.broadcast %cst_65 : f32 to vector<16x1xf32>
    %179 = arith.divf %177, %178 : vector<16x1xf32>
    %180 = vector.broadcast %179 : vector<16x1xf32> to vector<16x32xf32>
    %181 = arith.subf %171, %180 : vector<16x32xf32>
    %182 = arith.mulf %181, %181 : vector<16x32xf32>
    %cst_66 = arith.constant dense<0.000000e+00> : vector<16xf32>
    %183 = vector.multi_reduction <add>, %182, %cst_66 [1] : vector<16x32xf32> to vector<16xf32>
    %184 = vector.shape_cast %183 : vector<16xf32> to vector<16x1xf32>
    %cst_67 = arith.constant 3.200000e+01 : f32
    %185 = vector.broadcast %cst_67 : f32 to vector<16x1xf32>
    %186 = arith.divf %184, %185 : vector<16x1xf32>
    %187 = vector.broadcast %179 : vector<16x1xf32> to vector<16x32xf32>
    %188 = arith.subf %171, %187 : vector<16x32xf32>
    %cst_68 = arith.constant 9.99999974E-6 : f32
    %189 = vector.broadcast %cst_68 : f32 to vector<16x1xf32>
    %190 = arith.addf %186, %189 : vector<16x1xf32>
    %191 = math.rsqrt %190 : vector<16x1xf32>
    %192 = vector.broadcast %191 : vector<16x1xf32> to vector<16x32xf32>
    %193 = arith.mulf %188, %192 : vector<16x32xf32>
    %194 = vector.broadcast %173 : vector<1x32xf32> to vector<16x32xf32>
    %195 = arith.mulf %193, %194 : vector<16x32xf32>
    %196 = vector.broadcast %175 : vector<1x32xf32> to vector<16x32xf32>
    %197 = arith.addf %195, %196 : vector<16x32xf32>
    %c0_69 = arith.constant 0 : index
    %c0_70 = arith.constant 0 : index
    %c0_71 = arith.constant 0 : index
    %198 = vector.load %arg15[%c0_69, %c0_70, %c0_71] : memref<2x32x32xbf16, #tpu.memory_space<vmem>>, vector<1x32x32xbf16>
    %199 = vector.shape_cast %198 : vector<1x32x32xbf16> to vector<32x32xbf16>
    %200 = arith.truncf %197 : vector<16x32xf32> to vector<16x32xbf16>
    %cst_72 = arith.constant dense<0.000000e+00> : vector<16x32xf32>
    %201 = tpu.matmul %200, %199, %cst_72 {dimension_numbers = #tpu.dot_dimension_numbers<[1], [0], [0], [1], [0, 0, 1, 1], [], []>} : vector<16x32xbf16>, vector<32x32xbf16>, vector<16x32xf32> -> vector<16x32xf32>
    %c0_73 = arith.constant 0 : index
    %c0_74 = arith.constant 0 : index
    %c0_75 = arith.constant 0 : index
    %202 = vector.load %arg16[%c0_73, %c0_74, %c0_75] : memref<2x1x32xf32, #tpu.memory_space<vmem>>, vector<1x1x32xf32>
    %203 = vector.shape_cast %202 : vector<1x1x32xf32> to vector<1x32xf32>
    %204 = vector.broadcast %203 : vector<1x32xf32> to vector<16x32xf32>
    %205 = arith.addf %201, %204 : vector<16x32xf32>
    %c0_76 = arith.constant 0 : index
    %c0_77 = arith.constant 0 : index
    %c0_78 = arith.constant 0 : index
    %206 = vector.load %arg17[%c0_76, %c0_77, %c0_78] : memref<2x32x64xbf16, #tpu.memory_space<vmem>>, vector<1x32x64xbf16>
    %207 = vector.shape_cast %206 : vector<1x32x64xbf16> to vector<32x64xbf16>
    %cst_79 = arith.constant dense<0.000000e+00> : vector<32x64xf32>
    %208 = tpu.matmul %32, %207, %cst_79 {dimension_numbers = #tpu.dot_dimension_numbers<[1], [0], [0], [1], [0, 0, 1, 1], [], []>} : vector<32x32xbf16>, vector<32x64xbf16>, vector<32x64xf32> -> vector<32x64xf32>
    %c0_80 = arith.constant 0 : index
    %c0_81 = arith.constant 0 : index
    %c0_82 = arith.constant 0 : index
    %209 = vector.load %arg18[%c0_80, %c0_81, %c0_82] : memref<2x1x64xf32, #tpu.memory_space<vmem>>, vector<1x1x64xf32>
    %210 = vector.shape_cast %209 : vector<1x1x64xf32> to vector<1x64xf32>
    %211 = vector.broadcast %210 : vector<1x64xf32> to vector<32x64xf32>
    %212 = arith.addf %208, %211 : vector<32x64xf32>
    %213 = vector.extract_strided_slice %212 {offsets = [0, 0], sizes = [32, 32], strides = [1, 1]} : vector<32x64xf32> to vector<32x32xf32>
    %214 = vector.extract_strided_slice %212 {offsets = [0, 32], sizes = [32, 32], strides = [1, 1]} : vector<32x64xf32> to vector<32x32xf32>
    %215 = vector.extract_strided_slice %205 {offsets = [0, 0], sizes = [16, 8], strides = [1, 1]} : vector<16x32xf32> to vector<16x8xf32>
    %216 = vector.extract_strided_slice %213 {offsets = [0, 0], sizes = [32, 8], strides = [1, 1]} : vector<32x32xf32> to vector<32x8xf32>
    %217 = vector.extract_strided_slice %214 {offsets = [0, 0], sizes = [32, 8], strides = [1, 1]} : vector<32x32xf32> to vector<32x8xf32>
    %218 = arith.truncf %215 : vector<16x8xf32> to vector<16x8xbf16>
    %219 = arith.truncf %216 : vector<32x8xf32> to vector<32x8xbf16>
    %cst_83 = arith.constant dense<0.000000e+00> : vector<16x32xf32>
    %220 = tpu.matmul %218, %219, %cst_83 {dimension_numbers = #tpu.dot_dimension_numbers<[1], [1], [0], [0], [0, 0, 1, 0], [], []>} : vector<16x8xbf16>, vector<32x8xbf16>, vector<16x32xf32> -> vector<16x32xf32>
    %cst_84 = arith.constant 0.353553385 : f32
    %221 = vector.broadcast %cst_84 : f32 to vector<16x32xf32>
    %222 = arith.mulf %220, %221 : vector<16x32xf32>
    %cst_85 = arith.constant -1.000000e+30 : f32
    %223 = vector.broadcast %cst_85 : f32 to vector<16x32xf32>
    %224 = arith.select %15, %222, %223 : vector<16x32xi1>, vector<16x32xf32>
    %cst_86 = arith.constant dense<0xFF800000> : vector<16xf32>
    %225 = vector.multi_reduction <maximumf>, %224, %cst_86 [1] : vector<16x32xf32> to vector<16xf32>
    %226 = vector.shape_cast %225 : vector<16xf32> to vector<16x1xf32>
    %227 = vector.broadcast %226 : vector<16x1xf32> to vector<16x32xf32>
    %228 = arith.subf %224, %227 : vector<16x32xf32>
    %229 = math.exp %228 : vector<16x32xf32>
    %cst_87 = arith.constant dense<0.000000e+00> : vector<16xf32>
    %230 = vector.multi_reduction <add>, %229, %cst_87 [1] : vector<16x32xf32> to vector<16xf32>
    %231 = vector.shape_cast %230 : vector<16xf32> to vector<16x1xf32>
    %232 = tpu.reciprocal %231 {approx = true} : vector<16x1xf32> -> vector<16x1xf32>
    %233 = vector.broadcast %232 : vector<16x1xf32> to vector<16x32xf32>
    %234 = arith.mulf %229, %233 : vector<16x32xf32>
    %235 = arith.truncf %234 : vector<16x32xf32> to vector<16x32xbf16>
    %236 = arith.truncf %217 : vector<32x8xf32> to vector<32x8xbf16>
    %cst_88 = arith.constant dense<0.000000e+00> : vector<16x8xf32>
    %237 = tpu.matmul %235, %236, %cst_88 {dimension_numbers = #tpu.dot_dimension_numbers<[1], [0], [0], [1], [0, 0, 1, 1], [], []>} : vector<16x32xbf16>, vector<32x8xbf16>, vector<16x8xf32> -> vector<16x8xf32>
    %238 = vector.extract_strided_slice %205 {offsets = [0, 8], sizes = [16, 8], strides = [1, 1]} : vector<16x32xf32> to vector<16x8xf32>
    %239 = vector.extract_strided_slice %213 {offsets = [0, 8], sizes = [32, 8], strides = [1, 1]} : vector<32x32xf32> to vector<32x8xf32>
    %240 = vector.extract_strided_slice %214 {offsets = [0, 8], sizes = [32, 8], strides = [1, 1]} : vector<32x32xf32> to vector<32x8xf32>
    %241 = arith.truncf %238 : vector<16x8xf32> to vector<16x8xbf16>
    %242 = arith.truncf %239 : vector<32x8xf32> to vector<32x8xbf16>
    %cst_89 = arith.constant dense<0.000000e+00> : vector<16x32xf32>
    %243 = tpu.matmul %241, %242, %cst_89 {dimension_numbers = #tpu.dot_dimension_numbers<[1], [1], [0], [0], [0, 0, 1, 0], [], []>} : vector<16x8xbf16>, vector<32x8xbf16>, vector<16x32xf32> -> vector<16x32xf32>
    %cst_90 = arith.constant 0.353553385 : f32
    %244 = vector.broadcast %cst_90 : f32 to vector<16x32xf32>
    %245 = arith.mulf %243, %244 : vector<16x32xf32>
    %cst_91 = arith.constant -1.000000e+30 : f32
    %246 = vector.broadcast %cst_91 : f32 to vector<16x32xf32>
    %247 = arith.select %15, %245, %246 : vector<16x32xi1>, vector<16x32xf32>
    %cst_92 = arith.constant dense<0xFF800000> : vector<16xf32>
    %248 = vector.multi_reduction <maximumf>, %247, %cst_92 [1] : vector<16x32xf32> to vector<16xf32>
    %249 = vector.shape_cast %248 : vector<16xf32> to vector<16x1xf32>
    %250 = vector.broadcast %249 : vector<16x1xf32> to vector<16x32xf32>
    %251 = arith.subf %247, %250 : vector<16x32xf32>
    %252 = math.exp %251 : vector<16x32xf32>
    %cst_93 = arith.constant dense<0.000000e+00> : vector<16xf32>
    %253 = vector.multi_reduction <add>, %252, %cst_93 [1] : vector<16x32xf32> to vector<16xf32>
    %254 = vector.shape_cast %253 : vector<16xf32> to vector<16x1xf32>
    %255 = tpu.reciprocal %254 {approx = true} : vector<16x1xf32> -> vector<16x1xf32>
    %256 = vector.broadcast %255 : vector<16x1xf32> to vector<16x32xf32>
    %257 = arith.mulf %252, %256 : vector<16x32xf32>
    %258 = arith.truncf %257 : vector<16x32xf32> to vector<16x32xbf16>
    %259 = arith.truncf %240 : vector<32x8xf32> to vector<32x8xbf16>
    %cst_94 = arith.constant dense<0.000000e+00> : vector<16x8xf32>
    %260 = tpu.matmul %258, %259, %cst_94 {dimension_numbers = #tpu.dot_dimension_numbers<[1], [0], [0], [1], [0, 0, 1, 1], [], []>} : vector<16x32xbf16>, vector<32x8xbf16>, vector<16x8xf32> -> vector<16x8xf32>
    %261 = vector.extract_strided_slice %205 {offsets = [0, 16], sizes = [16, 8], strides = [1, 1]} : vector<16x32xf32> to vector<16x8xf32>
    %262 = vector.extract_strided_slice %213 {offsets = [0, 16], sizes = [32, 8], strides = [1, 1]} : vector<32x32xf32> to vector<32x8xf32>
    %263 = vector.extract_strided_slice %214 {offsets = [0, 16], sizes = [32, 8], strides = [1, 1]} : vector<32x32xf32> to vector<32x8xf32>
    %264 = arith.truncf %261 : vector<16x8xf32> to vector<16x8xbf16>
    %265 = arith.truncf %262 : vector<32x8xf32> to vector<32x8xbf16>
    %cst_95 = arith.constant dense<0.000000e+00> : vector<16x32xf32>
    %266 = tpu.matmul %264, %265, %cst_95 {dimension_numbers = #tpu.dot_dimension_numbers<[1], [1], [0], [0], [0, 0, 1, 0], [], []>} : vector<16x8xbf16>, vector<32x8xbf16>, vector<16x32xf32> -> vector<16x32xf32>
    %cst_96 = arith.constant 0.353553385 : f32
    %267 = vector.broadcast %cst_96 : f32 to vector<16x32xf32>
    %268 = arith.mulf %266, %267 : vector<16x32xf32>
    %cst_97 = arith.constant -1.000000e+30 : f32
    %269 = vector.broadcast %cst_97 : f32 to vector<16x32xf32>
    %270 = arith.select %15, %268, %269 : vector<16x32xi1>, vector<16x32xf32>
    %cst_98 = arith.constant dense<0xFF800000> : vector<16xf32>
    %271 = vector.multi_reduction <maximumf>, %270, %cst_98 [1] : vector<16x32xf32> to vector<16xf32>
    %272 = vector.shape_cast %271 : vector<16xf32> to vector<16x1xf32>
    %273 = vector.broadcast %272 : vector<16x1xf32> to vector<16x32xf32>
    %274 = arith.subf %270, %273 : vector<16x32xf32>
    %275 = math.exp %274 : vector<16x32xf32>
    %cst_99 = arith.constant dense<0.000000e+00> : vector<16xf32>
    %276 = vector.multi_reduction <add>, %275, %cst_99 [1] : vector<16x32xf32> to vector<16xf32>
    %277 = vector.shape_cast %276 : vector<16xf32> to vector<16x1xf32>
    %278 = tpu.reciprocal %277 {approx = true} : vector<16x1xf32> -> vector<16x1xf32>
    %279 = vector.broadcast %278 : vector<16x1xf32> to vector<16x32xf32>
    %280 = arith.mulf %275, %279 : vector<16x32xf32>
    %281 = arith.truncf %280 : vector<16x32xf32> to vector<16x32xbf16>
    %282 = arith.truncf %263 : vector<32x8xf32> to vector<32x8xbf16>
    %cst_100 = arith.constant dense<0.000000e+00> : vector<16x8xf32>
    %283 = tpu.matmul %281, %282, %cst_100 {dimension_numbers = #tpu.dot_dimension_numbers<[1], [0], [0], [1], [0, 0, 1, 1], [], []>} : vector<16x32xbf16>, vector<32x8xbf16>, vector<16x8xf32> -> vector<16x8xf32>
    %284 = vector.extract_strided_slice %205 {offsets = [0, 24], sizes = [16, 8], strides = [1, 1]} : vector<16x32xf32> to vector<16x8xf32>
    %285 = vector.extract_strided_slice %213 {offsets = [0, 24], sizes = [32, 8], strides = [1, 1]} : vector<32x32xf32> to vector<32x8xf32>
    %286 = vector.extract_strided_slice %214 {offsets = [0, 24], sizes = [32, 8], strides = [1, 1]} : vector<32x32xf32> to vector<32x8xf32>
    %287 = arith.truncf %284 : vector<16x8xf32> to vector<16x8xbf16>
    %288 = arith.truncf %285 : vector<32x8xf32> to vector<32x8xbf16>
    %cst_101 = arith.constant dense<0.000000e+00> : vector<16x32xf32>
    %289 = tpu.matmul %287, %288, %cst_101 {dimension_numbers = #tpu.dot_dimension_numbers<[1], [1], [0], [0], [0, 0, 1, 0], [], []>} : vector<16x8xbf16>, vector<32x8xbf16>, vector<16x32xf32> -> vector<16x32xf32>
    %cst_102 = arith.constant 0.353553385 : f32
    %290 = vector.broadcast %cst_102 : f32 to vector<16x32xf32>
    %291 = arith.mulf %289, %290 : vector<16x32xf32>
    %cst_103 = arith.constant -1.000000e+30 : f32
    %292 = vector.broadcast %cst_103 : f32 to vector<16x32xf32>
    %293 = arith.select %15, %291, %292 : vector<16x32xi1>, vector<16x32xf32>
    %cst_104 = arith.constant dense<0xFF800000> : vector<16xf32>
    %294 = vector.multi_reduction <maximumf>, %293, %cst_104 [1] : vector<16x32xf32> to vector<16xf32>
    %295 = vector.shape_cast %294 : vector<16xf32> to vector<16x1xf32>
    %296 = vector.broadcast %295 : vector<16x1xf32> to vector<16x32xf32>
    %297 = arith.subf %293, %296 : vector<16x32xf32>
    %298 = math.exp %297 : vector<16x32xf32>
    %cst_105 = arith.constant dense<0.000000e+00> : vector<16xf32>
    %299 = vector.multi_reduction <add>, %298, %cst_105 [1] : vector<16x32xf32> to vector<16xf32>
    %300 = vector.shape_cast %299 : vector<16xf32> to vector<16x1xf32>
    %301 = tpu.reciprocal %300 {approx = true} : vector<16x1xf32> -> vector<16x1xf32>
    %302 = vector.broadcast %301 : vector<16x1xf32> to vector<16x32xf32>
    %303 = arith.mulf %298, %302 : vector<16x32xf32>
    %304 = arith.truncf %303 : vector<16x32xf32> to vector<16x32xbf16>
    %305 = arith.truncf %286 : vector<32x8xf32> to vector<32x8xbf16>
    %cst_106 = arith.constant dense<0.000000e+00> : vector<16x8xf32>
    %306 = tpu.matmul %304, %305, %cst_106 {dimension_numbers = #tpu.dot_dimension_numbers<[1], [0], [0], [1], [0, 0, 1, 1], [], []>} : vector<16x32xbf16>, vector<32x8xbf16>, vector<16x8xf32> -> vector<16x8xf32>
    %307 = tpu.concatenate %237, %260, %283, %306 in 1 : vector<16x8xf32>, vector<16x8xf32>, vector<16x8xf32>, vector<16x8xf32> -> vector<16x32xf32>
    %c0_107 = arith.constant 0 : index
    %c0_108 = arith.constant 0 : index
    %c0_109 = arith.constant 0 : index
    %308 = vector.load %arg19[%c0_107, %c0_108, %c0_109] : memref<2x32x32xbf16, #tpu.memory_space<vmem>>, vector<1x32x32xbf16>
    %309 = vector.shape_cast %308 : vector<1x32x32xbf16> to vector<32x32xbf16>
    %310 = arith.truncf %307 : vector<16x32xf32> to vector<16x32xbf16>
    %cst_110 = arith.constant dense<0.000000e+00> : vector<16x32xf32>
    %311 = tpu.matmul %310, %309, %cst_110 {dimension_numbers = #tpu.dot_dimension_numbers<[1], [0], [0], [1], [0, 0, 1, 1], [], []>} : vector<16x32xbf16>, vector<32x32xbf16>, vector<16x32xf32> -> vector<16x32xf32>
    %312 = arith.addf %171, %311 : vector<16x32xf32>
    %c0_111 = arith.constant 0 : index
    %c0_112 = arith.constant 0 : index
    %c0_113 = arith.constant 0 : index
    %313 = vector.load %arg20[%c0_111, %c0_112, %c0_113] : memref<2x1x32xf32, #tpu.memory_space<vmem>>, vector<1x1x32xf32>
    %314 = vector.shape_cast %313 : vector<1x1x32xf32> to vector<1x32xf32>
    %315 = vector.broadcast %314 : vector<1x32xf32> to vector<16x32xf32>
    %316 = arith.addf %312, %315 : vector<16x32xf32>
    %c0_114 = arith.constant 0 : index
    %c0_115 = arith.constant 0 : index
    %c0_116 = arith.constant 0 : index
    %317 = vector.load %arg21[%c0_114, %c0_115, %c0_116] : memref<2x1x32xf32, #tpu.memory_space<vmem>>, vector<1x1x32xf32>
    %318 = vector.shape_cast %317 : vector<1x1x32xf32> to vector<1x32xf32>
    %c0_117 = arith.constant 0 : index
    %c0_118 = arith.constant 0 : index
    %c0_119 = arith.constant 0 : index
    %319 = vector.load %arg22[%c0_117, %c0_118, %c0_119] : memref<2x1x32xf32, #tpu.memory_space<vmem>>, vector<1x1x32xf32>
    %320 = vector.shape_cast %319 : vector<1x1x32xf32> to vector<1x32xf32>
    %cst_120 = arith.constant dense<0.000000e+00> : vector<16xf32>
    %321 = vector.multi_reduction <add>, %316, %cst_120 [1] : vector<16x32xf32> to vector<16xf32>
    %322 = vector.shape_cast %321 : vector<16xf32> to vector<16x1xf32>
    %cst_121 = arith.constant 3.200000e+01 : f32
    %323 = vector.broadcast %cst_121 : f32 to vector<16x1xf32>
    %324 = arith.divf %322, %323 : vector<16x1xf32>
    %325 = vector.broadcast %324 : vector<16x1xf32> to vector<16x32xf32>
    %326 = arith.subf %316, %325 : vector<16x32xf32>
    %327 = arith.mulf %326, %326 : vector<16x32xf32>
    %cst_122 = arith.constant dense<0.000000e+00> : vector<16xf32>
    %328 = vector.multi_reduction <add>, %327, %cst_122 [1] : vector<16x32xf32> to vector<16xf32>
    %329 = vector.shape_cast %328 : vector<16xf32> to vector<16x1xf32>
    %cst_123 = arith.constant 3.200000e+01 : f32
    %330 = vector.broadcast %cst_123 : f32 to vector<16x1xf32>
    %331 = arith.divf %329, %330 : vector<16x1xf32>
    %332 = vector.broadcast %324 : vector<16x1xf32> to vector<16x32xf32>
    %333 = arith.subf %316, %332 : vector<16x32xf32>
    %cst_124 = arith.constant 9.99999974E-6 : f32
    %334 = vector.broadcast %cst_124 : f32 to vector<16x1xf32>
    %335 = arith.addf %331, %334 : vector<16x1xf32>
    %336 = math.rsqrt %335 : vector<16x1xf32>
    %337 = vector.broadcast %336 : vector<16x1xf32> to vector<16x32xf32>
    %338 = arith.mulf %333, %337 : vector<16x32xf32>
    %339 = vector.broadcast %318 : vector<1x32xf32> to vector<16x32xf32>
    %340 = arith.mulf %338, %339 : vector<16x32xf32>
    %341 = vector.broadcast %320 : vector<1x32xf32> to vector<16x32xf32>
    %342 = arith.addf %340, %341 : vector<16x32xf32>
    %c0_125 = arith.constant 0 : index
    %c0_126 = arith.constant 0 : index
    %c0_127 = arith.constant 0 : index
    %343 = vector.load %arg23[%c0_125, %c0_126, %c0_127] : memref<2x32x128xbf16, #tpu.memory_space<vmem>>, vector<1x32x128xbf16>
    %344 = vector.shape_cast %343 : vector<1x32x128xbf16> to vector<32x128xbf16>
    %345 = arith.truncf %342 : vector<16x32xf32> to vector<16x32xbf16>
    %cst_128 = arith.constant dense<0.000000e+00> : vector<16x128xf32>
    %346 = tpu.matmul %345, %344, %cst_128 {dimension_numbers = #tpu.dot_dimension_numbers<[1], [0], [0], [1], [0, 0, 1, 1], [], []>} : vector<16x32xbf16>, vector<32x128xbf16>, vector<16x128xf32> -> vector<16x128xf32>
    %c0_129 = arith.constant 0 : index
    %c0_130 = arith.constant 0 : index
    %c0_131 = arith.constant 0 : index
    %347 = vector.load %arg24[%c0_129, %c0_130, %c0_131] : memref<2x1x128xf32, #tpu.memory_space<vmem>>, vector<1x1x128xf32>
    %348 = vector.shape_cast %347 : vector<1x1x128xf32> to vector<1x128xf32>
    %349 = vector.broadcast %348 : vector<1x128xf32> to vector<16x128xf32>
    %350 = arith.addf %346, %349 : vector<16x128xf32>
    %cst_132 = arith.constant 5.000000e-01 : f32
    %351 = vector.broadcast %cst_132 : f32 to vector<16x128xf32>
    %352 = arith.mulf %351, %350 : vector<16x128xf32>
    %cst_133 = arith.constant 4.471500e-02 : f32
    %353 = vector.broadcast %cst_133 : f32 to vector<16x128xf32>
    %354 = arith.mulf %353, %350 : vector<16x128xf32>
    %355 = arith.mulf %354, %350 : vector<16x128xf32>
    %356 = arith.mulf %355, %350 : vector<16x128xf32>
    %357 = arith.addf %350, %356 : vector<16x128xf32>
    %cst_134 = arith.constant 0.797884583 : f32
    %358 = vector.broadcast %cst_134 : f32 to vector<16x128xf32>
    %359 = arith.mulf %358, %357 : vector<16x128xf32>
    %360 = math.tanh %359 : vector<16x128xf32>
    %cst_135 = arith.constant 1.000000e+00 : f32
    %361 = vector.broadcast %cst_135 : f32 to vector<16x128xf32>
    %362 = arith.addf %361, %360 : vector<16x128xf32>
    %363 = arith.mulf %352, %362 : vector<16x128xf32>
    %c0_136 = arith.constant 0 : index
    %c0_137 = arith.constant 0 : index
    %c0_138 = arith.constant 0 : index
    %364 = vector.load %arg25[%c0_136, %c0_137, %c0_138] : memref<2x128x32xbf16, #tpu.memory_space<vmem>>, vector<1x128x32xbf16>
    %365 = vector.shape_cast %364 : vector<1x128x32xbf16> to vector<128x32xbf16>
    %366 = arith.truncf %363 : vector<16x128xf32> to vector<16x128xbf16>
    %cst_139 = arith.constant dense<0.000000e+00> : vector<16x32xf32>
    %367 = tpu.matmul %366, %365, %cst_139 {dimension_numbers = #tpu.dot_dimension_numbers<[1], [0], [0], [1], [0, 0, 1, 1], [], []>} : vector<16x128xbf16>, vector<128x32xbf16>, vector<16x32xf32> -> vector<16x32xf32>
    %368 = arith.addf %316, %367 : vector<16x32xf32>
    %c0_140 = arith.constant 0 : index
    %c0_141 = arith.constant 0 : index
    %c0_142 = arith.constant 0 : index
    %369 = vector.load %arg26[%c0_140, %c0_141, %c0_142] : memref<2x1x32xf32, #tpu.memory_space<vmem>>, vector<1x1x32xf32>
    %370 = vector.shape_cast %369 : vector<1x1x32xf32> to vector<1x32xf32>
    %371 = vector.broadcast %370 : vector<1x32xf32> to vector<16x32xf32>
    %372 = arith.addf %368, %371 : vector<16x32xf32>
    %c1 = arith.constant 1 : index
    %c0_143 = arith.constant 0 : index
    %c0_144 = arith.constant 0 : index
    %373 = vector.load %arg7[%c1, %c0_143, %c0_144] : memref<2x1x32xf32, #tpu.memory_space<vmem>>, vector<1x1x32xf32>
    %374 = vector.shape_cast %373 : vector<1x1x32xf32> to vector<1x32xf32>
    %c1_145 = arith.constant 1 : index
    %c0_146 = arith.constant 0 : index
    %c0_147 = arith.constant 0 : index
    %375 = vector.load %arg8[%c1_145, %c0_146, %c0_147] : memref<2x1x32xf32, #tpu.memory_space<vmem>>, vector<1x1x32xf32>
    %376 = vector.shape_cast %375 : vector<1x1x32xf32> to vector<1x32xf32>
    %cst_148 = arith.constant dense<0.000000e+00> : vector<16xf32>
    %377 = vector.multi_reduction <add>, %372, %cst_148 [1] : vector<16x32xf32> to vector<16xf32>
    %378 = vector.shape_cast %377 : vector<16xf32> to vector<16x1xf32>
    %cst_149 = arith.constant 3.200000e+01 : f32
    %379 = vector.broadcast %cst_149 : f32 to vector<16x1xf32>
    %380 = arith.divf %378, %379 : vector<16x1xf32>
    %381 = vector.broadcast %380 : vector<16x1xf32> to vector<16x32xf32>
    %382 = arith.subf %372, %381 : vector<16x32xf32>
    %383 = arith.mulf %382, %382 : vector<16x32xf32>
    %cst_150 = arith.constant dense<0.000000e+00> : vector<16xf32>
    %384 = vector.multi_reduction <add>, %383, %cst_150 [1] : vector<16x32xf32> to vector<16xf32>
    %385 = vector.shape_cast %384 : vector<16xf32> to vector<16x1xf32>
    %cst_151 = arith.constant 3.200000e+01 : f32
    %386 = vector.broadcast %cst_151 : f32 to vector<16x1xf32>
    %387 = arith.divf %385, %386 : vector<16x1xf32>
    %388 = vector.broadcast %380 : vector<16x1xf32> to vector<16x32xf32>
    %389 = arith.subf %372, %388 : vector<16x32xf32>
    %cst_152 = arith.constant 9.99999974E-6 : f32
    %390 = vector.broadcast %cst_152 : f32 to vector<16x1xf32>
    %391 = arith.addf %387, %390 : vector<16x1xf32>
    %392 = math.rsqrt %391 : vector<16x1xf32>
    %393 = vector.broadcast %392 : vector<16x1xf32> to vector<16x32xf32>
    %394 = arith.mulf %389, %393 : vector<16x32xf32>
    %395 = vector.broadcast %374 : vector<1x32xf32> to vector<16x32xf32>
    %396 = arith.mulf %394, %395 : vector<16x32xf32>
    %397 = vector.broadcast %376 : vector<1x32xf32> to vector<16x32xf32>
    %398 = arith.addf %396, %397 : vector<16x32xf32>
    %c1_153 = arith.constant 1 : index
    %c0_154 = arith.constant 0 : index
    %c0_155 = arith.constant 0 : index
    %399 = vector.load %arg9[%c1_153, %c0_154, %c0_155] : memref<2x32x96xbf16, #tpu.memory_space<vmem>>, vector<1x32x96xbf16>
    %400 = vector.shape_cast %399 : vector<1x32x96xbf16> to vector<32x96xbf16>
    %401 = arith.truncf %398 : vector<16x32xf32> to vector<16x32xbf16>
    %cst_156 = arith.constant dense<0.000000e+00> : vector<16x96xf32>
    %402 = tpu.matmul %401, %400, %cst_156 {dimension_numbers = #tpu.dot_dimension_numbers<[1], [0], [0], [1], [0, 0, 1, 1], [], []>} : vector<16x32xbf16>, vector<32x96xbf16>, vector<16x96xf32> -> vector<16x96xf32>
    %c1_157 = arith.constant 1 : index
    %c0_158 = arith.constant 0 : index
    %c0_159 = arith.constant 0 : index
    %403 = vector.load %arg10[%c1_157, %c0_158, %c0_159] : memref<2x1x96xf32, #tpu.memory_space<vmem>>, vector<1x1x96xf32>
    %404 = vector.shape_cast %403 : vector<1x1x96xf32> to vector<1x96xf32>
    %405 = vector.broadcast %404 : vector<1x96xf32> to vector<16x96xf32>
    %406 = arith.addf %402, %405 : vector<16x96xf32>
    %407 = vector.extract_strided_slice %406 {offsets = [0, 0], sizes = [16, 32], strides = [1, 1]} : vector<16x96xf32> to vector<16x32xf32>
    %408 = vector.extract_strided_slice %406 {offsets = [0, 32], sizes = [16, 32], strides = [1, 1]} : vector<16x96xf32> to vector<16x32xf32>
    %409 = vector.extract_strided_slice %406 {offsets = [0, 64], sizes = [16, 32], strides = [1, 1]} : vector<16x96xf32> to vector<16x32xf32>
    %410 = vector.extract_strided_slice %407 {offsets = [0, 0], sizes = [16, 8], strides = [1, 1]} : vector<16x32xf32> to vector<16x8xf32>
    %411 = vector.extract_strided_slice %408 {offsets = [0, 0], sizes = [16, 8], strides = [1, 1]} : vector<16x32xf32> to vector<16x8xf32>
    %412 = vector.extract_strided_slice %409 {offsets = [0, 0], sizes = [16, 8], strides = [1, 1]} : vector<16x32xf32> to vector<16x8xf32>
    %413 = arith.truncf %410 : vector<16x8xf32> to vector<16x8xbf16>
    %414 = arith.truncf %411 : vector<16x8xf32> to vector<16x8xbf16>
    %cst_160 = arith.constant dense<0.000000e+00> : vector<16x16xf32>
    %415 = tpu.matmul %413, %414, %cst_160 {dimension_numbers = #tpu.dot_dimension_numbers<[1], [1], [0], [0], [0, 0, 1, 0], [], []>} : vector<16x8xbf16>, vector<16x8xbf16>, vector<16x16xf32> -> vector<16x16xf32>
    %cst_161 = arith.constant 0.353553385 : f32
    %416 = vector.broadcast %cst_161 : f32 to vector<16x16xf32>
    %417 = arith.mulf %415, %416 : vector<16x16xf32>
    %cst_162 = arith.constant -1.000000e+30 : f32
    %418 = vector.broadcast %cst_162 : f32 to vector<16x16xf32>
    %419 = arith.select %8, %417, %418 : vector<16x16xi1>, vector<16x16xf32>
    %cst_163 = arith.constant dense<0xFF800000> : vector<16xf32>
    %420 = vector.multi_reduction <maximumf>, %419, %cst_163 [1] : vector<16x16xf32> to vector<16xf32>
    %421 = vector.shape_cast %420 : vector<16xf32> to vector<16x1xf32>
    %422 = vector.broadcast %421 : vector<16x1xf32> to vector<16x16xf32>
    %423 = arith.subf %419, %422 : vector<16x16xf32>
    %424 = math.exp %423 : vector<16x16xf32>
    %cst_164 = arith.constant dense<0.000000e+00> : vector<16xf32>
    %425 = vector.multi_reduction <add>, %424, %cst_164 [1] : vector<16x16xf32> to vector<16xf32>
    %426 = vector.shape_cast %425 : vector<16xf32> to vector<16x1xf32>
    %427 = tpu.reciprocal %426 {approx = true} : vector<16x1xf32> -> vector<16x1xf32>
    %428 = vector.broadcast %427 : vector<16x1xf32> to vector<16x16xf32>
    %429 = arith.mulf %424, %428 : vector<16x16xf32>
    %430 = arith.truncf %429 : vector<16x16xf32> to vector<16x16xbf16>
    %431 = arith.truncf %412 : vector<16x8xf32> to vector<16x8xbf16>
    %cst_165 = arith.constant dense<0.000000e+00> : vector<16x8xf32>
    %432 = tpu.matmul %430, %431, %cst_165 {dimension_numbers = #tpu.dot_dimension_numbers<[1], [0], [0], [1], [0, 0, 1, 1], [], []>} : vector<16x16xbf16>, vector<16x8xbf16>, vector<16x8xf32> -> vector<16x8xf32>
    %433 = vector.extract_strided_slice %407 {offsets = [0, 8], sizes = [16, 8], strides = [1, 1]} : vector<16x32xf32> to vector<16x8xf32>
    %434 = vector.extract_strided_slice %408 {offsets = [0, 8], sizes = [16, 8], strides = [1, 1]} : vector<16x32xf32> to vector<16x8xf32>
    %435 = vector.extract_strided_slice %409 {offsets = [0, 8], sizes = [16, 8], strides = [1, 1]} : vector<16x32xf32> to vector<16x8xf32>
    %436 = arith.truncf %433 : vector<16x8xf32> to vector<16x8xbf16>
    %437 = arith.truncf %434 : vector<16x8xf32> to vector<16x8xbf16>
    %cst_166 = arith.constant dense<0.000000e+00> : vector<16x16xf32>
    %438 = tpu.matmul %436, %437, %cst_166 {dimension_numbers = #tpu.dot_dimension_numbers<[1], [1], [0], [0], [0, 0, 1, 0], [], []>} : vector<16x8xbf16>, vector<16x8xbf16>, vector<16x16xf32> -> vector<16x16xf32>
    %cst_167 = arith.constant 0.353553385 : f32
    %439 = vector.broadcast %cst_167 : f32 to vector<16x16xf32>
    %440 = arith.mulf %438, %439 : vector<16x16xf32>
    %cst_168 = arith.constant -1.000000e+30 : f32
    %441 = vector.broadcast %cst_168 : f32 to vector<16x16xf32>
    %442 = arith.select %8, %440, %441 : vector<16x16xi1>, vector<16x16xf32>
    %cst_169 = arith.constant dense<0xFF800000> : vector<16xf32>
    %443 = vector.multi_reduction <maximumf>, %442, %cst_169 [1] : vector<16x16xf32> to vector<16xf32>
    %444 = vector.shape_cast %443 : vector<16xf32> to vector<16x1xf32>
    %445 = vector.broadcast %444 : vector<16x1xf32> to vector<16x16xf32>
    %446 = arith.subf %442, %445 : vector<16x16xf32>
    %447 = math.exp %446 : vector<16x16xf32>
    %cst_170 = arith.constant dense<0.000000e+00> : vector<16xf32>
    %448 = vector.multi_reduction <add>, %447, %cst_170 [1] : vector<16x16xf32> to vector<16xf32>
    %449 = vector.shape_cast %448 : vector<16xf32> to vector<16x1xf32>
    %450 = tpu.reciprocal %449 {approx = true} : vector<16x1xf32> -> vector<16x1xf32>
    %451 = vector.broadcast %450 : vector<16x1xf32> to vector<16x16xf32>
    %452 = arith.mulf %447, %451 : vector<16x16xf32>
    %453 = arith.truncf %452 : vector<16x16xf32> to vector<16x16xbf16>
    %454 = arith.truncf %435 : vector<16x8xf32> to vector<16x8xbf16>
    %cst_171 = arith.constant dense<0.000000e+00> : vector<16x8xf32>
    %455 = tpu.matmul %453, %454, %cst_171 {dimension_numbers = #tpu.dot_dimension_numbers<[1], [0], [0], [1], [0, 0, 1, 1], [], []>} : vector<16x16xbf16>, vector<16x8xbf16>, vector<16x8xf32> -> vector<16x8xf32>
    %456 = vector.extract_strided_slice %407 {offsets = [0, 16], sizes = [16, 8], strides = [1, 1]} : vector<16x32xf32> to vector<16x8xf32>
    %457 = vector.extract_strided_slice %408 {offsets = [0, 16], sizes = [16, 8], strides = [1, 1]} : vector<16x32xf32> to vector<16x8xf32>
    %458 = vector.extract_strided_slice %409 {offsets = [0, 16], sizes = [16, 8], strides = [1, 1]} : vector<16x32xf32> to vector<16x8xf32>
    %459 = arith.truncf %456 : vector<16x8xf32> to vector<16x8xbf16>
    %460 = arith.truncf %457 : vector<16x8xf32> to vector<16x8xbf16>
    %cst_172 = arith.constant dense<0.000000e+00> : vector<16x16xf32>
    %461 = tpu.matmul %459, %460, %cst_172 {dimension_numbers = #tpu.dot_dimension_numbers<[1], [1], [0], [0], [0, 0, 1, 0], [], []>} : vector<16x8xbf16>, vector<16x8xbf16>, vector<16x16xf32> -> vector<16x16xf32>
    %cst_173 = arith.constant 0.353553385 : f32
    %462 = vector.broadcast %cst_173 : f32 to vector<16x16xf32>
    %463 = arith.mulf %461, %462 : vector<16x16xf32>
    %cst_174 = arith.constant -1.000000e+30 : f32
    %464 = vector.broadcast %cst_174 : f32 to vector<16x16xf32>
    %465 = arith.select %8, %463, %464 : vector<16x16xi1>, vector<16x16xf32>
    %cst_175 = arith.constant dense<0xFF800000> : vector<16xf32>
    %466 = vector.multi_reduction <maximumf>, %465, %cst_175 [1] : vector<16x16xf32> to vector<16xf32>
    %467 = vector.shape_cast %466 : vector<16xf32> to vector<16x1xf32>
    %468 = vector.broadcast %467 : vector<16x1xf32> to vector<16x16xf32>
    %469 = arith.subf %465, %468 : vector<16x16xf32>
    %470 = math.exp %469 : vector<16x16xf32>
    %cst_176 = arith.constant dense<0.000000e+00> : vector<16xf32>
    %471 = vector.multi_reduction <add>, %470, %cst_176 [1] : vector<16x16xf32> to vector<16xf32>
    %472 = vector.shape_cast %471 : vector<16xf32> to vector<16x1xf32>
    %473 = tpu.reciprocal %472 {approx = true} : vector<16x1xf32> -> vector<16x1xf32>
    %474 = vector.broadcast %473 : vector<16x1xf32> to vector<16x16xf32>
    %475 = arith.mulf %470, %474 : vector<16x16xf32>
    %476 = arith.truncf %475 : vector<16x16xf32> to vector<16x16xbf16>
    %477 = arith.truncf %458 : vector<16x8xf32> to vector<16x8xbf16>
    %cst_177 = arith.constant dense<0.000000e+00> : vector<16x8xf32>
    %478 = tpu.matmul %476, %477, %cst_177 {dimension_numbers = #tpu.dot_dimension_numbers<[1], [0], [0], [1], [0, 0, 1, 1], [], []>} : vector<16x16xbf16>, vector<16x8xbf16>, vector<16x8xf32> -> vector<16x8xf32>
    %479 = vector.extract_strided_slice %407 {offsets = [0, 24], sizes = [16, 8], strides = [1, 1]} : vector<16x32xf32> to vector<16x8xf32>
    %480 = vector.extract_strided_slice %408 {offsets = [0, 24], sizes = [16, 8], strides = [1, 1]} : vector<16x32xf32> to vector<16x8xf32>
    %481 = vector.extract_strided_slice %409 {offsets = [0, 24], sizes = [16, 8], strides = [1, 1]} : vector<16x32xf32> to vector<16x8xf32>
    %482 = arith.truncf %479 : vector<16x8xf32> to vector<16x8xbf16>
    %483 = arith.truncf %480 : vector<16x8xf32> to vector<16x8xbf16>
    %cst_178 = arith.constant dense<0.000000e+00> : vector<16x16xf32>
    %484 = tpu.matmul %482, %483, %cst_178 {dimension_numbers = #tpu.dot_dimension_numbers<[1], [1], [0], [0], [0, 0, 1, 0], [], []>} : vector<16x8xbf16>, vector<16x8xbf16>, vector<16x16xf32> -> vector<16x16xf32>
    %cst_179 = arith.constant 0.353553385 : f32
    %485 = vector.broadcast %cst_179 : f32 to vector<16x16xf32>
    %486 = arith.mulf %484, %485 : vector<16x16xf32>
    %cst_180 = arith.constant -1.000000e+30 : f32
    %487 = vector.broadcast %cst_180 : f32 to vector<16x16xf32>
    %488 = arith.select %8, %486, %487 : vector<16x16xi1>, vector<16x16xf32>
    %cst_181 = arith.constant dense<0xFF800000> : vector<16xf32>
    %489 = vector.multi_reduction <maximumf>, %488, %cst_181 [1] : vector<16x16xf32> to vector<16xf32>
    %490 = vector.shape_cast %489 : vector<16xf32> to vector<16x1xf32>
    %491 = vector.broadcast %490 : vector<16x1xf32> to vector<16x16xf32>
    %492 = arith.subf %488, %491 : vector<16x16xf32>
    %493 = math.exp %492 : vector<16x16xf32>
    %cst_182 = arith.constant dense<0.000000e+00> : vector<16xf32>
    %494 = vector.multi_reduction <add>, %493, %cst_182 [1] : vector<16x16xf32> to vector<16xf32>
    %495 = vector.shape_cast %494 : vector<16xf32> to vector<16x1xf32>
    %496 = tpu.reciprocal %495 {approx = true} : vector<16x1xf32> -> vector<16x1xf32>
    %497 = vector.broadcast %496 : vector<16x1xf32> to vector<16x16xf32>
    %498 = arith.mulf %493, %497 : vector<16x16xf32>
    %499 = arith.truncf %498 : vector<16x16xf32> to vector<16x16xbf16>
    %500 = arith.truncf %481 : vector<16x8xf32> to vector<16x8xbf16>
    %cst_183 = arith.constant dense<0.000000e+00> : vector<16x8xf32>
    %501 = tpu.matmul %499, %500, %cst_183 {dimension_numbers = #tpu.dot_dimension_numbers<[1], [0], [0], [1], [0, 0, 1, 1], [], []>} : vector<16x16xbf16>, vector<16x8xbf16>, vector<16x8xf32> -> vector<16x8xf32>
    %502 = tpu.concatenate %432, %455, %478, %501 in 1 : vector<16x8xf32>, vector<16x8xf32>, vector<16x8xf32>, vector<16x8xf32> -> vector<16x32xf32>
    %c1_184 = arith.constant 1 : index
    %c0_185 = arith.constant 0 : index
    %c0_186 = arith.constant 0 : index
    %503 = vector.load %arg11[%c1_184, %c0_185, %c0_186] : memref<2x32x32xbf16, #tpu.memory_space<vmem>>, vector<1x32x32xbf16>
    %504 = vector.shape_cast %503 : vector<1x32x32xbf16> to vector<32x32xbf16>
    %505 = arith.truncf %502 : vector<16x32xf32> to vector<16x32xbf16>
    %cst_187 = arith.constant dense<0.000000e+00> : vector<16x32xf32>
    %506 = tpu.matmul %505, %504, %cst_187 {dimension_numbers = #tpu.dot_dimension_numbers<[1], [0], [0], [1], [0, 0, 1, 1], [], []>} : vector<16x32xbf16>, vector<32x32xbf16>, vector<16x32xf32> -> vector<16x32xf32>
    %507 = arith.addf %372, %506 : vector<16x32xf32>
    %c1_188 = arith.constant 1 : index
    %c0_189 = arith.constant 0 : index
    %c0_190 = arith.constant 0 : index
    %508 = vector.load %arg12[%c1_188, %c0_189, %c0_190] : memref<2x1x32xf32, #tpu.memory_space<vmem>>, vector<1x1x32xf32>
    %509 = vector.shape_cast %508 : vector<1x1x32xf32> to vector<1x32xf32>
    %510 = vector.broadcast %509 : vector<1x32xf32> to vector<16x32xf32>
    %511 = arith.addf %507, %510 : vector<16x32xf32>
    %c1_191 = arith.constant 1 : index
    %c0_192 = arith.constant 0 : index
    %c0_193 = arith.constant 0 : index
    %512 = vector.load %arg13[%c1_191, %c0_192, %c0_193] : memref<2x1x32xf32, #tpu.memory_space<vmem>>, vector<1x1x32xf32>
    %513 = vector.shape_cast %512 : vector<1x1x32xf32> to vector<1x32xf32>
    %c1_194 = arith.constant 1 : index
    %c0_195 = arith.constant 0 : index
    %c0_196 = arith.constant 0 : index
    %514 = vector.load %arg14[%c1_194, %c0_195, %c0_196] : memref<2x1x32xf32, #tpu.memory_space<vmem>>, vector<1x1x32xf32>
    %515 = vector.shape_cast %514 : vector<1x1x32xf32> to vector<1x32xf32>
    %cst_197 = arith.constant dense<0.000000e+00> : vector<16xf32>
    %516 = vector.multi_reduction <add>, %511, %cst_197 [1] : vector<16x32xf32> to vector<16xf32>
    %517 = vector.shape_cast %516 : vector<16xf32> to vector<16x1xf32>
    %cst_198 = arith.constant 3.200000e+01 : f32
    %518 = vector.broadcast %cst_198 : f32 to vector<16x1xf32>
    %519 = arith.divf %517, %518 : vector<16x1xf32>
    %520 = vector.broadcast %519 : vector<16x1xf32> to vector<16x32xf32>
    %521 = arith.subf %511, %520 : vector<16x32xf32>
    %522 = arith.mulf %521, %521 : vector<16x32xf32>
    %cst_199 = arith.constant dense<0.000000e+00> : vector<16xf32>
    %523 = vector.multi_reduction <add>, %522, %cst_199 [1] : vector<16x32xf32> to vector<16xf32>
    %524 = vector.shape_cast %523 : vector<16xf32> to vector<16x1xf32>
    %cst_200 = arith.constant 3.200000e+01 : f32
    %525 = vector.broadcast %cst_200 : f32 to vector<16x1xf32>
    %526 = arith.divf %524, %525 : vector<16x1xf32>
    %527 = vector.broadcast %519 : vector<16x1xf32> to vector<16x32xf32>
    %528 = arith.subf %511, %527 : vector<16x32xf32>
    %cst_201 = arith.constant 9.99999974E-6 : f32
    %529 = vector.broadcast %cst_201 : f32 to vector<16x1xf32>
    %530 = arith.addf %526, %529 : vector<16x1xf32>
    %531 = math.rsqrt %530 : vector<16x1xf32>
    %532 = vector.broadcast %531 : vector<16x1xf32> to vector<16x32xf32>
    %533 = arith.mulf %528, %532 : vector<16x32xf32>
    %534 = vector.broadcast %513 : vector<1x32xf32> to vector<16x32xf32>
    %535 = arith.mulf %533, %534 : vector<16x32xf32>
    %536 = vector.broadcast %515 : vector<1x32xf32> to vector<16x32xf32>
    %537 = arith.addf %535, %536 : vector<16x32xf32>
    %c1_202 = arith.constant 1 : index
    %c0_203 = arith.constant 0 : index
    %c0_204 = arith.constant 0 : index
    %538 = vector.load %arg15[%c1_202, %c0_203, %c0_204] : memref<2x32x32xbf16, #tpu.memory_space<vmem>>, vector<1x32x32xbf16>
    %539 = vector.shape_cast %538 : vector<1x32x32xbf16> to vector<32x32xbf16>
    %540 = arith.truncf %537 : vector<16x32xf32> to vector<16x32xbf16>
    %cst_205 = arith.constant dense<0.000000e+00> : vector<16x32xf32>
    %541 = tpu.matmul %540, %539, %cst_205 {dimension_numbers = #tpu.dot_dimension_numbers<[1], [0], [0], [1], [0, 0, 1, 1], [], []>} : vector<16x32xbf16>, vector<32x32xbf16>, vector<16x32xf32> -> vector<16x32xf32>
    %c1_206 = arith.constant 1 : index
    %c0_207 = arith.constant 0 : index
    %c0_208 = arith.constant 0 : index
    %542 = vector.load %arg16[%c1_206, %c0_207, %c0_208] : memref<2x1x32xf32, #tpu.memory_space<vmem>>, vector<1x1x32xf32>
    %543 = vector.shape_cast %542 : vector<1x1x32xf32> to vector<1x32xf32>
    %544 = vector.broadcast %543 : vector<1x32xf32> to vector<16x32xf32>
    %545 = arith.addf %541, %544 : vector<16x32xf32>
    %c1_209 = arith.constant 1 : index
    %c0_210 = arith.constant 0 : index
    %c0_211 = arith.constant 0 : index
    %546 = vector.load %arg17[%c1_209, %c0_210, %c0_211] : memref<2x32x64xbf16, #tpu.memory_space<vmem>>, vector<1x32x64xbf16>
    %547 = vector.shape_cast %546 : vector<1x32x64xbf16> to vector<32x64xbf16>
    %cst_212 = arith.constant dense<0.000000e+00> : vector<32x64xf32>
    %548 = tpu.matmul %32, %547, %cst_212 {dimension_numbers = #tpu.dot_dimension_numbers<[1], [0], [0], [1], [0, 0, 1, 1], [], []>} : vector<32x32xbf16>, vector<32x64xbf16>, vector<32x64xf32> -> vector<32x64xf32>
    %c1_213 = arith.constant 1 : index
    %c0_214 = arith.constant 0 : index
    %c0_215 = arith.constant 0 : index
    %549 = vector.load %arg18[%c1_213, %c0_214, %c0_215] : memref<2x1x64xf32, #tpu.memory_space<vmem>>, vector<1x1x64xf32>
    %550 = vector.shape_cast %549 : vector<1x1x64xf32> to vector<1x64xf32>
    %551 = vector.broadcast %550 : vector<1x64xf32> to vector<32x64xf32>
    %552 = arith.addf %548, %551 : vector<32x64xf32>
    %553 = vector.extract_strided_slice %552 {offsets = [0, 0], sizes = [32, 32], strides = [1, 1]} : vector<32x64xf32> to vector<32x32xf32>
    %554 = vector.extract_strided_slice %552 {offsets = [0, 32], sizes = [32, 32], strides = [1, 1]} : vector<32x64xf32> to vector<32x32xf32>
    %555 = vector.extract_strided_slice %545 {offsets = [0, 0], sizes = [16, 8], strides = [1, 1]} : vector<16x32xf32> to vector<16x8xf32>
    %556 = vector.extract_strided_slice %553 {offsets = [0, 0], sizes = [32, 8], strides = [1, 1]} : vector<32x32xf32> to vector<32x8xf32>
    %557 = vector.extract_strided_slice %554 {offsets = [0, 0], sizes = [32, 8], strides = [1, 1]} : vector<32x32xf32> to vector<32x8xf32>
    %558 = arith.truncf %555 : vector<16x8xf32> to vector<16x8xbf16>
    %559 = arith.truncf %556 : vector<32x8xf32> to vector<32x8xbf16>
    %cst_216 = arith.constant dense<0.000000e+00> : vector<16x32xf32>
    %560 = tpu.matmul %558, %559, %cst_216 {dimension_numbers = #tpu.dot_dimension_numbers<[1], [1], [0], [0], [0, 0, 1, 0], [], []>} : vector<16x8xbf16>, vector<32x8xbf16>, vector<16x32xf32> -> vector<16x32xf32>
    %cst_217 = arith.constant 0.353553385 : f32
    %561 = vector.broadcast %cst_217 : f32 to vector<16x32xf32>
    %562 = arith.mulf %560, %561 : vector<16x32xf32>
    %cst_218 = arith.constant -1.000000e+30 : f32
    %563 = vector.broadcast %cst_218 : f32 to vector<16x32xf32>
    %564 = arith.select %15, %562, %563 : vector<16x32xi1>, vector<16x32xf32>
    %cst_219 = arith.constant dense<0xFF800000> : vector<16xf32>
    %565 = vector.multi_reduction <maximumf>, %564, %cst_219 [1] : vector<16x32xf32> to vector<16xf32>
    %566 = vector.shape_cast %565 : vector<16xf32> to vector<16x1xf32>
    %567 = vector.broadcast %566 : vector<16x1xf32> to vector<16x32xf32>
    %568 = arith.subf %564, %567 : vector<16x32xf32>
    %569 = math.exp %568 : vector<16x32xf32>
    %cst_220 = arith.constant dense<0.000000e+00> : vector<16xf32>
    %570 = vector.multi_reduction <add>, %569, %cst_220 [1] : vector<16x32xf32> to vector<16xf32>
    %571 = vector.shape_cast %570 : vector<16xf32> to vector<16x1xf32>
    %572 = tpu.reciprocal %571 {approx = true} : vector<16x1xf32> -> vector<16x1xf32>
    %573 = vector.broadcast %572 : vector<16x1xf32> to vector<16x32xf32>
    %574 = arith.mulf %569, %573 : vector<16x32xf32>
    %575 = arith.truncf %574 : vector<16x32xf32> to vector<16x32xbf16>
    %576 = arith.truncf %557 : vector<32x8xf32> to vector<32x8xbf16>
    %cst_221 = arith.constant dense<0.000000e+00> : vector<16x8xf32>
    %577 = tpu.matmul %575, %576, %cst_221 {dimension_numbers = #tpu.dot_dimension_numbers<[1], [0], [0], [1], [0, 0, 1, 1], [], []>} : vector<16x32xbf16>, vector<32x8xbf16>, vector<16x8xf32> -> vector<16x8xf32>
    %578 = vector.extract_strided_slice %545 {offsets = [0, 8], sizes = [16, 8], strides = [1, 1]} : vector<16x32xf32> to vector<16x8xf32>
    %579 = vector.extract_strided_slice %553 {offsets = [0, 8], sizes = [32, 8], strides = [1, 1]} : vector<32x32xf32> to vector<32x8xf32>
    %580 = vector.extract_strided_slice %554 {offsets = [0, 8], sizes = [32, 8], strides = [1, 1]} : vector<32x32xf32> to vector<32x8xf32>
    %581 = arith.truncf %578 : vector<16x8xf32> to vector<16x8xbf16>
    %582 = arith.truncf %579 : vector<32x8xf32> to vector<32x8xbf16>
    %cst_222 = arith.constant dense<0.000000e+00> : vector<16x32xf32>
    %583 = tpu.matmul %581, %582, %cst_222 {dimension_numbers = #tpu.dot_dimension_numbers<[1], [1], [0], [0], [0, 0, 1, 0], [], []>} : vector<16x8xbf16>, vector<32x8xbf16>, vector<16x32xf32> -> vector<16x32xf32>
    %cst_223 = arith.constant 0.353553385 : f32
    %584 = vector.broadcast %cst_223 : f32 to vector<16x32xf32>
    %585 = arith.mulf %583, %584 : vector<16x32xf32>
    %cst_224 = arith.constant -1.000000e+30 : f32
    %586 = vector.broadcast %cst_224 : f32 to vector<16x32xf32>
    %587 = arith.select %15, %585, %586 : vector<16x32xi1>, vector<16x32xf32>
    %cst_225 = arith.constant dense<0xFF800000> : vector<16xf32>
    %588 = vector.multi_reduction <maximumf>, %587, %cst_225 [1] : vector<16x32xf32> to vector<16xf32>
    %589 = vector.shape_cast %588 : vector<16xf32> to vector<16x1xf32>
    %590 = vector.broadcast %589 : vector<16x1xf32> to vector<16x32xf32>
    %591 = arith.subf %587, %590 : vector<16x32xf32>
    %592 = math.exp %591 : vector<16x32xf32>
    %cst_226 = arith.constant dense<0.000000e+00> : vector<16xf32>
    %593 = vector.multi_reduction <add>, %592, %cst_226 [1] : vector<16x32xf32> to vector<16xf32>
    %594 = vector.shape_cast %593 : vector<16xf32> to vector<16x1xf32>
    %595 = tpu.reciprocal %594 {approx = true} : vector<16x1xf32> -> vector<16x1xf32>
    %596 = vector.broadcast %595 : vector<16x1xf32> to vector<16x32xf32>
    %597 = arith.mulf %592, %596 : vector<16x32xf32>
    %598 = arith.truncf %597 : vector<16x32xf32> to vector<16x32xbf16>
    %599 = arith.truncf %580 : vector<32x8xf32> to vector<32x8xbf16>
    %cst_227 = arith.constant dense<0.000000e+00> : vector<16x8xf32>
    %600 = tpu.matmul %598, %599, %cst_227 {dimension_numbers = #tpu.dot_dimension_numbers<[1], [0], [0], [1], [0, 0, 1, 1], [], []>} : vector<16x32xbf16>, vector<32x8xbf16>, vector<16x8xf32> -> vector<16x8xf32>
    %601 = vector.extract_strided_slice %545 {offsets = [0, 16], sizes = [16, 8], strides = [1, 1]} : vector<16x32xf32> to vector<16x8xf32>
    %602 = vector.extract_strided_slice %553 {offsets = [0, 16], sizes = [32, 8], strides = [1, 1]} : vector<32x32xf32> to vector<32x8xf32>
    %603 = vector.extract_strided_slice %554 {offsets = [0, 16], sizes = [32, 8], strides = [1, 1]} : vector<32x32xf32> to vector<32x8xf32>
    %604 = arith.truncf %601 : vector<16x8xf32> to vector<16x8xbf16>
    %605 = arith.truncf %602 : vector<32x8xf32> to vector<32x8xbf16>
    %cst_228 = arith.constant dense<0.000000e+00> : vector<16x32xf32>
    %606 = tpu.matmul %604, %605, %cst_228 {dimension_numbers = #tpu.dot_dimension_numbers<[1], [1], [0], [0], [0, 0, 1, 0], [], []>} : vector<16x8xbf16>, vector<32x8xbf16>, vector<16x32xf32> -> vector<16x32xf32>
    %cst_229 = arith.constant 0.353553385 : f32
    %607 = vector.broadcast %cst_229 : f32 to vector<16x32xf32>
    %608 = arith.mulf %606, %607 : vector<16x32xf32>
    %cst_230 = arith.constant -1.000000e+30 : f32
    %609 = vector.broadcast %cst_230 : f32 to vector<16x32xf32>
    %610 = arith.select %15, %608, %609 : vector<16x32xi1>, vector<16x32xf32>
    %cst_231 = arith.constant dense<0xFF800000> : vector<16xf32>
    %611 = vector.multi_reduction <maximumf>, %610, %cst_231 [1] : vector<16x32xf32> to vector<16xf32>
    %612 = vector.shape_cast %611 : vector<16xf32> to vector<16x1xf32>
    %613 = vector.broadcast %612 : vector<16x1xf32> to vector<16x32xf32>
    %614 = arith.subf %610, %613 : vector<16x32xf32>
    %615 = math.exp %614 : vector<16x32xf32>
    %cst_232 = arith.constant dense<0.000000e+00> : vector<16xf32>
    %616 = vector.multi_reduction <add>, %615, %cst_232 [1] : vector<16x32xf32> to vector<16xf32>
    %617 = vector.shape_cast %616 : vector<16xf32> to vector<16x1xf32>
    %618 = tpu.reciprocal %617 {approx = true} : vector<16x1xf32> -> vector<16x1xf32>
    %619 = vector.broadcast %618 : vector<16x1xf32> to vector<16x32xf32>
    %620 = arith.mulf %615, %619 : vector<16x32xf32>
    %621 = arith.truncf %620 : vector<16x32xf32> to vector<16x32xbf16>
    %622 = arith.truncf %603 : vector<32x8xf32> to vector<32x8xbf16>
    %cst_233 = arith.constant dense<0.000000e+00> : vector<16x8xf32>
    %623 = tpu.matmul %621, %622, %cst_233 {dimension_numbers = #tpu.dot_dimension_numbers<[1], [0], [0], [1], [0, 0, 1, 1], [], []>} : vector<16x32xbf16>, vector<32x8xbf16>, vector<16x8xf32> -> vector<16x8xf32>
    %624 = vector.extract_strided_slice %545 {offsets = [0, 24], sizes = [16, 8], strides = [1, 1]} : vector<16x32xf32> to vector<16x8xf32>
    %625 = vector.extract_strided_slice %553 {offsets = [0, 24], sizes = [32, 8], strides = [1, 1]} : vector<32x32xf32> to vector<32x8xf32>
    %626 = vector.extract_strided_slice %554 {offsets = [0, 24], sizes = [32, 8], strides = [1, 1]} : vector<32x32xf32> to vector<32x8xf32>
    %627 = arith.truncf %624 : vector<16x8xf32> to vector<16x8xbf16>
    %628 = arith.truncf %625 : vector<32x8xf32> to vector<32x8xbf16>
    %cst_234 = arith.constant dense<0.000000e+00> : vector<16x32xf32>
    %629 = tpu.matmul %627, %628, %cst_234 {dimension_numbers = #tpu.dot_dimension_numbers<[1], [1], [0], [0], [0, 0, 1, 0], [], []>} : vector<16x8xbf16>, vector<32x8xbf16>, vector<16x32xf32> -> vector<16x32xf32>
    %cst_235 = arith.constant 0.353553385 : f32
    %630 = vector.broadcast %cst_235 : f32 to vector<16x32xf32>
    %631 = arith.mulf %629, %630 : vector<16x32xf32>
    %cst_236 = arith.constant -1.000000e+30 : f32
    %632 = vector.broadcast %cst_236 : f32 to vector<16x32xf32>
    %633 = arith.select %15, %631, %632 : vector<16x32xi1>, vector<16x32xf32>
    %cst_237 = arith.constant dense<0xFF800000> : vector<16xf32>
    %634 = vector.multi_reduction <maximumf>, %633, %cst_237 [1] : vector<16x32xf32> to vector<16xf32>
    %635 = vector.shape_cast %634 : vector<16xf32> to vector<16x1xf32>
    %636 = vector.broadcast %635 : vector<16x1xf32> to vector<16x32xf32>
    %637 = arith.subf %633, %636 : vector<16x32xf32>
    %638 = math.exp %637 : vector<16x32xf32>
    %cst_238 = arith.constant dense<0.000000e+00> : vector<16xf32>
    %639 = vector.multi_reduction <add>, %638, %cst_238 [1] : vector<16x32xf32> to vector<16xf32>
    %640 = vector.shape_cast %639 : vector<16xf32> to vector<16x1xf32>
    %641 = tpu.reciprocal %640 {approx = true} : vector<16x1xf32> -> vector<16x1xf32>
    %642 = vector.broadcast %641 : vector<16x1xf32> to vector<16x32xf32>
    %643 = arith.mulf %638, %642 : vector<16x32xf32>
    %644 = arith.truncf %643 : vector<16x32xf32> to vector<16x32xbf16>
    %645 = arith.truncf %626 : vector<32x8xf32> to vector<32x8xbf16>
    %cst_239 = arith.constant dense<0.000000e+00> : vector<16x8xf32>
    %646 = tpu.matmul %644, %645, %cst_239 {dimension_numbers = #tpu.dot_dimension_numbers<[1], [0], [0], [1], [0, 0, 1, 1], [], []>} : vector<16x32xbf16>, vector<32x8xbf16>, vector<16x8xf32> -> vector<16x8xf32>
    %647 = tpu.concatenate %577, %600, %623, %646 in 1 : vector<16x8xf32>, vector<16x8xf32>, vector<16x8xf32>, vector<16x8xf32> -> vector<16x32xf32>
    %c1_240 = arith.constant 1 : index
    %c0_241 = arith.constant 0 : index
    %c0_242 = arith.constant 0 : index
    %648 = vector.load %arg19[%c1_240, %c0_241, %c0_242] : memref<2x32x32xbf16, #tpu.memory_space<vmem>>, vector<1x32x32xbf16>
    %649 = vector.shape_cast %648 : vector<1x32x32xbf16> to vector<32x32xbf16>
    %650 = arith.truncf %647 : vector<16x32xf32> to vector<16x32xbf16>
    %cst_243 = arith.constant dense<0.000000e+00> : vector<16x32xf32>
    %651 = tpu.matmul %650, %649, %cst_243 {dimension_numbers = #tpu.dot_dimension_numbers<[1], [0], [0], [1], [0, 0, 1, 1], [], []>} : vector<16x32xbf16>, vector<32x32xbf16>, vector<16x32xf32> -> vector<16x32xf32>
    %652 = arith.addf %511, %651 : vector<16x32xf32>
    %c1_244 = arith.constant 1 : index
    %c0_245 = arith.constant 0 : index
    %c0_246 = arith.constant 0 : index
    %653 = vector.load %arg20[%c1_244, %c0_245, %c0_246] : memref<2x1x32xf32, #tpu.memory_space<vmem>>, vector<1x1x32xf32>
    %654 = vector.shape_cast %653 : vector<1x1x32xf32> to vector<1x32xf32>
    %655 = vector.broadcast %654 : vector<1x32xf32> to vector<16x32xf32>
    %656 = arith.addf %652, %655 : vector<16x32xf32>
    %c1_247 = arith.constant 1 : index
    %c0_248 = arith.constant 0 : index
    %c0_249 = arith.constant 0 : index
    %657 = vector.load %arg21[%c1_247, %c0_248, %c0_249] : memref<2x1x32xf32, #tpu.memory_space<vmem>>, vector<1x1x32xf32>
    %658 = vector.shape_cast %657 : vector<1x1x32xf32> to vector<1x32xf32>
    %c1_250 = arith.constant 1 : index
    %c0_251 = arith.constant 0 : index
    %c0_252 = arith.constant 0 : index
    %659 = vector.load %arg22[%c1_250, %c0_251, %c0_252] : memref<2x1x32xf32, #tpu.memory_space<vmem>>, vector<1x1x32xf32>
    %660 = vector.shape_cast %659 : vector<1x1x32xf32> to vector<1x32xf32>
    %cst_253 = arith.constant dense<0.000000e+00> : vector<16xf32>
    %661 = vector.multi_reduction <add>, %656, %cst_253 [1] : vector<16x32xf32> to vector<16xf32>
    %662 = vector.shape_cast %661 : vector<16xf32> to vector<16x1xf32>
    %cst_254 = arith.constant 3.200000e+01 : f32
    %663 = vector.broadcast %cst_254 : f32 to vector<16x1xf32>
    %664 = arith.divf %662, %663 : vector<16x1xf32>
    %665 = vector.broadcast %664 : vector<16x1xf32> to vector<16x32xf32>
    %666 = arith.subf %656, %665 : vector<16x32xf32>
    %667 = arith.mulf %666, %666 : vector<16x32xf32>
    %cst_255 = arith.constant dense<0.000000e+00> : vector<16xf32>
    %668 = vector.multi_reduction <add>, %667, %cst_255 [1] : vector<16x32xf32> to vector<16xf32>
    %669 = vector.shape_cast %668 : vector<16xf32> to vector<16x1xf32>
    %cst_256 = arith.constant 3.200000e+01 : f32
    %670 = vector.broadcast %cst_256 : f32 to vector<16x1xf32>
    %671 = arith.divf %669, %670 : vector<16x1xf32>
    %672 = vector.broadcast %664 : vector<16x1xf32> to vector<16x32xf32>
    %673 = arith.subf %656, %672 : vector<16x32xf32>
    %cst_257 = arith.constant 9.99999974E-6 : f32
    %674 = vector.broadcast %cst_257 : f32 to vector<16x1xf32>
    %675 = arith.addf %671, %674 : vector<16x1xf32>
    %676 = math.rsqrt %675 : vector<16x1xf32>
    %677 = vector.broadcast %676 : vector<16x1xf32> to vector<16x32xf32>
    %678 = arith.mulf %673, %677 : vector<16x32xf32>
    %679 = vector.broadcast %658 : vector<1x32xf32> to vector<16x32xf32>
    %680 = arith.mulf %678, %679 : vector<16x32xf32>
    %681 = vector.broadcast %660 : vector<1x32xf32> to vector<16x32xf32>
    %682 = arith.addf %680, %681 : vector<16x32xf32>
    %c1_258 = arith.constant 1 : index
    %c0_259 = arith.constant 0 : index
    %c0_260 = arith.constant 0 : index
    %683 = vector.load %arg23[%c1_258, %c0_259, %c0_260] : memref<2x32x128xbf16, #tpu.memory_space<vmem>>, vector<1x32x128xbf16>
    %684 = vector.shape_cast %683 : vector<1x32x128xbf16> to vector<32x128xbf16>
    %685 = arith.truncf %682 : vector<16x32xf32> to vector<16x32xbf16>
    %cst_261 = arith.constant dense<0.000000e+00> : vector<16x128xf32>
    %686 = tpu.matmul %685, %684, %cst_261 {dimension_numbers = #tpu.dot_dimension_numbers<[1], [0], [0], [1], [0, 0, 1, 1], [], []>} : vector<16x32xbf16>, vector<32x128xbf16>, vector<16x128xf32> -> vector<16x128xf32>
    %c1_262 = arith.constant 1 : index
    %c0_263 = arith.constant 0 : index
    %c0_264 = arith.constant 0 : index
    %687 = vector.load %arg24[%c1_262, %c0_263, %c0_264] : memref<2x1x128xf32, #tpu.memory_space<vmem>>, vector<1x1x128xf32>
    %688 = vector.shape_cast %687 : vector<1x1x128xf32> to vector<1x128xf32>
    %689 = vector.broadcast %688 : vector<1x128xf32> to vector<16x128xf32>
    %690 = arith.addf %686, %689 : vector<16x128xf32>
    %cst_265 = arith.constant 5.000000e-01 : f32
    %691 = vector.broadcast %cst_265 : f32 to vector<16x128xf32>
    %692 = arith.mulf %691, %690 : vector<16x128xf32>
    %cst_266 = arith.constant 4.471500e-02 : f32
    %693 = vector.broadcast %cst_266 : f32 to vector<16x128xf32>
    %694 = arith.mulf %693, %690 : vector<16x128xf32>
    %695 = arith.mulf %694, %690 : vector<16x128xf32>
    %696 = arith.mulf %695, %690 : vector<16x128xf32>
    %697 = arith.addf %690, %696 : vector<16x128xf32>
    %cst_267 = arith.constant 0.797884583 : f32
    %698 = vector.broadcast %cst_267 : f32 to vector<16x128xf32>
    %699 = arith.mulf %698, %697 : vector<16x128xf32>
    %700 = math.tanh %699 : vector<16x128xf32>
    %cst_268 = arith.constant 1.000000e+00 : f32
    %701 = vector.broadcast %cst_268 : f32 to vector<16x128xf32>
    %702 = arith.addf %701, %700 : vector<16x128xf32>
    %703 = arith.mulf %692, %702 : vector<16x128xf32>
    %c1_269 = arith.constant 1 : index
    %c0_270 = arith.constant 0 : index
    %c0_271 = arith.constant 0 : index
    %704 = vector.load %arg25[%c1_269, %c0_270, %c0_271] : memref<2x128x32xbf16, #tpu.memory_space<vmem>>, vector<1x128x32xbf16>
    %705 = vector.shape_cast %704 : vector<1x128x32xbf16> to vector<128x32xbf16>
    %706 = arith.truncf %703 : vector<16x128xf32> to vector<16x128xbf16>
    %cst_272 = arith.constant dense<0.000000e+00> : vector<16x32xf32>
    %707 = tpu.matmul %706, %705, %cst_272 {dimension_numbers = #tpu.dot_dimension_numbers<[1], [0], [0], [1], [0, 0, 1, 1], [], []>} : vector<16x128xbf16>, vector<128x32xbf16>, vector<16x32xf32> -> vector<16x32xf32>
    %708 = arith.addf %656, %707 : vector<16x32xf32>
    %c1_273 = arith.constant 1 : index
    %c0_274 = arith.constant 0 : index
    %c0_275 = arith.constant 0 : index
    %709 = vector.load %arg26[%c1_273, %c0_274, %c0_275] : memref<2x1x32xf32, #tpu.memory_space<vmem>>, vector<1x1x32xf32>
    %710 = vector.shape_cast %709 : vector<1x1x32xf32> to vector<1x32xf32>
    %711 = vector.broadcast %710 : vector<1x32xf32> to vector<16x32xf32>
    %712 = arith.addf %708, %711 : vector<16x32xf32>
    %c0_276 = arith.constant 0 : index
    %c0_277 = arith.constant 0 : index
    %713 = vector.load %arg5[%c0_276, %c0_277] : memref<1x32xf32, #tpu.memory_space<vmem>>, vector<1x32xf32>
    %c0_278 = arith.constant 0 : index
    %c0_279 = arith.constant 0 : index
    %714 = vector.load %arg6[%c0_278, %c0_279] : memref<1x32xf32, #tpu.memory_space<vmem>>, vector<1x32xf32>
    %cst_280 = arith.constant dense<0.000000e+00> : vector<16xf32>
    %715 = vector.multi_reduction <add>, %712, %cst_280 [1] : vector<16x32xf32> to vector<16xf32>
    %716 = vector.shape_cast %715 : vector<16xf32> to vector<16x1xf32>
    %cst_281 = arith.constant 3.200000e+01 : f32
    %717 = vector.broadcast %cst_281 : f32 to vector<16x1xf32>
    %718 = arith.divf %716, %717 : vector<16x1xf32>
    %719 = vector.broadcast %718 : vector<16x1xf32> to vector<16x32xf32>
    %720 = arith.subf %712, %719 : vector<16x32xf32>
    %721 = arith.mulf %720, %720 : vector<16x32xf32>
    %cst_282 = arith.constant dense<0.000000e+00> : vector<16xf32>
    %722 = vector.multi_reduction <add>, %721, %cst_282 [1] : vector<16x32xf32> to vector<16xf32>
    %723 = vector.shape_cast %722 : vector<16xf32> to vector<16x1xf32>
    %cst_283 = arith.constant 3.200000e+01 : f32
    %724 = vector.broadcast %cst_283 : f32 to vector<16x1xf32>
    %725 = arith.divf %723, %724 : vector<16x1xf32>
    %726 = vector.broadcast %718 : vector<16x1xf32> to vector<16x32xf32>
    %727 = arith.subf %712, %726 : vector<16x32xf32>
    %cst_284 = arith.constant 9.99999974E-6 : f32
    %728 = vector.broadcast %cst_284 : f32 to vector<16x1xf32>
    %729 = arith.addf %725, %728 : vector<16x1xf32>
    %730 = math.rsqrt %729 : vector<16x1xf32>
    %731 = vector.broadcast %730 : vector<16x1xf32> to vector<16x32xf32>
    %732 = arith.mulf %727, %731 : vector<16x32xf32>
    %733 = vector.broadcast %713 : vector<1x32xf32> to vector<16x32xf32>
    %734 = arith.mulf %732, %733 : vector<16x32xf32>
    %735 = vector.broadcast %714 : vector<1x32xf32> to vector<16x32xf32>
    %736 = arith.addf %734, %735 : vector<16x32xf32>
    %c0_285 = arith.constant 0 : index
    %c0_286 = arith.constant 0 : index
    %737 = vector.load %arg3[%c0_285, %c0_286] : memref<128x32xbf16, #tpu.memory_space<vmem>>, vector<128x32xbf16>
    %738 = arith.truncf %736 : vector<16x32xf32> to vector<16x32xbf16>
    %cst_287 = arith.constant dense<0.000000e+00> : vector<16x128xf32>
    %739 = tpu.matmul %738, %737, %cst_287 {dimension_numbers = #tpu.dot_dimension_numbers<[1], [1], [0], [0], [0, 0, 1, 0], [], []>} : vector<16x32xbf16>, vector<128x32xbf16>, vector<16x128xf32> -> vector<16x128xf32>
    %cst_288 = arith.constant dense<0xFF800000> : vector<16xf32>
    %740 = vector.multi_reduction <maximumf>, %739, %cst_288 [1] : vector<16x128xf32> to vector<16xf32>
    %741 = vector.shape_cast %740 : vector<16xf32> to vector<16x1xf32>
    %742 = vector.broadcast %741 : vector<16x1xf32> to vector<16x128xf32>
    %743 = arith.subf %739, %742 : vector<16x128xf32>
    %744 = math.exp %743 : vector<16x128xf32>
    %cst_289 = arith.constant dense<0.000000e+00> : vector<16xf32>
    %745 = vector.multi_reduction <add>, %744, %cst_289 [1] : vector<16x128xf32> to vector<16xf32>
    %746 = vector.shape_cast %745 : vector<16xf32> to vector<16x1xf32>
    %747 = vector.broadcast %746 : vector<16x1xf32> to vector<16x128xf32>
    %748 = arith.divf %744, %747 : vector<16x128xf32>
    %c0_290 = arith.constant 0 : index
    %c0_291 = arith.constant 0 : index
    %749 = vector.load %arg27[%c0_290, %c0_291] : memref<16x128xf32, #tpu.memory_space<vmem>>, vector<16x128xf32>
    tpu.vector_store %arg27[%c0_290, %c0_291], %748 {strides = array<i32>} : memref<16x128xf32, #tpu.memory_space<vmem>>, vector<16x128xf32>,
    %750 = math.exp %748 : vector<16x128xf32>
    %cst_292 = arith.constant dense<0.000000e+00> : vector<16xf32>
    %751 = vector.multi_reduction <add>, %750, %cst_292 [1] : vector<16x128xf32> to vector<16xf32>
    %752 = vector.shape_cast %751 : vector<16xf32> to vector<16x1xf32>
    %753 = math.log %752 : vector<16x1xf32>
    %754 = arith.mulf %748, %21 : vector<16x128xf32>
    %cst_293 = arith.constant dense<0.000000e+00> : vector<16xf32>
    %755 = vector.multi_reduction <add>, %754, %cst_293 [1] : vector<16x128xf32> to vector<16xf32>
    %756 = vector.shape_cast %755 : vector<16xf32> to vector<16x1xf32>
    %757 = arith.subf %753, %756 : vector<16x1xf32>
    %758 = vector.shape_cast %757 : vector<16x1xf32> to vector<1x16x1xf32>
    %cst_294 = arith.constant dense<0.000000e+00> : vector<1xf32>
    %759 = vector.multi_reduction <add>, %758, %cst_294 [1, 2] : vector<1x16x1xf32> to vector<1xf32>
    %760 = vector.shape_cast %759 : vector<1xf32> to vector<1x1x1xf32>
    %761 = vector.extract %760[0, 0, 0] : f32 from vector<1x1x1xf32>
    %cst_295 = arith.constant 1.600000e+01 : f32
    %762 = arith.divf %761, %cst_295 : f32
    %cst_296 = arith.constant 0.000000e+00 : f32
    %763 = vector.broadcast %cst_296 : f32 to vector<8x128xf32>
    %764 = vector.broadcast %762 : f32 to vector<8x128xf32>
    %765 = arith.addf %763, %764 : vector<8x128xf32>
    %c0_297 = arith.constant 0 : index
    %c0_298 = arith.constant 0 : index
    %766 = vector.load %arg28[%c0_297, %c0_298] : memref<8x128xf32, #tpu.memory_space<vmem>>, vector<8x128xf32>
    tpu.vector_store %arg28[%c0_297, %c0_298], %765 {strides = array<i32>} : memref<8x128xf32, #tpu.memory_space<vmem>>, vector<8x128xf32>,
    return
  }
  func.func @transform_0(%arg0: i32) -> (i32, i32) {
    %c0_i32 = arith.constant 0 : i32
    %c0_i32_0 = arith.constant 0 : i32
    return %arg0, %c0_i32 : i32, i32
  }
  func.func @transform_1(%arg0: i32) -> (i32, i32) {
    %c0_i32 = arith.constant 0 : i32
    %c0_i32_0 = arith.constant 0 : i32
    return %arg0, %c0_i32 : i32, i32
  }
  func.func @transform_2(%arg0: i32) -> (i32, i32) {
    %c0_i32 = arith.constant 0 : i32
    %c0_i32_0 = arith.constant 0 : i32
    %c0_i32_1 = arith.constant 0 : i32
    return %c0_i32, %c0_i32_0 : i32, i32
  }
  func.func @transform_3(%arg0: i32) -> (i32, i32) {
    %c0_i32 = arith.constant 0 : i32
    %c0_i32_0 = arith.constant 0 : i32
    %c0_i32_1 = arith.constant 0 : i32
    return %c0_i32, %c0_i32_0 : i32, i32
  }
  func.func @transform_4(%arg0: i32) -> (i32, i32) {
    %c0_i32 = arith.constant 0 : i32
    %c0_i32_0 = arith.constant 0 : i32
    %c0_i32_1 = arith.constant 0 : i32
    return %c0_i32, %c0_i32_0 : i32, i32
  }
  func.func @transform_5(%arg0: i32) -> (i32, i32) {
    %c0_i32 = arith.constant 0 : i32
    %c0_i32_0 = arith.constant 0 : i32
    %c0_i32_1 = arith.constant 0 : i32
    return %c0_i32, %c0_i32_0 : i32, i32
  }
  func.func @transform_6(%arg0: i32) -> (i32, i32, i32) {
    %c0_i32 = arith.constant 0 : i32
    %c0_i32_0 = arith.constant 0 : i32
    %c0_i32_1 = arith.constant 0 : i32
    %c0_i32_2 = arith.constant 0 : i32
    return %c0_i32, %c0_i32_0, %c0_i32_1 : i32, i32, i32
  }
  func.func @transform_7(%arg0: i32) -> (i32, i32, i32) {
    %c0_i32 = arith.constant 0 : i32
    %c0_i32_0 = arith.constant 0 : i32
    %c0_i32_1 = arith.constant 0 : i32
    %c0_i32_2 = arith.constant 0 : i32
    return %c0_i32, %c0_i32_0, %c0_i32_1 : i32, i32, i32
  }
  func.func @transform_8(%arg0: i32) -> (i32, i32, i32) {
    %c0_i32 = arith.constant 0 : i32
    %c0_i32_0 = arith.constant 0 : i32
    %c0_i32_1 = arith.constant 0 : i32
    %c0_i32_2 = arith.constant 0 : i32
    return %c0_i32, %c0_i32_0, %c0_i32_1 : i32, i32, i32
  }
  func.func @transform_9(%arg0: i32) -> (i32, i32, i32) {
    %c0_i32 = arith.constant 0 : i32
    %c0_i32_0 = arith.constant 0 : i32
    %c0_i32_1 = arith.constant 0 : i32
    %c0_i32_2 = arith.constant 0 : i32
    return %c0_i32, %c0_i32_0, %c0_i32_1 : i32, i32, i32
  }
  func.func @transform_10(%arg0: i32) -> (i32, i32, i32) {
    %c0_i32 = arith.constant 0 : i32
    %c0_i32_0 = arith.constant 0 : i32
    %c0_i32_1 = arith.constant 0 : i32
    %c0_i32_2 = arith.constant 0 : i32
    return %c0_i32, %c0_i32_0, %c0_i32_1 : i32, i32, i32
  }
  func.func @transform_11(%arg0: i32) -> (i32, i32, i32) {
    %c0_i32 = arith.constant 0 : i32
    %c0_i32_0 = arith.constant 0 : i32
    %c0_i32_1 = arith.constant 0 : i32
    %c0_i32_2 = arith.constant 0 : i32
    return %c0_i32, %c0_i32_0, %c0_i32_1 : i32, i32, i32
  }
  func.func @transform_12(%arg0: i32) -> (i32, i32, i32) {
    %c0_i32 = arith.constant 0 : i32
    %c0_i32_0 = arith.constant 0 : i32
    %c0_i32_1 = arith.constant 0 : i32
    %c0_i32_2 = arith.constant 0 : i32
    return %c0_i32, %c0_i32_0, %c0_i32_1 : i32, i32, i32
  }
  func.func @transform_13(%arg0: i32) -> (i32, i32, i32) {
    %c0_i32 = arith.constant 0 : i32
    %c0_i32_0 = arith.constant 0 : i32
    %c0_i32_1 = arith.constant 0 : i32
    %c0_i32_2 = arith.constant 0 : i32
    return %c0_i32, %c0_i32_0, %c0_i32_1 : i32, i32, i32
  }
  func.func @transform_14(%arg0: i32) -> (i32, i32, i32) {
    %c0_i32 = arith.constant 0 : i32
    %c0_i32_0 = arith.constant 0 : i32
    %c0_i32_1 = arith.constant 0 : i32
    %c0_i32_2 = arith.constant 0 : i32
    return %c0_i32, %c0_i32_0, %c0_i32_1 : i32, i32, i32
  }
  func.func @transform_15(%arg0: i32) -> (i32, i32, i32) {
    %c0_i32 = arith.constant 0 : i32
    %c0_i32_0 = arith.constant 0 : i32
    %c0_i32_1 = arith.constant 0 : i32
    %c0_i32_2 = arith.constant 0 : i32
    return %c0_i32, %c0_i32_0, %c0_i32_1 : i32, i32, i32
  }
  func.func @transform_16(%arg0: i32) -> (i32, i32, i32) {
    %c0_i32 = arith.constant 0 : i32
    %c0_i32_0 = arith.constant 0 : i32
    %c0_i32_1 = arith.constant 0 : i32
    %c0_i32_2 = arith.constant 0 : i32
    return %c0_i32, %c0_i32_0, %c0_i32_1 : i32, i32, i32
  }
  func.func @transform_17(%arg0: i32) -> (i32, i32, i32) {
    %c0_i32 = arith.constant 0 : i32
    %c0_i32_0 = arith.constant 0 : i32
    %c0_i32_1 = arith.constant 0 : i32
    %c0_i32_2 = arith.constant 0 : i32
    return %c0_i32, %c0_i32_0, %c0_i32_1 : i32, i32, i32
  }
  func.func @transform_18(%arg0: i32) -> (i32, i32, i32) {
    %c0_i32 = arith.constant 0 : i32
    %c0_i32_0 = arith.constant 0 : i32
    %c0_i32_1 = arith.constant 0 : i32
    %c0_i32_2 = arith.constant 0 : i32
    return %c0_i32, %c0_i32_0, %c0_i32_1 : i32, i32, i32
  }
  func.func @transform_19(%arg0: i32) -> (i32, i32, i32) {
    %c0_i32 = arith.constant 0 : i32
    %c0_i32_0 = arith.constant 0 : i32
    %c0_i32_1 = arith.constant 0 : i32
    %c0_i32_2 = arith.constant 0 : i32
    return %c0_i32, %c0_i32_0, %c0_i32_1 : i32, i32, i32
  }
  func.func @transform_20(%arg0: i32) -> (i32, i32, i32) {
    %c0_i32 = arith.constant 0 : i32
    %c0_i32_0 = arith.constant 0 : i32
    %c0_i32_1 = arith.constant 0 : i32
    %c0_i32_2 = arith.constant 0 : i32
    return %c0_i32, %c0_i32_0, %c0_i32_1 : i32, i32, i32
  }
  func.func @transform_21(%arg0: i32) -> (i32, i32, i32) {
    %c0_i32 = arith.constant 0 : i32
    %c0_i32_0 = arith.constant 0 : i32
    %c0_i32_1 = arith.constant 0 : i32
    %c0_i32_2 = arith.constant 0 : i32
    return %c0_i32, %c0_i32_0, %c0_i32_1 : i32, i32, i32
  }
  func.func @transform_22(%arg0: i32) -> (i32, i32, i32) {
    %c0_i32 = arith.constant 0 : i32
    %c0_i32_0 = arith.constant 0 : i32
    %c0_i32_1 = arith.constant 0 : i32
    %c0_i32_2 = arith.constant 0 : i32
    return %c0_i32, %c0_i32_0, %c0_i32_1 : i32, i32, i32
  }
  func.func @transform_23(%arg0: i32) -> (i32, i32, i32) {
    %c0_i32 = arith.constant 0 : i32
    %c0_i32_0 = arith.constant 0 : i32
    %c0_i32_1 = arith.constant 0 : i32
    %c0_i32_2 = arith.constant 0 : i32
    return %c0_i32, %c0_i32_0, %c0_i32_1 : i32, i32, i32
  }
  func.func @transform_24(%arg0: i32) -> (i32, i32, i32) {
    %c0_i32 = arith.constant 0 : i32
    %c0_i32_0 = arith.constant 0 : i32
    %c0_i32_1 = arith.constant 0 : i32
    %c0_i32_2 = arith.constant 0 : i32
    return %c0_i32, %c0_i32_0, %c0_i32_1 : i32, i32, i32
  }
  func.func @transform_25(%arg0: i32) -> (i32, i32, i32) {
    %c0_i32 = arith.constant 0 : i32
    %c0_i32_0 = arith.constant 0 : i32
    %c0_i32_1 = arith.constant 0 : i32
    %c0_i32_2 = arith.constant 0 : i32
    return %c0_i32, %c0_i32_0, %c0_i32_1 : i32, i32, i32
  }
  func.func @transform_26(%arg0: i32) -> (i32, i32) {
    %c0_i32 = arith.constant 0 : i32
    %c0_i32_0 = arith.constant 0 : i32
    return %arg0, %c0_i32 : i32, i32
  }
  func.func @transform_27(%arg0: i32) -> (i32, i32) {
    %c0_i32 = arith.constant 0 : i32
    %c0_i32_0 = arith.constant 0 : i32
    return %arg0, %c0_i32 : i32, i32
  }
}

</mosaic_0001>

<bundles_post_ra>
// kernel: gpt2_decoder_forward.1
= control target key start
LH: loop header
LB: loop body
LE: loop exit
PB: predicated region body
PF: predicated region fallthrough
CT: control target
= control target key end

     0   :  { %s6312_s0 = inlined_call_operand.vmem [shape: s32[16,1], index: 0, kind: input, shape index: {}]   ;;  %s6313_s1 = inlined_call_operand.vmem [shape: f32[32,32], index: 1, kind: input, shape index: {}]   ;;  %s6314_s2 = inlined_call_operand.vmem [shape: bf16[128,32], index: 2, kind: input, shape index: {}]   ;;  %s6315_s3 = inlined_call_operand.vmem [shape: f32[16,32], index: 3, kind: input, shape index: {}]   ;;  %s6316_s4 = inlined_call_operand.vmem [shape: f32[1,32], index: 4, kind: input, shape index: {}]   ;;  %s6317_s5 = inlined_call_operand.vmem [shape: f32[1,32], index: 5, kind: input, shape index: {}]   ;;  %s6318_s6 = inlined_call_operand.vmem [shape: f32[2,1,32], index: 6, kind: input, shape index: {}]   ;;  %s6319_s7 = inlined_call_operand.vmem [shape: f32[2,1,32], index: 7, kind: input, shape index: {}]   ;;  %s6320_s8 = inlined_call_operand.vmem [shape: bf16[2,32,96], index: 8, kind: input, shape index: {}]   ;;  %s6321_s9 = inlined_call_operand.vmem [shape: f32[2,1,96], index: 9, kind: input, shape index: {}]   ;;  %s6322_s10 = inlined_call_operand.vmem [shape: bf16[2,32,32], index: 10, kind: input, shape index: {}]   ;;  %s6323_s11 = inlined_call_operand.vmem [shape: f32[2,1,32], index: 11, kind: input, shape index: {}]   ;;  %s6324_s12 = inlined_call_operand.vmem [shape: f32[2,1,32], index: 12, kind: input, shape index: {}]   ;;  %s6325_s13 = inlined_call_operand.vmem [shape: f32[2,1,32], index: 13, kind: input, shape index: {}]   ;;  %s6326_s14 = inlined_call_operand.vmem [shape: bf16[2,32,32], index: 14, kind: input, shape index: {}]   ;;  %s6327_s15 = inlined_call_operand.vmem [shape: f32[2,1,32], index: 15, kind: input, shape index: {}]   ;;  %s6328_s16 = inlined_call_operand.vmem [shape: bf16[2,32,64], index: 16, kind: input, shape index: {}]   ;;  %s6329_s17 = inlined_call_operand.vmem [shape: f32[2,1,64], index: 17, kind: input, shape index: {}]   ;;  %s6330_s18 = inlined_call_operand.vmem [shape: bf16[2,32,32], index: 18, kind: input, shape index: {}]   ;;  %s6331_s19 = inlined_call_operand.vmem [shape: f32[2,1,32], index: 19, kind: input, shape index: {}]   ;;  %s6332_s20 = inlined_call_operand.vmem [shape: f32[2,1,32], index: 20, kind: input, shape index: {}]   ;;  %s6333_s21 = inlined_call_operand.vmem [shape: f32[2,1,32], index: 21, kind: input, shape index: {}]   ;;  %s6334_s22 = inlined_call_operand.vmem [shape: bf16[2,32,128], index: 22, kind: input, shape index: {}]   ;;  %s6335_s23 = inlined_call_operand.vmem [shape: f32[2,1,128], index: 23, kind: input, shape index: {}]   ;;  %s6336_s24 = inlined_call_operand.vmem [shape: bf16[2,128,32], index: 24, kind: input, shape index: {}]   ;;  %s6337_s25 = inlined_call_operand.vmem [shape: f32[2,1,32], index: 25, kind: input, shape index: {}]   ;;  %s6338_s26 = inlined_call_operand.hbm [shape: f32[16,128], index: 26, kind: output, shape index: {0}]   ;;  %s6339_s27 = inlined_call_operand.vmem [shape: f32[8,128], index: 27, kind: output, shape index: {1}]  }
   0x1   :  { %6383 = sst [smem:[#allocation5_spill]] %s6312_s0 }
   0x2   :  { %6384 = sst [smem:[#allocation6_spill]] %s6313_s1 }
   0x3   :  { %6385 = sst [smem:[#allocation7_spill]] %s6314_s2 }
   0x4   :  { %6386 = sst [smem:[#allocation8_spill]] %s6315_s3 }
   0x5   :  { %6387 = sst [smem:[#allocation9_spill]] %s6316_s4 }
   0x6   :  { %6388 = sst [smem:[#allocation10_spill]] %s6317_s5 }
   0x7   :  { %6389 = sst [smem:[#allocation11_spill]] %s6318_s6 }
   0x8   :  { %6390 = sst [smem:[#allocation12_spill]] %s6319_s7 }
   0x9   :  { %6391 = sst [smem:[#allocation13_spill]] %s6320_s8 }
   0xa   :  { %6392 = sst [smem:[#allocation14_spill]] %s6321_s9 }
   0xb   :  { %6393 = sst [smem:[#allocation15_spill]] %s6322_s10 }
   0xc   :  { %6394 = sst [smem:[#allocation16_spill]] %s6323_s11 }
   0xd   :  { %6395 = sst [smem:[#allocation17_spill]] %s6324_s12 }
   0xe   :  { %6396 = sst [smem:[#allocation18_spill]] %s6325_s13 }
   0xf   :  { %6397 = sst [smem:[#allocation19_spill]] %s6327_s15 }
  0x10   :  { %6398 = sst [smem:[#allocation20_spill]] %s6331_s19 }
  0x11   :  { %6399 = sst [smem:[#allocation21_spill]] %s6332_s20 }
  0x12   :  { %6400 = sst [smem:[#allocation22_spill]] %s6333_s21 }
  0x13   :  { %6401 = sst [smem:[#allocation23_spill]] %s6334_s22 }
  0x14   :  { %6402 = sst [smem:[#allocation24_spill]] %s6338_s26 }
  0x15   :  { %6403 = sst [smem:[#allocation25_spill]] %s6339_s27 }
  0x16   :  { %s6404_s8 = sld [smem:[#allocation5_spill]]  ;;  %v5091_v1 = vmov 0   ;;  %v5092_v2 = vmov 0.0   ;;  %s6405_s5 = sld [smem:[#allocation7_spill]]  ;;  %vm5093_vm0 = vmmov 0  }
  0x17   :  { %4770 = vset.pattern.permute.xlu0 %v5091_v1  ;;  %4348 = vmatprep.subr.bf16.mxu0 %v5092_v2 }
  0x18   :  { %4368 = vmatprep.subr.bf16.mxu1 %v5092_v2  ;;  %4364 = vmatprep.mubr.msk.bf16.mxu0 %vm5093_vm0, %v5092_v2 }
  0x19   :  { %4372 = vmatprep.mubr.msk.bf16.mxu1 %vm5093_vm0, %v5092_v2 }
  0x1c   :  { %v104_v0 = vld [vmem:[%s6404_s8] sm:$0xff]  ;;  %v105_v4 = vld [vmem:[%s6404_s8 + $0x8] sm:$0xff]  ;;  %v4833_v6 = vld [vmem:[%s6405_s5 + $0x10] sm:$0xff]  }
  0x1d   :  { %v4831_v3 = vld [vmem:[%s6405_s5] sm:$0xff]   ;;  %107 = vperm.xlu0 %4770, %v104_v0   ;;  %v4832_v5 = vld [vmem:[%s6405_s5 + $0x8] sm:$0xff]   ;;  %v4834_v7 = vld [vmem:[%s6405_s5 + $0x18] sm:$0xff]  }
  0x1e   :  { %4349 = vmatpush3.bf16.msra.mxu0 %v4831_v3  ;;  %v4835_v8 = vld [vmem:[%s6405_s5 + $0x20] sm:$0xff]   ;;  %v4836_v9 = vld [vmem:[%s6405_s5 + $0x28] sm:$0xff]   ;;  %v4837_v10 = vld [vmem:[%s6405_s5 + $0x30] sm:$0xff]  }
  0x1f   :  { %4350 = vmatprep.subr.bf16.mxu0 %v5092_v2  ;;  %v4838_v11 = vld [vmem:[%s6405_s5 + $0x38] sm:$0xff]  }
  0x21   :  { %110 = vperm.xlu0 %4770, %v105_v4  }
  0x22   :  { %4351 = vmatpush3.bf16.msra.mxu0 %v4832_v5 }
  0x23   :  { %4352 = vmatprep.subr.bf16.mxu0 %v5092_v2 }
  0x26   :  { %4353 = vmatpush3.bf16.msra.mxu0 %v4833_v6 }
  0x27   :  { %4354 = vmatprep.subr.bf16.mxu0 %v5092_v2 }
  0x2a   :  { %4355 = vmatpush3.bf16.msra.mxu0 %v4834_v7 }
  0x2b   :  { %4356 = vmatprep.subr.bf16.mxu0 %v5092_v2 }
  0x2e   :  { %4357 = vmatpush3.bf16.msra.mxu0 %v4835_v8 }
  0x2f   :  { %4358 = vmatprep.subr.bf16.mxu0 %v5092_v2 }
  0x32   :  { %4359 = vmatpush3.bf16.msra.mxu0 %v4836_v9 }
  0x33   :  { %4360 = vmatprep.subr.bf16.mxu0 %v5092_v2 }
  0x36   :  { %4361 = vmatpush3.bf16.msra.mxu0 %v4837_v10 }
  0x37   :  { %4362 = vmatprep.subr.bf16.mxu0 %v5092_v2 }
  0x3a   :  { %4363 = vmatpush3.bf16.msra.mxu0 %v4838_v11 }
  0x3b   :  { %4394 = vmatprep.subr.bf16.mxu0 %v5092_v2 }
  0x3c   :  { %33 = vsyncpa [#allocation3], 0  ;;  %v87_v12 = vlaneseq  ;;  %v5094_v16 = vmov 1.0|1.0   ;;  %s6406_s1 = sld [smem:[#allocation8_spill]]  ;;  %vm235_vm4 = vcmask 261120  }
  0x3d   :  { %s6407_s2 = sld [smem:[#allocation13_spill]]  ;;  %s6408_s30 = sld [smem:[#allocation11_spill]]  ;;  %vm351_vm5 = vcmask 64512   ;;  %vm403_vm11 = vcmask 130048   ;;  %vm877_vm13 = vcmask 195584  }
  0x3e   :  { %v5298_v14 = vand.u32 127, %v87_v12  ;;  %s6409_s0 = sld [smem:[#allocation12_spill]]  ;;  %s6359_s6 = smov 96   ;;  %v5360_v1 = vshrl.u32 %v87_v12, 7 }
  0x3f   :  { %s6369_s11 = smov 88   ;;  %s6353_s3 = smov 72  }
  0x40   :  { %v5363_v3 = vadd.s32 8, %v5360_v1  ;;  %v92_v4 = vshra.s32 %v5360_v1, 3  ;;  %v94_v5 = vshra.s32 %v5298_v14, 3  ;;  %vm97_vm7 = vcmp.ge.s32.totalorder %v5360_v1, %v5298_v14  ;;  %s6349_s7 = smov 64   ;;  %s6371_s4 = smov 120  }
  0x41   :  { %s6357_s8 = smov 80   ;;  %s6367_s9 = smov 112  }
  0x42   :  { %v224_v17 = vld [vmem:[%s6406_s1] sm:$0xff]  ;;  %s6410_s1 = sld [smem:[#allocation14_spill]]  ;;  %v93_v6 = vshra.s32 %v5363_v3, 3  ;;  %vm95_vm6 = vcmp.eq.s32.totalorder %v92_v4, %v94_v5  ;;  %vm98_vm9 = vcmp.ge.s32.totalorder %v5363_v3, %v5298_v14  ;;  %s6355_s28 = smov 104  }
  0x43   :  { %v4839_v36 = vld [vmem:[%s6407_s2] sm:$0xff]   ;;  %v4840_v37 = vld [vmem:[%s6407_s2 + $0x8] sm:$0xff]   ;;  %vm5376_vm10 = vmand %vm95_vm6, %vm97_vm7  ;;  %s6352_s10 = smov 48   ;;  %s6351_s29 = smov 56  }
  0x44   :  { %4369 = vmatpush3.bf16.msra.mxu1 %v4839_v36  ;;  %v4026_v46 = vld [vmem:[%s6408_s30] ss:$0 sm:$0xff]  ;;  %vm96_vm8 = vcmp.eq.s32.totalorder %v93_v6, %v94_v5  ;;  %s6423_s5 = smov 88  }
  0x45   :  { %4370 = vmatprep.subr.bf16.mxu1 %v5092_v2  ;;  %v4027_v50 = vld [vmem:[%s6409_s0] ss:$0 sm:$0xff]  ;;  %vm5380_vm12 = vmand %vm96_vm8, %vm98_vm9 }
  0x48   :  { %4371 = vmatpush3.bf16.msra.mxu1 %v4840_v37  ;;  %v4028_v55 = vld [vmem:[%s6410_s1] ss:$0 sm:$0xff] }
  0x49   :  { %4376 = vmatprep.subr.bf16.mxu1 %v5092_v2 }
  0x9c   :  { %v5295_v13 = vpop.permute.xlu0 %107 }
  0x9d   :  { %vm112_vm1 = vcmp.eq.s32.totalorder %v5298_v14, %v5295_v13 }
  0xa0   :  { %v5300_v15 = vpop.permute.xlu0 %110 }
  0xa1   :  { %vm113_vm2 = vcmp.eq.s32.totalorder %v5298_v14, %v5300_v15 }
  0xa2   :  { %vm4024_vm3 = vmpackc.low %vm113_vm2, %vm112_vm1 }
  0xa3   :  { %4365 = vmatmul.mubr.msk.bf16.vlgmr.msra.gmra.mrb[0].mxu0 %vm4024_vm3, %v5094_v16 }
  0xa4   :  { %4396 = vmatprep.mubr.msk.bf16.mxu0 %vm5093_vm0, %v5092_v2 }
 0x176   :  { %v217_v18 = vpop.f32.mrb[0].mxu0 }
 0x177   :  { %v5317_v19 = vadd.f32 %v224_v17, %v217_v18  ;;  %v4366_v20 = vpop.f32.mrb[1].mxu0 }
 0x178   :  { %v220_v21 = vpop.f32.mrb[2].mxu0 }
 0x179   :  { %v5319_v22 = vadd.f32 %v224_v17, %v220_v21  ;;  %v4367_v23 = vpop.f32.mrb[3].mxu0  ;;  %v236_v24 = vsel %vm235_vm4, %v5317_v19, 0.0 }
 0x17a   :  { %237 = vadd.xlane.f32.xlu1 %v236_v24 }
 0x17b   :  { %v239_v25 = vsel %vm235_vm4, %v5319_v22, 0.0 }
 0x17e   :  { %240 = vadd.xlane.f32.xlu1 %v239_v25 }
 0x207   :  { %v238_v26 = vpop.xlane.xlu1 %237 }
 0x208   :  { %v243_v27 = vmul.f32 0.03125, %v238_v26 }
 0x20a   :  { %v245_v28 = vsub.f32 %v5317_v19, %v243_v27 }
 0x20b   :  { %v241_v29 = vpop.xlane.xlu1 %240 }
 0x20c   :  { %v244_v30 = vmul.f32 0.03125, %v241_v29  ;;  %v247_v31 = vmul.f32 %v245_v28, %v245_v28 }
 0x20e   :  { %v246_v32 = vsub.f32 %v5319_v22, %v244_v30  ;;  %v249_v33 = vsel %vm235_vm4, %v247_v31, 0.0 }
 0x20f   :  { %250 = vadd.xlane.f32.xlu0 %v249_v33 }
 0x210   :  { %v248_v34 = vmul.f32 %v246_v32, %v246_v32 }
 0x212   :  { %v252_v35 = vsel %vm235_vm4, %v248_v34, 0.0 }
 0x213   :  { %253 = vadd.xlane.f32.xlu1 %v252_v35 }
 0x29c   :  { %v251_v38 = vpop.xlane.xlu0 %250 }
 0x29d   :  { %v255_v39 = vmul.f32 0.03125, %v251_v38 }
 0x29f   :  { %v257_v40 = vadd.f32 1e-05, %v255_v39 }
 0x2a0   :  { %v254_v41 = vpop.xlane.xlu1 %253 }
 0x2a1   :  { %4879 = vrsqrt.f32 %v257_v40  ;;  %v256_v42 = vmul.f32 0.03125, %v254_v41 }
 0x2a3   :  { %v258_v43 = vadd.f32 1e-05, %v256_v42 }
 0x2a5   :  { %4881 = vrsqrt.f32 %v258_v43 }
 0x2ab   :  { %v4880_v44 = vpop.eup %4879 }
 0x2ac   :  { %v261_v45 = vmul.f32 %v4880_v44, %v245_v28 }
 0x2ae   :  { %v269_v49 = vmul.f32 %v4026_v46, %v261_v45 }
 0x2af   :  { %v4882_v47 = vpop.eup %4881 }
 0x2b0   :  { %v262_v48 = vmul.f32 %v4882_v47, %v246_v32  ;;  %v277_v52 = vadd.f32 %v4027_v50, %v269_v49 }
 0x2b2   :  { %v270_v51 = vmul.f32 %v4026_v46, %v262_v48 }
 0x2b4   :  { %v278_v53 = vadd.f32 %v4027_v50, %v270_v51 }
 0x2b6   :  { %v283_v54 = vpack.c.bf16 %v278_v53, %v277_v52 }
 0x2b8   :  { %4373 = vmatmul.mubr.msk.bf16.vlgmr.msra.gmra.mrb[0].mxu1 %vm235_vm4, %v283_v54 }
 0x2b9   :  { %4378 = vmatprep.mubr.msk.bf16.mxu1 %vm5093_vm0, %v5092_v2 }
 0x38b   :  { %v340_v56 = vpop.f32.mrb[0].mxu1 }
 0x38c   :  { %v4374_v57 = vpop.f32.mrb[1].mxu1  ;;  %v341_v59 = vadd.f32 %v4028_v55, %v340_v56 }
 0x38d   :  { %v343_v58 = vpop.f32.mrb[2].mxu1 }
 0x38e   :  { %v344_v60 = vadd.f32 %v4028_v55, %v343_v58  ;;  %v4375_v61 = vpop.f32.mrb[3].mxu1 }
 0x390   :  { %v5349_v62 = vpack.c.bf16 %v344_v60, %v341_v59 }
 0x392   :  { %349 = vrot.lane.b32.xlu1 %v5349_v62, %s6359_s6  ;;  %s6429_s6 = smov 8  }
 0x404   :  { %v350_v63 = vpop.permute.xlu1 %349 }
 0x405   :  { %v356_v0 = vsel %vm351_vm5, %v350_v63, 0 }
 0x406   :  { %4377 = vmatpush3.bf16.xpose.msra.mxu1 %v356_v0 }
 0x407   :  { %4382 = vmatprep.subr.bf16.mxu1 %v5092_v2 }
 0x40d   :  { %4379 = vmatmul.mubr.msk.bf16.vlgmr.msra.gmra.mrb[4].mxu1 %vm351_vm5, %v5349_v62 }
 0x40e   :  { %4384 = vmatprep.mubr.msk.bf16.mxu1 %vm5093_vm0, %v5092_v2 }
 0x4e0   :  { %v392_v7 = vpop.f32.mrb[4].mxu1 }
 0x4e1   :  { %v399_v9 = vmul.f32 0.35355338, %v392_v7  ;;  %v4380_v10 = vpop.f32.mrb[5].mxu1 }
 0x4e2   :  { %v395_v11 = vpop.f32.mrb[6].mxu1 }
 0x4e3   :  { %v400_v16 = vmul.f32 0.35355338, %v395_v11  ;;  %v4381_v17 = vpop.f32.mrb[7].mxu1  ;;  %v401_v18 = vsel %vm5376_vm10, %v399_v9, -1e+30 }
 0x4e4   :  { %v404_v20 = vsel %vm403_vm11, %v401_v18, -inf }
 0x4e5   :  { %405 = vmax.xlane.f32.xlu1 %v404_v20  ;;  %v402_v21 = vsel %vm5380_vm12, %v400_v16, -1e+30 }
 0x4e6   :  { %v407_v23 = vsel %vm403_vm11, %v402_v21, -inf }
 0x4e7   :  { %408 = vmax.xlane.f32.xlu0 %v407_v23 }
 0x4f6   :  { %476 = vrot.lane.b32.xlu1 %v5349_v62, %s6369_s11  ;;  %s6417_s11 = sld [smem:[#allocation6_spill]] }
 0x4fa   :  { %726 = vrot.lane.b32.xlu1 %v5349_v62, %s6353_s3  ;;  %s6365_s3 = smov 8  }
 0x572   :  { %v406_v24 = vpop.xlane.xlu1 %405 }
 0x573   :  { %v410_v25 = vsub.f32 %v401_v18, %v406_v24 }
 0x574   :  { %v409_v26 = vpop.xlane.xlu0 %408 }
 0x575   :  { %v412_v27 = vmul.f32 1.442695, %v410_v25  ;;  %v411_v28 = vsub.f32 %v402_v21, %v409_v26 }
 0x576   :  { %v477_v41 = vpop.permute.xlu1 %476 }
 0x577   :  { %4883 = vpow2.f32 %v412_v27  ;;  %v414_v29 = vmul.f32 1.442695, %v411_v28  ;;  %v482_v44 = vsel %vm351_vm5, %v477_v41, 0 }
 0x579   :  { %4885 = vpow2.f32 %v414_v29 }
 0x57a   :  { %v727_v47 = vpop.permute.xlu1 %726 }
 0x57b   :  { %v732_v49 = vsel %vm351_vm5, %v727_v47, 0 }
 0x581   :  { %v4884_v30 = vpop.eup %4883 }
 0x582   :  { %v416_v31 = vsel %vm403_vm11, %v4884_v30, 0.0 }
 0x583   :  { %v4886_v32 = vpop.eup %4885  ;;  %417 = vadd.xlane.f32.xlu0 %v416_v31 }
 0x584   :  { %v419_v33 = vsel %vm403_vm11, %v4886_v32, 0.0 }
 0x587   :  { %420 = vadd.xlane.f32.xlu0 %v419_v33 }
 0x59d   :  { %427 = vrot.lane.b32.xlu0 %v5349_v62, %s6349_s7  ;;  %s6350_s7 = smov 40  }
 0x5a1   :  { %474 = vrot.lane.b32.xlu0 %v5349_v62, %s6371_s4  ;;  %s6426_s4 = smov 80  }
 0x5a5   :  { %601 = vrot.lane.b32.xlu0 %v5349_v62, %s6357_s8  ;;  %s6430_s8 = smov 16  }
 0x5a9   :  { %599 = vrot.lane.b32.xlu0 %v5349_v62, %s6367_s9  ;;  %s6418_s9 = smov 120  }
 0x5ad   :  { %724 = vrot.lane.b32.xlu0 %v5349_v62, %s6355_s28  ;;  %s6363_s28 = smov 16  }
 0x610   :  { %v418_v34 = vpop.xlane.xlu0 %417 }
 0x611   :  { %4887 = vrcp.f32 %v418_v34 }
 0x614   :  { %v421_v35 = vpop.xlane.xlu0 %420 }
 0x615   :  { %4889 = vrcp.f32 %v421_v35 }
 0x618   :  { %v428_v36 = vpop.permute.xlu0 %427 }
 0x619   :  { %4383 = vmatpush3.bf16.msra.mxu1 %v428_v36 }
 0x61a   :  { %4388 = vmatprep.subr.bf16.mxu1 %v5092_v2 }
 0x61b   :  { %v4888_v37 = vpop.eup %4887 }
 0x61c   :  { %v424_v39 = vmul.f32 %v4888_v37, %v4884_v30  ;;  %v475_v43 = vpop.permute.xlu0 %474 }
 0x61f   :  { %v4890_v38 = vpop.eup %4889 }
 0x620   :  { %v425_v40 = vmul.f32 %v4890_v38, %v4886_v32  ;;  %v602_v45 = vpop.permute.xlu0 %601 }
 0x621   :  { %v607_v46 = vsel %vm351_vm5, %v602_v45, 0 }
 0x622   :  { %v426_v42 = vpack.c.bf16 %v425_v40, %v424_v39 }
 0x624   :  { %4385 = vmatmul.mubr.msk.bf16.vlgmr.msra.gmra.mrb[8].mxu1 %vm403_vm11, %v426_v42  ;;  %v600_v48 = vpop.permute.xlu0 %599 }
 0x625   :  { %4389 = vmatpush3.bf16.xpose.msra.mxu1 %v482_v44  ;;  %4390 = vmatprep.mubr.msk.bf16.mxu1 %vm5093_vm0, %v5092_v2 }
 0x626   :  { %4400 = vmatprep.subr.bf16.mxu1 %v5092_v2 }
 0x628   :  { %v725_v50 = vpop.permute.xlu0 %724 }
 0x62c   :  { %4391 = vmatmul.mubr.msk.bf16.vlgmr.msra.gmra.mrb[12].mxu1 %vm351_vm5, %v475_v43 }
 0x62d   :  { %4401 = vmatpush3.bf16.xpose.msra.mxu1 %v607_v46  ;;  %4402 = vmatprep.mubr.msk.bf16.mxu1 %vm5093_vm0, %v5092_v2 }
 0x62e   :  { %4412 = vmatprep.subr.bf16.mxu1 %v5092_v2 }
 0x634   :  { %4403 = vmatmul.mubr.msk.bf16.vlgmr.msra.gmra.mrb[16].mxu1 %vm351_vm5, %v600_v48 }
 0x635   :  { %4413 = vmatpush3.bf16.xpose.msra.mxu1 %v732_v49  ;;  %4414 = vmatprep.mubr.msk.bf16.mxu1 %vm5093_vm0, %v5092_v2 }
 0x636   :  { %4424 = vmatprep.subr.bf16.mxu1 %v5092_v2 }
 0x63c   :  { %4415 = vmatmul.mubr.msk.bf16.vlgmr.msra.gmra.mrb[20].mxu1 %vm351_vm5, %v725_v50 }
 0x63d   :  { %4428 = vmatprep.mubr.msk.bf16.mxu1 %vm5093_vm0, %v5092_v2 }
 0x6f7   :  { %v5425_v51 = vpop.f32.mrb[8].mxu1 }
 0x6f8   :  { %v4386_v52 = vpop.f32.mrb[9].mxu1 }
 0x6f9   :  { %v5427_v53 = vpop.f32.mrb[10].mxu1 }
 0x6fa   :  { %v4387_v54 = vpop.f32.mrb[11].mxu1 }
 0x6ff   :  { %v518_v55 = vpop.f32.mrb[12].mxu1 }
 0x700   :  { %v525_v56 = vmul.f32 0.35355338, %v518_v55  ;;  %v4392_v57 = vpop.f32.mrb[13].mxu1 }
 0x701   :  { %v521_v58 = vpop.f32.mrb[14].mxu1 }
 0x702   :  { %v526_v59 = vmul.f32 0.35355338, %v521_v58  ;;  %v4393_v60 = vpop.f32.mrb[15].mxu1  ;;  %v527_v61 = vsel %vm5376_vm10, %v525_v56, -1e+30 }
 0x703   :  { %v529_v63 = vsel %vm403_vm11, %v527_v61, -inf }
 0x704   :  { %530 = vmax.xlane.f32.xlu1 %v529_v63  ;;  %v528_v0 = vsel %vm5380_vm12, %v526_v59, -1e+30 }
 0x705   :  { %v532_v5 = vsel %vm403_vm11, %v528_v0, -inf }
 0x706   :  { %533 = vmax.xlane.f32.xlu0 %v532_v5 }
 0x707   :  { %v643_v7 = vpop.f32.mrb[16].mxu1 }
 0x708   :  { %v650_v9 = vmul.f32 0.35355338, %v643_v7  ;;  %v4404_v10 = vpop.f32.mrb[17].mxu1 }
 0x709   :  { %v646_v11 = vpop.f32.mrb[18].mxu1 }
 0x70a   :  { %v651_v16 = vmul.f32 0.35355338, %v646_v11  ;;  %v4405_v17 = vpop.f32.mrb[19].mxu1  ;;  %v652_v18 = vsel %vm5376_vm10, %v650_v9, -1e+30 }
 0x70b   :  { %v654_v20 = vsel %vm403_vm11, %v652_v18, -inf }
 0x70c   :  { %655 = vmax.xlane.f32.xlu0 %v654_v20  ;;  %v653_v21 = vsel %vm5380_vm12, %v651_v16, -1e+30 }
 0x70d   :  { %v657_v23 = vsel %vm403_vm11, %v653_v21, -inf }
 0x70e   :  { %658 = vmax.xlane.f32.xlu1 %v657_v23 }
 0x70f   :  { %v768_v24 = vpop.f32.mrb[20].mxu1 }
 0x710   :  { %v775_v25 = vmul.f32 0.35355338, %v768_v24  ;;  %v4416_v26 = vpop.f32.mrb[21].mxu1 }
 0x711   :  { %v771_v27 = vpop.f32.mrb[22].mxu1 }
 0x712   :  { %v776_v28 = vmul.f32 0.35355338, %v771_v27  ;;  %v4417_v29 = vpop.f32.mrb[23].mxu1  ;;  %v777_v30 = vsel %vm5376_vm10, %v775_v25, -1e+30 }
 0x713   :  { %v779_v31 = vsel %vm403_vm11, %v777_v30, -inf }
 0x714   :  { %780 = vmax.xlane.f32.xlu0 %v779_v31  ;;  %v778_v32 = vsel %vm5380_vm12, %v776_v28, -1e+30 }
 0x715   :  { %v782_v33 = vsel %vm403_vm11, %v778_v32, -inf }
 0x716   :  { %783 = vmax.xlane.f32.xlu1 %v782_v33 }
 0x791   :  { %v531_v34 = vpop.xlane.xlu1 %530 }
 0x792   :  { %v535_v35 = vsub.f32 %v527_v61, %v531_v34 }
 0x793   :  { %v534_v36 = vpop.xlane.xlu0 %533 }
 0x794   :  { %v537_v37 = vmul.f32 1.442695, %v535_v35  ;;  %v536_v38 = vsub.f32 %v528_v0, %v534_v36 }
 0x796   :  { %4891 = vpow2.f32 %v537_v37  ;;  %v539_v39 = vmul.f32 1.442695, %v536_v38 }
 0x798   :  { %4893 = vpow2.f32 %v539_v39 }
 0x799   :  { %v656_v40 = vpop.xlane.xlu0 %655 }
 0x79a   :  { %v660_v41 = vsub.f32 %v652_v18, %v656_v40 }
 0x79b   :  { %v659_v42 = vpop.xlane.xlu1 %658 }
 0x79c   :  { %v662_v43 = vmul.f32 1.442695, %v660_v41  ;;  %v661_v44 = vsub.f32 %v653_v21, %v659_v42 }
 0x79e   :  { %4895 = vpow2.f32 %v662_v43  ;;  %v664_v45 = vmul.f32 1.442695, %v661_v44 }
 0x7a0   :  { %v4892_v46 = vpop.eup %4891  ;;  %4897 = vpow2.f32 %v664_v45 }
 0x7a1   :  { %v781_v47 = vpop.xlane.xlu0 %780  ;;  %v541_v48 = vsel %vm403_vm11, %v4892_v46, 0.0 }
 0x7a2   :  { %v4894_v49 = vpop.eup %4893  ;;  %v785_v50 = vsub.f32 %v777_v30, %v781_v47  ;;  %542 = vadd.xlane.f32.xlu0 %v541_v48 }
 0x7a3   :  { %v544_v52 = vsel %vm403_vm11, %v4894_v49, 0.0  ;;  %v784_v61 = vpop.xlane.xlu1 %783 }
 0x7a4   :  { %v787_v54 = vmul.f32 1.442695, %v785_v50  ;;  %545 = vadd.xlane.f32.xlu1 %v544_v52  ;;  %v786_v63 = vsub.f32 %v778_v32, %v784_v61 }
 0x7a6   :  { %4899 = vpow2.f32 %v787_v54  ;;  %v789_v0 = vmul.f32 1.442695, %v786_v63 }
 0x7a8   :  { %v4896_v55 = vpop.eup %4895  ;;  %4901 = vpow2.f32 %v789_v0 }
 0x7a9   :  { %v666_v56 = vsel %vm403_vm11, %v4896_v55, 0.0 }
 0x7aa   :  { %v4898_v57 = vpop.eup %4897  ;;  %667 = vadd.xlane.f32.xlu0 %v666_v56 }
 0x7ab   :  { %v669_v58 = vsel %vm403_vm11, %v4898_v57, 0.0 }
 0x7ac   :  { %670 = vadd.xlane.f32.xlu1 %v669_v58 }
 0x7b0   :  { %v4900_v59 = vpop.eup %4899 }
 0x7b1   :  { %v791_v60 = vsel %vm403_vm11, %v4900_v59, 0.0 }
 0x7b2   :  { %792 = vadd.xlane.f32.xlu0 %v791_v60  ;;  %v4902_v5 = vpop.eup %4901 }
 0x7b3   :  { %v794_v7 = vsel %vm403_vm11, %v4902_v5, 0.0 }
 0x7bd   :  { %677 = vrot.lane.b32.xlu1 %v5349_v62, %s6352_s10  ;;  %s6415_s10 = sld [smem:[#allocation15_spill]] }
 0x7c3   :  { %v4841_v41 = vld [vmem:[%s6415_s10] sm:$0xff]  }
 0x7c4   :  { %4425 = vmatpush3.bf16.msra.mxu1 %v4841_v41 }
 0x7c5   :  { %4426 = vmatprep.subr.bf16.mxu1 %v5092_v2 }
 0x7c8   :  { %552 = vrot.lane.b32.xlu0 %v5349_v62, %s6351_s29  ;;  %s6416_s29 = sld [smem:[#allocation16_spill]] }
 0x7e1   :  { %795 = vadd.xlane.f32.xlu1 %v794_v7 }
 0x7f2   :  { %802 = vrot.lane.b32.xlu1 %v5349_v62, %s6350_s7  ;;  %s6361_s7 = smov 24  }
 0x82f   :  { %v543_v10 = vpop.xlane.xlu0 %542 }
 0x831   :  { %v546_v9 = vpop.xlane.xlu1 %545 }
 0x832   :  { %4903 = vrcp.f32 %v546_v9 }
 0x833   :  { %4905 = vrcp.f32 %v543_v10 }
 0x837   :  { %v668_v16 = vpop.xlane.xlu0 %667 }
 0x839   :  { %v671_v11 = vpop.xlane.xlu1 %670 }
 0x83a   :  { %4907 = vrcp.f32 %v671_v11 }
 0x83b   :  { %4909 = vrcp.f32 %v668_v16 }
 0x83c   :  { %v4904_v17 = vpop.eup %4903 }
 0x83d   :  { %v4906_v20 = vpop.eup %4905  ;;  %v550_v21 = vmul.f32 %v4904_v17, %v4894_v49  ;;  %v678_v62 = vpop.permute.xlu1 %677  ;;  %v4842_v49 = vld [vmem:[%s6415_s10 + $0x8] sm:$0xff]  }
 0x83e   :  { %v549_v23 = vmul.f32 %v4906_v20, %v4892_v46  ;;  %4427 = vmatpush3.bf16.msra.mxu1 %v4842_v49 }
 0x83f   :  { %v793_v18 = vpop.xlane.xlu0 %792 }
 0x840   :  { %v551_v25 = vpack.c.bf16 %v550_v21, %v549_v23  ;;  %4911 = vrcp.f32 %v793_v18 }
 0x843   :  { %v553_v24 = vpop.permute.xlu0 %552 }
 0x844   :  { %4395 = vmatpush3.bf16.msra.mxu0 %v553_v24  ;;  %v4908_v26 = vpop.eup %4907 }
 0x845   :  { %4406 = vmatprep.subr.bf16.mxu0 %v5092_v2  ;;  %v4910_v27 = vpop.eup %4909  ;;  %v675_v28 = vmul.f32 %v4908_v26, %v4898_v57 }
 0x846   :  { %v674_v29 = vmul.f32 %v4910_v27, %v4896_v55 }
 0x847   :  { %4397 = vmatmul.mubr.msk.bf16.vlgmr.msra.gmra.mrb[4].mxu0 %vm403_vm11, %v551_v25 }
 0x848   :  { %4407 = vmatpush3.bf16.msra.mxu0 %v678_v62  ;;  %4408 = vmatprep.mubr.msk.bf16.mxu0 %vm5093_vm0, %v5092_v2  ;;  %v676_v30 = vpack.c.bf16 %v675_v28, %v674_v29 }
 0x849   :  { %4418 = vmatprep.subr.bf16.mxu0 %v5092_v2 }
 0x84a   :  { %v4912_v33 = vpop.eup %4911 }
 0x84b   :  { %v799_v35 = vmul.f32 %v4912_v33, %v4900_v59  ;;  %v229_v33 = vld [vmem:[%s6417_s11 + $0x10] sm:$0xff] }
 0x84f   :  { %4409 = vmatmul.mubr.msk.bf16.vlgmr.msra.gmra.mrb[8].mxu0 %vm403_vm11, %v676_v30  ;;  %v4844_v30 = vld [vmem:[%s6328_s16 + $0x8] sm:$0xff]  }
 0x850   :  { %4420 = vmatprep.mubr.msk.bf16.mxu0 %vm5093_vm0, %v5092_v2 }
 0x86e   :  { %v796_v31 = vpop.xlane.xlu1 %795 }
 0x86f   :  { %4913 = vrcp.f32 %v796_v31  ;;  %v228_v31 = vld [vmem:[%s6417_s11 + $0x8] sm:$0xff] }
 0x872   :  { %v803_v32 = vpop.permute.xlu1 %802 }
 0x873   :  { %4419 = vmatpush3.bf16.msra.mxu0 %v803_v32 }
 0x874   :  { %4432 = vmatprep.subr.bf16.mxu0 %v5092_v2 }
 0x879   :  { %v4914_v34 = vpop.eup %4913 }
 0x87a   :  { %v800_v36 = vmul.f32 %v4914_v34, %v4902_v5  ;;  %v230_v34 = vld [vmem:[%s6417_s11 + $0x18] sm:$0xff] }
 0x87c   :  { %v801_v37 = vpack.c.bf16 %v800_v36, %v799_v35  ;;  %v5525_v35 = vpack.c.bf16 %v230_v34, %v229_v33 }
 0x87e   :  { %4421 = vmatmul.mubr.msk.bf16.vlgmr.msra.gmra.mrb[12].mxu0 %vm403_vm11, %v801_v37 }
 0x87f   :  { %4436 = vmatprep.mubr.msk.bf16.mxu0 %vm5093_vm0, %v5092_v2 }
 0x91a   :  { %v592_v38 = vpop.f32.mrb[4].mxu0 }
 0x91b   :  { %v4398_v39 = vpop.f32.mrb[5].mxu0 }
 0x91c   :  { %v595_v40 = vpop.f32.mrb[6].mxu0 }
 0x91d   :  { %v4771_v42 = vpack.i.bf16 %v595_v40, %v592_v38  ;;  %v4399_v43 = vpop.f32.mrb[7].mxu0 }
 0x91f   :  { %4772 = vrot.lane.b32.xlu0 %v4771_v42, %s6365_s3  ;;  %s6425_s3 = smov 96  }
 0x922   :  { %v717_v44 = vpop.f32.mrb[8].mxu0 }
 0x923   :  { %v4410_v45 = vpop.f32.mrb[9].mxu0 }
 0x924   :  { %v720_v46 = vpop.f32.mrb[10].mxu0 }
 0x925   :  { %v4776_v47 = vpack.i.bf16 %v720_v46, %v717_v44  ;;  %v4411_v48 = vpop.f32.mrb[11].mxu0  ;;  %v4845_v46 = vld [vmem:[%s6326_s14] sm:$0xff]  }
 0x926   :  { %4433 = vmatpush3.bf16.msra.mxu0 %v4845_v46  ;;  %v4050_v48 = vld [vmem:[%s6329_s17] ss:$0 sm:$0xff] }
 0x927   :  { %4777 = vrot.lane.b32.xlu1 %v4776_v47, %s6363_s28  ;;  %v4846_v47 = vld [vmem:[%s6326_s14 + $0x8] sm:$0xff]   ;;  %4434 = vmatprep.subr.bf16.mxu0 %v5092_v2  ;;  %s6427_s28 = smov 104  }
 0x92a   :  { %4435 = vmatpush3.bf16.msra.mxu0 %v4846_v47 }
 0x92b   :  { %4448 = vmatprep.subr.bf16.mxu0 %v5092_v2 }
 0x951   :  { %v842_v50 = vpop.f32.mrb[12].mxu0 }
 0x952   :  { %v4422_v52 = vpop.f32.mrb[13].mxu0 }
 0x953   :  { %v845_v54 = vpop.f32.mrb[14].mxu0 }
 0x954   :  { %v4781_v55 = vpack.i.bf16 %v845_v54, %v842_v50  ;;  %v4423_v56 = vpop.f32.mrb[15].mxu0 }
 0x956   :  { %4782 = vrot.lane.b32.xlu0 %v4781_v55, %s6361_s7  ;;  %s6428_s7 = smov 72  }
 0x991   :  { %v4773_v57 = vpop.permute.xlu0 %4772 }
 0x992   :  { %v4775_v59 = vunpack.i.h.bf16 %v4773_v57  ;;  %v4774_v60 = vunpack.i.l.bf16 %v4773_v57 }
 0x994   :  { %v874_v5 = vsel %vm351_vm5, %v5427_v53, %v4775_v59  ;;  %v873_v7 = vsel %vm351_vm5, %v5425_v51, %v4774_v60  ;;  %v4043_v53 = vld [vmem:[%s6416_s29] ss:$0 sm:$0xff] }
 0x999   :  { %v4778_v58 = vpop.permute.xlu1 %4777 }
 0x99a   :  { %v4780_v61 = vunpack.i.h.bf16 %v4778_v58  ;;  %v4779_v63 = vunpack.i.l.bf16 %v4778_v58 }
 0x99c   :  { %v876_v11 = vsel %vm403_vm11, %v874_v5, %v4780_v61  ;;  %v875_v16 = vsel %vm403_vm11, %v873_v7, %v4779_v63 }
 0x9c8   :  { %v4783_v0 = vpop.permute.xlu0 %4782 }
 0x9c9   :  { %v4785_v9 = vunpack.i.h.bf16 %v4783_v0  ;;  %v4784_v10 = vunpack.i.l.bf16 %v4783_v0 }
 0x9cb   :  { %v879_v17 = vsel %vm877_vm13, %v876_v11, %v4785_v9  ;;  %v878_v18 = vsel %vm877_vm13, %v875_v16, %v4784_v10  ;;  %v4044_v11 = vld [vmem:[%s6324_s12] ss:$0 sm:$0xff]  ;;  %s6431_s12 = smov 24  }
 0x9cc   :  { %v884_v20 = vpack.c.bf16 %v879_v17, %v878_v18 }
 0x9ce   :  { %4429 = vmatmul.mubr.msk.bf16.vlgmr.msra.gmra.mrb[24].mxu1 %vm235_vm4, %v884_v20 }
 0xaa1   :  { %v934_v21 = vpop.f32.mrb[24].mxu1 }
 0xaa2   :  { %v941_v51 = vadd.f32 %v934_v21, %v5317_v19  ;;  %v4430_v23 = vpop.f32.mrb[25].mxu1  ;;  %v4843_v19 = vld [vmem:[%s6328_s16] sm:$0xff]  }
 0xaa3   :  { %v937_v24 = vpop.f32.mrb[26].mxu1  ;;  %4440 = vmatprep.subr.bf16.mxu1 %v4843_v19  ;;  %v4045_v21 = vld [vmem:[%s6325_s13] ss:$0 sm:$0xff]  ;;  %s6443_s13 = sld [smem:[#allocation7_spill]] }
 0xaa4   :  { %v5494_v25 = vadd.f32 %v4043_v53, %v941_v51  ;;  %v942_v26 = vadd.f32 %v937_v24, %v5319_v22  ;;  %v4431_v62 = vpop.f32.mrb[27].mxu1  ;;  %v227_v22 = vld [vmem:[%s6417_s11] sm:$0xff]  ;;  %4441 = vmatpush3.bf16.msra.mxu1 %v4843_v19  ;;  %s6424_s11 = smov 112  }
 0xaa5   :  { %v5515_v32 = vpack.c.bf16 %v228_v31, %v227_v22  ;;  %4442 = vmatprep.subr.bf16.mxu1 %v4844_v30 }
 0xaa6   :  { %v5497_v27 = vadd.f32 %v4043_v53, %v942_v26  ;;  %v954_v28 = vsel %vm235_vm4, %v5494_v25, 0.0 }
 0xaa7   :  { %955 = vadd.xlane.f32.xlu1 %v954_v28  ;;  %4444 = vmatprep.mubr.msk.bf16.mxu1 %vm235_vm4, %v5515_v32  ;;  %v4046_v28 = vld [vmem:[%s6327_s15] ss:$0 sm:$0xff]  ;;  %s6435_s15 = smov 40  }
 0xaa8   :  { %v957_v29 = vsel %vm235_vm4, %v5497_v27, 0.0  ;;  %4443 = vmatpush3.bf16.msra.mxu1 %v4844_v30 }
 0xaa9   :  { %958 = vadd.xlane.f32.xlu0 %v957_v29  ;;  %4456 = vmatprep.subr.bf16.mxu1 %v5092_v2 }
 0xaab   :  { %4445 = vmatmul.mubr.msk.bf16.vlgmr.msra.gmra.mrb[28].mxu1 %vm235_vm4, %v5525_v35 }
 0xaac   :  { %4460 = vmatprep.mubr.msk.bf16.mxu1 %vm5093_vm0, %v5092_v2 }
 0xb34   :  { %v956_v36 = vpop.xlane.xlu1 %955 }
 0xb35   :  { %v960_v37 = vmul.f32 0.03125, %v956_v36 }
 0xb36   :  { %v959_v38 = vpop.xlane.xlu0 %958 }
 0xb37   :  { %v962_v39 = vsub.f32 %v5494_v25, %v960_v37  ;;  %v961_v40 = vmul.f32 0.03125, %v959_v38 }
 0xb39   :  { %v963_v41 = vsub.f32 %v5497_v27, %v961_v40  ;;  %v964_v42 = vmul.f32 %v962_v39, %v962_v39 }
 0xb3b   :  { %v966_v43 = vsel %vm235_vm4, %v964_v42, 0.0  ;;  %v965_v44 = vmul.f32 %v963_v41, %v963_v41 }
 0xb3c   :  { %967 = vadd.xlane.f32.xlu0 %v966_v43 }
 0xb3d   :  { %v969_v45 = vsel %vm235_vm4, %v965_v44, 0.0 }
 0xb3e   :  { %970 = vadd.xlane.f32.xlu1 %v969_v45  ;;  %v101_v45 = vshra.s32 %v5298_v14, 4 }
 0xb40   :  { %vm5591_vm14 = vcmp.eq.s32.totalorder %v92_v4, %v101_v45  ;;  %vm5600_vm15 = vcmp.eq.s32.totalorder %v93_v6, %v101_v45 }
 0xb7e   :  { %v4446_v49 = vpop.f32.mrb[28].mxu1 }
 0xb7f   :  { %v1136_v50 = vadd.f32 %v4446_v49, %v4050_v48  ;;  %v1127_v52 = vpop.f32.mrb[29].mxu1 }
 0xb80   :  { %v1128_v54 = vadd.f32 %v4050_v48, %v1127_v52  ;;  %v4447_v55 = vpop.f32.mrb[30].mxu1 }
 0xb81   :  { %v1139_v56 = vadd.f32 %v4447_v55, %v4050_v48  ;;  %v1130_v57 = vpop.f32.mrb[31].mxu1 }
 0xb82   :  { %v1131_v58 = vadd.f32 %v4050_v48, %v1130_v57 }
 0xb83   :  { %v5547_v59 = vpack.c.bf16 %v1139_v56, %v1136_v50 }
 0xb84   :  { %v5549_v60 = vpack.c.bf16 %v1131_v58, %v1128_v54 }
 0xb85   :  { %1279 = vrot.lane.b32.xlu1 %v5547_v59, %s6418_s9  ;;  %v1152_v62 = vsel %vm351_vm5, %v5547_v59, 0 }
 0xb86   :  { %1277 = vrot.lane.b32.xlu0 %v5549_v60, %s6418_s9  ;;  %v1149_v26 = vsel %vm351_vm5, %v5549_v60, 0 }
 0xbc9   :  { %v968_v61 = vpop.xlane.xlu0 %967 }
 0xbca   :  { %v972_v63 = vmul.f32 0.03125, %v968_v61 }
 0xbcb   :  { %v971_v0 = vpop.xlane.xlu1 %970 }
 0xbcc   :  { %v974_v5 = vadd.f32 1e-05, %v972_v63  ;;  %v973_v7 = vmul.f32 0.03125, %v971_v0 }
 0xbce   :  { %4915 = vrsqrt.f32 %v974_v5  ;;  %v975_v9 = vadd.f32 1e-05, %v973_v7 }
 0xbd0   :  { %4917 = vrsqrt.f32 %v975_v9 }
 0xbd8   :  { %v4916_v10 = vpop.eup %4915 }
 0xbd9   :  { %v978_v16 = vmul.f32 %v4916_v10, %v962_v39 }
 0xbda   :  { %v4918_v17 = vpop.eup %4917 }
 0xbdb   :  { %v986_v18 = vmul.f32 %v4044_v11, %v978_v16  ;;  %v979_v20 = vmul.f32 %v4918_v17, %v963_v41 }
 0xbdd   :  { %v987_v53 = vmul.f32 %v4044_v11, %v979_v20  ;;  %v994_v51 = vadd.f32 %v4045_v21, %v986_v18 }
 0xbdf   :  { %v995_v23 = vadd.f32 %v4045_v21, %v987_v53 }
 0xbe1   :  { %v1000_v24 = vpack.c.bf16 %v995_v23, %v994_v51 }
 0xbe3   :  { %4437 = vmatmul.mubr.msk.bf16.vlgmr.msra.gmra.mrb[16].mxu0 %vm235_vm4, %v1000_v24 }
 0xbe4   :  { %4449 = vmatpush3.bf16.xpose.msra.mxu0 %v1149_v26  ;;  %4452 = vmatprep.mubr.msk.bf16.mxu0 %vm5093_vm0, %v5092_v2 }
 0xbe5   :  { %4450 = vmatprep.subr.bf16.mxu0 %v5092_v2 }
 0xbec   :  { %4451 = vmatpush3.bf16.xpose.msra.mxu0 %v1152_v62 }
 0xbed   :  { %4464 = vmatprep.subr.bf16.mxu0 %v5092_v2 }
 0xbf7   :  { %v1280_v38 = vpop.permute.xlu1 %1279 }
 0xbf8   :  { %v1278_v22 = vpop.permute.xlu0 %1277  ;;  %v1288_v39 = vsel %vm351_vm5, %v1280_v38, 0 }
 0xbf9   :  { %v1285_v37 = vsel %vm351_vm5, %v1278_v22, 0 }
 0xcb6   :  { %v1057_v29 = vpop.f32.mrb[16].mxu0 }
 0xcb7   :  { %v4438_v19 = vpop.f32.mrb[17].mxu0  ;;  %v1058_v31 = vadd.f32 %v4046_v28, %v1057_v29 }
 0xcb8   :  { %v1060_v30 = vpop.f32.mrb[18].mxu0 }
 0xcb9   :  { %v1061_v33 = vadd.f32 %v4046_v28, %v1060_v30  ;;  %v4439_v34 = vpop.f32.mrb[19].mxu0 }
 0xcbb   :  { %v5573_v36 = vpack.c.bf16 %v1061_v33, %v1058_v31 }
 0xcbd   :  { %1275 = vrot.lane.b32.xlu1 %v5573_v36, %s6418_s9  ;;  %4453 = vmatmul.mubr.msk.bf16.vlgmr.msra.gmra.mrb[20].mxu0 %vm351_vm5, %v5573_v36 }
 0xcbe   :  { %4465 = vmatpush3.bf16.xpose.msra.mxu0 %v1285_v37  ;;  %4468 = vmatprep.mubr.msk.bf16.mxu0 %vm5093_vm0, %v5092_v2 }
 0xcbf   :  { %4466 = vmatprep.subr.bf16.mxu0 %v5092_v2 }
 0xcc6   :  { %4467 = vmatpush3.bf16.xpose.msra.mxu0 %v1288_v39 }
 0xcc7   :  { %4472 = vmatprep.subr.bf16.mxu0 %v5092_v2 }
 0xd2f   :  { %v1276_v40 = vpop.permute.xlu1 %1275 }
 0xd30   :  { %4469 = vmatmul.mubr.msk.bf16.vlgmr.msra.gmra.mrb[24].mxu0 %vm351_vm5, %v1276_v40 }
 0xd31   :  { %4476 = vmatprep.mubr.msk.bf16.mxu0 %vm5093_vm0, %v5092_v2 }
 0xd90   :  { %v1188_v41 = vpop.f32.mrb[20].mxu0 }
 0xd91   :  { %v4454_v42 = vpop.f32.mrb[21].mxu0  ;;  %v1195_v3 = vmul.f32 0.35355338, %v1188_v41 }
 0xd92   :  { %v1191_v43 = vpop.f32.mrb[22].mxu0 }
 0xd93   :  { %v4455_v44 = vpop.f32.mrb[23].mxu0  ;;  %v1197_v6 = vsel %vm5591_vm14, %v1195_v3, -1e+30  ;;  %v1196_v20 = vmul.f32 0.35355338, %v1191_v43 }
 0xd94   :  { %v1199_v58 = vsel %vm235_vm4, %v1197_v6, -inf }
 0xd95   :  { %v1198_v21 = vsel %vm5600_vm15, %v1196_v20, -1e+30 }
 0xd96   :  { %v1202_v53 = vsel %vm235_vm4, %v1198_v21, -inf }
 0xe03   :  { %v1324_v46 = vpop.f32.mrb[24].mxu0 }
 0xe04   :  { %v1331_v47 = vmul.f32 0.35355338, %v1324_v46  ;;  %v4470_v48 = vpop.f32.mrb[25].mxu0 }
 0xe05   :  { %v1327_v49 = vpop.f32.mrb[26].mxu0 }
 0xe06   :  { %v1332_v52 = vmul.f32 0.35355338, %v1327_v49  ;;  %v4471_v54 = vpop.f32.mrb[27].mxu0  ;;  %v1333_v55 = vsel %vm5591_vm14, %v1331_v47, -1e+30 }
 0xe07   :  { %v1335_v56 = vsel %vm235_vm4, %v1333_v55, -inf }
 0xe08   :  { %1336 = vmax.xlane.f32.xlu0 %v1335_v56  ;;  %v1334_v1 = vsel %vm5600_vm15, %v1332_v52, -1e+30 }
 0xe09   :  { %v1338_v4 = vsel %vm235_vm4, %v1334_v1, -inf }
 0xe0a   :  { %1339 = vmax.xlane.f32.xlu1 %v1338_v4 }
 0xe1b   :  { %1358 = vrot.lane.b32.xlu1 %v5549_v60, %s6423_s5 }
 0xe1f   :  { %1410 = vrot.lane.b32.xlu1 %v5549_v60, %s6424_s11 }
 0xe23   :  { %1412 = vrot.lane.b32.xlu1 %v5547_v59, %s6424_s11 }
 0xe47   :  { %1200 = vmax.xlane.f32.xlu1 %v1199_v58 }
 0xe95   :  { %v1337_v61 = vpop.xlane.xlu0 %1336 }
 0xe96   :  { %v1341_v63 = vsub.f32 %v1333_v55, %v1337_v61 }
 0xe97   :  { %v1340_v0 = vpop.xlane.xlu1 %1339 }
 0xe98   :  { %v1343_v5 = vmul.f32 1.442695, %v1341_v63  ;;  %v1342_v7 = vsub.f32 %v1334_v1, %v1340_v0 }
 0xe9a   :  { %4919 = vpow2.f32 %v1343_v5  ;;  %v1345_v9 = vmul.f32 1.442695, %v1342_v7 }
 0xe9b   :  { %v1359_v10 = vpop.permute.xlu1 %1358 }
 0xe9c   :  { %4921 = vpow2.f32 %v1345_v9  ;;  %4473 = vmatpush3.bf16.msra.mxu0 %v1359_v10 }
 0xe9d   :  { %4474 = vmatprep.subr.bf16.mxu0 %v5092_v2 }
 0xe9f   :  { %v1411_v19 = vpop.permute.xlu1 %1410 }
 0xea0   :  { %v1418_v22 = vsel %vm351_vm5, %v1411_v19, 0 }
 0xea3   :  { %v1413_v31 = vpop.permute.xlu1 %1412 }
 0xea4   :  { %v4920_v11 = vpop.eup %4919  ;;  %v1421_v33 = vsel %vm351_vm5, %v1413_v31, 0 }
 0xea5   :  { %v1347_v16 = vsel %vm235_vm4, %v4920_v11, 0.0 }
 0xea6   :  { %v4922_v17 = vpop.eup %4921  ;;  %1348 = vadd.xlane.f32.xlu0 %v1347_v16 }
 0xea7   :  { %v1350_v18 = vsel %vm235_vm4, %v4922_v17, 0.0 }
 0xeaa   :  { %1351 = vadd.xlane.f32.xlu0 %v1350_v18 }
 0xec0   :  { %1360 = vrot.lane.b32.xlu0 %v5547_v59, %s6423_s5 }
 0xec4   :  { %1408 = vrot.lane.b32.xlu0 %v5573_v36, %s6424_s11 }
 0xed4   :  { %v1201_v37 = vpop.xlane.xlu1 %1200 }
 0xed5   :  { %v1205_v42 = vsub.f32 %v1197_v6, %v1201_v37 }
 0xed7   :  { %v1207_v46 = vmul.f32 1.442695, %v1205_v42 }
 0xee3   :  { %1203 = vmax.xlane.f32.xlu0 %v1202_v53 }
 0xf33   :  { %v1349_v51 = vpop.xlane.xlu0 %1348 }
 0xf34   :  { %4923 = vrcp.f32 %v1349_v51 }
 0xf37   :  { %v1352_v23 = vpop.xlane.xlu0 %1351 }
 0xf38   :  { %4925 = vrcp.f32 %v1352_v23 }
 0xf39   :  { %4927 = vpow2.f32 %v1207_v46 }
 0xf3b   :  { %v1361_v24 = vpop.permute.xlu0 %1360 }
 0xf3c   :  { %4475 = vmatpush3.bf16.msra.mxu0 %v1361_v24 }
 0xf3d   :  { %4480 = vmatprep.subr.bf16.mxu0 %v5092_v2 }
 0xf3e   :  { %v4924_v26 = vpop.eup %4923 }
 0xf3f   :  { %v1355_v28 = vmul.f32 %v4924_v26, %v4920_v11  ;;  %v1409_v34 = vpop.permute.xlu0 %1408 }
 0xf42   :  { %v4926_v62 = vpop.eup %4925 }
 0xf43   :  { %v1356_v29 = vmul.f32 %v4926_v62, %v4922_v17  ;;  %v4928_v3 = vpop.eup %4927 }
 0xf44   :  { %v1211_v63 = vsel %vm235_vm4, %v4928_v3, 0.0 }
 0xf45   :  { %v1357_v30 = vpack.c.bf16 %v1356_v29, %v1355_v28 }
 0xf47   :  { %4477 = vmatmul.mubr.msk.bf16.vlgmr.msra.gmra.mrb[28].mxu0 %vm235_vm4, %v1357_v30 }
 0xf48   :  { %4481 = vmatpush3.bf16.xpose.msra.mxu0 %v1418_v22  ;;  %4484 = vmatprep.mubr.msk.bf16.mxu0 %vm5093_vm0, %v5092_v2 }
 0xf49   :  { %4482 = vmatprep.subr.bf16.mxu0 %v5092_v2 }
 0xf50   :  { %4483 = vmatpush3.bf16.xpose.msra.mxu0 %v1421_v33 }
 0xf51   :  { %4504 = vmatprep.subr.bf16.mxu0 %v5092_v2 }
 0xf57   :  { %4485 = vmatmul.mubr.msk.bf16.vlgmr.msra.gmra.mrb[32].mxu0 %vm351_vm5, %v1409_v34 }
 0xf58   :  { %4508 = vmatprep.mubr.msk.bf16.mxu0 %vm5093_vm0, %v5092_v2 }
 0xf70   :  { %v1204_v40 = vpop.xlane.xlu0 %1203 }
 0xf71   :  { %v1206_v45 = vsub.f32 %v1198_v21, %v1204_v40 }
 0xf73   :  { %v1209_v47 = vmul.f32 1.442695, %v1206_v45 }
 0xf75   :  { %4929 = vpow2.f32 %v1209_v47 }
 0xf7f   :  { %v4930_v61 = vpop.eup %4929 }
 0xf80   :  { %v1214_v0 = vsel %vm235_vm4, %v4930_v61, 0.0 }
0x101a   :  { %v5637_v38 = vpop.f32.mrb[28].mxu0 }
0x101b   :  { %v4478_v39 = vpop.f32.mrb[29].mxu0 }
0x101c   :  { %v5639_v41 = vpop.f32.mrb[30].mxu0 }
0x101d   :  { %v4786_v43 = vpack.i.bf16 %v5639_v41, %v5637_v38  ;;  %v4479_v44 = vpop.f32.mrb[31].mxu0 }
0x102a   :  { %v1457_v48 = vpop.f32.mrb[32].mxu0 }
0x102b   :  { %v1464_v49 = vmul.f32 0.35355338, %v1457_v48  ;;  %v4486_v52 = vpop.f32.mrb[33].mxu0 }
0x102c   :  { %v1460_v54 = vpop.f32.mrb[34].mxu0 }
0x102d   :  { %v1465_v55 = vmul.f32 0.35355338, %v1460_v54  ;;  %v4487_v56 = vpop.f32.mrb[35].mxu0  ;;  %v1466_v1 = vsel %vm5591_vm14, %v1464_v49, -1e+30 }
0x102e   :  { %v1468_v4 = vsel %vm235_vm4, %v1466_v1, -inf }
0x102f   :  { %1469 = vmax.xlane.f32.xlu0 %v1468_v4  ;;  %v1467_v6 = vsel %vm5600_vm15, %v1465_v55, -1e+30 }
0x1030   :  { %v1471_v58 = vsel %vm235_vm4, %v1467_v6, -inf }
0x1031   :  { %1472 = vmax.xlane.f32.xlu1 %v1471_v58 }
0x1033   :  { %1212 = vadd.xlane.f32.xlu0 %v1211_v63 }
0x1035   :  { %1215 = vadd.xlane.f32.xlu1 %v1214_v0 }
0x1046   :  { %1226 = vrot.lane.b32.xlu1 %v5547_v59, %s6425_s3 }
0x1049   :  { %1224 = vrot.lane.b32.xlu0 %v5549_v60, %s6425_s3 }
0x104a   :  { %1491 = vrot.lane.b32.xlu1 %v5549_v60, %s6426_s4 }
0x10bc   :  { %v1470_v5 = vpop.xlane.xlu0 %1469 }
0x10bd   :  { %v1474_v7 = vsub.f32 %v1466_v1, %v1470_v5 }
0x10be   :  { %v1473_v9 = vpop.xlane.xlu1 %1472 }
0x10bf   :  { %v1476_v10 = vmul.f32 1.442695, %v1474_v7  ;;  %v1475_v11 = vsub.f32 %v1467_v6, %v1473_v9 }
0x10c0   :  { %v1213_v16 = vpop.xlane.xlu0 %1212 }
0x10c1   :  { %4931 = vpow2.f32 %v1476_v10  ;;  %v1478_v17 = vmul.f32 1.442695, %v1475_v11 }
0x10c2   :  { %4933 = vrcp.f32 %v1213_v16  ;;  %v1216_v18 = vpop.xlane.xlu1 %1215 }
0x10c3   :  { %4935 = vpow2.f32 %v1478_v17 }
0x10c4   :  { %4937 = vrcp.f32 %v1216_v18  ;;  %v1225_v20 = vpop.permute.xlu0 %1224 }
0x10c5   :  { %4457 = vmatpush3.bf16.msra.mxu1 %v1225_v20 }
0x10c6   :  { %4458 = vmatprep.subr.bf16.mxu1 %v5092_v2  ;;  %v1227_v21 = vpop.permute.xlu1 %1226 }
0x10c9   :  { %4459 = vmatpush3.bf16.msra.mxu1 %v1227_v21 }
0x10ca   :  { %4488 = vmatprep.subr.bf16.mxu1 %v5092_v2  ;;  %v1492_v30 = vpop.permute.xlu1 %1491 }
0x10cb   :  { %v4932_v53 = vpop.eup %4931 }
0x10cc   :  { %v4934_v51 = vpop.eup %4933  ;;  %v1480_v23 = vsel %vm235_vm4, %v4932_v53, 0.0 }
0x10cd   :  { %v4936_v24 = vpop.eup %4935  ;;  %1481 = vadd.xlane.f32.xlu0 %v1480_v23  ;;  %v1219_v28 = vmul.f32 %v4934_v51, %v4928_v3 }
0x10ce   :  { %v4938_v26 = vpop.eup %4937  ;;  %v1483_v62 = vsel %vm235_vm4, %v4936_v24, 0.0 }
0x10cf   :  { %v1220_v29 = vmul.f32 %v4938_v26, %v4930_v61  ;;  %1484 = vadd.xlane.f32.xlu1 %v1483_v62 }
0x10d1   :  { %v1221_v19 = vpack.c.bf16 %v1220_v29, %v1219_v28 }
0x10d3   :  { %4461 = vmatmul.mubr.msk.bf16.vlgmr.msra.gmra.mrb[32].mxu1 %vm235_vm4, %v1221_v19 }
0x10d4   :  { %4489 = vmatpush3.bf16.msra.mxu1 %v1492_v30  ;;  %4492 = vmatprep.mubr.msk.bf16.mxu1 %vm5093_vm0, %v5092_v2 }
0x10d5   :  { %4490 = vmatprep.subr.bf16.mxu1 %v5092_v2 }
0x10e0   :  { %1543 = vrot.lane.b32.xlu1 %v5549_v60, %s6427_s28 }
0x10e3   :  { %1493 = vrot.lane.b32.xlu0 %v5547_v59, %s6426_s4 }
0x10e4   :  { %1541 = vrot.lane.b32.xlu1 %v5573_v36, %s6427_s28 }
0x10e7   :  { %1545 = vrot.lane.b32.xlu0 %v5547_v59, %s6427_s28 }
0x115a   :  { %v1482_v22 = vpop.xlane.xlu0 %1481 }
0x115b   :  { %4939 = vrcp.f32 %v1482_v22  ;;  %v4848_v22 = vld [vmem:[%s6330_s18 + $0x8] sm:$0xff]  }
0x115c   :  { %v1485_v31 = vpop.xlane.xlu1 %1484 }
0x115d   :  { %4941 = vrcp.f32 %v1485_v31 }
0x115e   :  { %v1494_v33 = vpop.permute.xlu0 %1493 }
0x115f   :  { %4491 = vmatpush3.bf16.msra.mxu1 %v1494_v33 }
0x1160   :  { %4496 = vmatprep.subr.bf16.mxu1 %v5092_v2  ;;  %v1544_v42 = vpop.permute.xlu1 %1543 }
0x1161   :  { %v1551_v45 = vsel %vm351_vm5, %v1544_v42, 0 }
0x1162   :  { %v1546_v36 = vpop.permute.xlu0 %1545 }
0x1163   :  { %v1554_v46 = vsel %vm351_vm5, %v1546_v36, 0 }
0x1164   :  { %v1542_v47 = vpop.permute.xlu1 %1541 }
0x1165   :  { %v4940_v34 = vpop.eup %4939 }
0x1166   :  { %v1488_v39 = vmul.f32 %v4940_v34, %v4932_v53 }
0x1167   :  { %v4942_v37 = vpop.eup %4941 }
0x1168   :  { %v1489_v40 = vmul.f32 %v4942_v37, %v4936_v24 }
0x116a   :  { %v1490_v44 = vpack.c.bf16 %v1489_v40, %v1488_v39 }
0x116c   :  { %4493 = vmatmul.mubr.msk.bf16.vlgmr.msra.gmra.mrb[36].mxu1 %vm235_vm4, %v1490_v44 }
0x116d   :  { %4497 = vmatpush3.bf16.xpose.msra.mxu1 %v1551_v45  ;;  %4500 = vmatprep.mubr.msk.bf16.mxu1 %vm5093_vm0, %v5092_v2 }
0x116e   :  { %4498 = vmatprep.subr.bf16.mxu1 %v5092_v2 }
0x1175   :  { %4499 = vmatpush3.bf16.xpose.msra.mxu1 %v1554_v46 }
0x1176   :  { %4520 = vmatprep.subr.bf16.mxu1 %v5092_v2 }
0x117c   :  { %4501 = vmatmul.mubr.msk.bf16.vlgmr.msra.gmra.mrb[40].mxu1 %vm351_vm5, %v1542_v47 }
0x117d   :  { %4524 = vmatprep.mubr.msk.bf16.mxu1 %vm5093_vm0, %v5092_v2 }
0x11a6   :  { %v5684_v48 = vpop.f32.mrb[32].mxu1 }
0x11a7   :  { %v4462_v49 = vpop.f32.mrb[33].mxu1 }
0x11a8   :  { %v5686_v52 = vpop.f32.mrb[34].mxu1 }
0x11a9   :  { %v4463_v54 = vpop.f32.mrb[35].mxu1 }
0x123f   :  { %v1534_v55 = vpop.f32.mrb[36].mxu1 }
0x1240   :  { %v4494_v56 = vpop.f32.mrb[37].mxu1 }
0x1241   :  { %v1537_v1 = vpop.f32.mrb[38].mxu1 }
0x1242   :  { %v4791_v4 = vpack.i.bf16 %v1537_v1, %v1534_v55  ;;  %v4495_v3 = vpop.f32.mrb[39].mxu1 }
0x124f   :  { %v1590_v6 = vpop.f32.mrb[40].mxu1 }
0x1250   :  { %v1597_v58 = vmul.f32 0.35355338, %v1590_v6  ;;  %v4502_v61 = vpop.f32.mrb[41].mxu1 }
0x1251   :  { %v1593_v63 = vpop.f32.mrb[42].mxu1 }
0x1252   :  { %v1598_v0 = vmul.f32 0.35355338, %v1593_v63  ;;  %v4503_v5 = vpop.f32.mrb[43].mxu1  ;;  %v1599_v7 = vsel %vm5591_vm14, %v1597_v58, -1e+30 }
0x1253   :  { %v1601_v9 = vsel %vm235_vm4, %v1599_v7, -inf }
0x1254   :  { %1602 = vmax.xlane.f32.xlu0 %v1601_v9  ;;  %v1600_v10 = vsel %vm5600_vm15, %v1598_v0, -1e+30 }
0x1255   :  { %v1604_v11 = vsel %vm235_vm4, %v1600_v10, -inf }
0x1256   :  { %1605 = vmax.xlane.f32.xlu1 %v1604_v11 }
0x1267   :  { %1624 = vrot.lane.b32.xlu1 %v5549_v60, %s6428_s7 }
0x126b   :  { %4787 = vrot.lane.b32.xlu1 %v4786_v43, %s6429_s6 }
0x126f   :  { %4792 = vrot.lane.b32.xlu1 %v4791_v4, %s6430_s8 }
0x12e1   :  { %v1603_v16 = vpop.xlane.xlu0 %1602 }
0x12e2   :  { %v1607_v17 = vsub.f32 %v1599_v7, %v1603_v16 }
0x12e3   :  { %v1606_v18 = vpop.xlane.xlu1 %1605 }
0x12e4   :  { %v1609_v20 = vmul.f32 1.442695, %v1607_v17  ;;  %v1608_v21 = vsub.f32 %v1600_v10, %v1606_v18 }
0x12e6   :  { %4943 = vpow2.f32 %v1609_v20  ;;  %v1611_v53 = vmul.f32 1.442695, %v1608_v21 }
0x12e7   :  { %v1625_v51 = vpop.permute.xlu1 %1624 }
0x12e8   :  { %4945 = vpow2.f32 %v1611_v53  ;;  %4505 = vmatpush3.bf16.msra.mxu0 %v1625_v51 }
0x12e9   :  { %4506 = vmatprep.subr.bf16.mxu0 %v5092_v2 }
0x12eb   :  { %v4788_v40 = vpop.permute.xlu1 %4787 }
0x12ec   :  { %v4790_v44 = vunpack.i.h.bf16 %v4788_v40  ;;  %v4789_v45 = vunpack.i.l.bf16 %v4788_v40 }
0x12ee   :  { %v1699_v49 = vsel %vm351_vm5, %v5686_v52, %v4790_v44  ;;  %v1698_v54 = vsel %vm351_vm5, %v5684_v48, %v4789_v45  ;;  %v4066_v48 = vld [vmem:[%s6331_s19] ss:$0 sm:$0xff]  ;;  %v4852_v45 = vld [vmem:[%s6336_s24 + $0x8] sm:$0xff]  }
0x12ef   :  { %v4793_v42 = vpop.permute.xlu1 %4792  ;;  %v4851_v44 = vld [vmem:[%s6336_s24] sm:$0xff]  }
0x12f0   :  { %v4944_v60 = vpop.eup %4943  ;;  %v4795_v36 = vunpack.i.h.bf16 %v4793_v42  ;;  %v4794_v46 = vunpack.i.l.bf16 %v4793_v42 }
0x12f1   :  { %v1613_v23 = vsel %vm235_vm4, %v4944_v60, 0.0 }
0x12f2   :  { %v4946_v24 = vpop.eup %4945  ;;  %1614 = vadd.xlane.f32.xlu0 %v1613_v23  ;;  %v1700_v1 = vsel %vm403_vm11, %v1698_v54, %v4794_v46  ;;  %v1701_v4 = vsel %vm403_vm11, %v1699_v49, %v4795_v36  ;;  %v4853_v36 = vld [vmem:[%s6336_s24 + $0x10] sm:$0xff]   ;;  %v4854_v46 = vld [vmem:[%s6336_s24 + $0x18] sm:$0xff]   ;;  %v4856_v49 = vld [vmem:[%s6336_s24 + $0x28] sm:$0xff]  }
0x12f3   :  { %v1616_v38 = vsel %vm235_vm4, %v4946_v24, 0.0  ;;  %v4857_v54 = vld [vmem:[%s6336_s24 + $0x30] sm:$0xff]  }
0x12f6   :  { %1617 = vadd.xlane.f32.xlu0 %v1616_v38  ;;  %v4850_v38 = vld [vmem:[%s6334_s22 + $0x8] sm:$0xff]  }
0x130c   :  { %1626 = vrot.lane.b32.xlu0 %v5547_v59, %s6428_s7  ;;  %v4847_v59 = vld [vmem:[%s6330_s18] sm:$0xff]  }
0x137f   :  { %v1615_v41 = vpop.xlane.xlu0 %1614 }
0x1380   :  { %4947 = vrcp.f32 %v1615_v41 }
0x1383   :  { %v1618_v43 = vpop.xlane.xlu0 %1617 }
0x1384   :  { %4949 = vrcp.f32 %v1618_v43 }
0x1387   :  { %v1627_v26 = vpop.permute.xlu0 %1626 }
0x1388   :  { %4507 = vmatpush3.bf16.msra.mxu0 %v1627_v26 }
0x1389   :  { %4512 = vmatprep.subr.bf16.mxu0 %v5092_v2 }
0x138a   :  { %v4948_v62 = vpop.eup %4947 }
0x138b   :  { %v1621_v29 = vmul.f32 %v4948_v62, %v4944_v60 }
0x138e   :  { %v4950_v28 = vpop.eup %4949 }
0x138f   :  { %v1622_v19 = vmul.f32 %v4950_v28, %v4946_v24  ;;  %v4849_v24 = vld [vmem:[%s6334_s22] sm:$0xff]   ;;  %s6436_s22 = sld [smem:[#allocation17_spill]] }
0x1390   :  { %4521 = vmatpush3.bf16.msra.mxu1 %v4849_v24 }
0x1391   :  { %v1623_v30 = vpack.c.bf16 %v1622_v19, %v1621_v29  ;;  %4522 = vmatprep.subr.bf16.mxu1 %v5092_v2 }
0x1393   :  { %4509 = vmatmul.mubr.msk.bf16.vlgmr.msra.gmra.mrb[36].mxu0 %vm235_vm4, %v1623_v30  ;;  %v4067_v30 = vld [vmem:[%s6332_s20] ss:$0 sm:$0xff]  ;;  %s6438_s20 = sld [smem:[#allocation19_spill]] }
0x1394   :  { %4516 = vmatprep.mubr.msk.bf16.mxu0 %vm5093_vm0, %v5092_v2  ;;  %4513 = vmatpush3.bf16.msra.mxu0 %v4847_v59 }
0x1395   :  { %4514 = vmatprep.subr.bf16.mxu0 %v5092_v2  ;;  %4523 = vmatpush3.bf16.msra.mxu1 %v4850_v38 }
0x1396   :  { %4548 = vmatprep.subr.bf16.mxu1 %v5092_v2 }
0x1398   :  { %4515 = vmatpush3.bf16.msra.mxu0 %v4848_v22 }
0x1399   :  { %4528 = vmatprep.subr.bf16.mxu0 %v5092_v2 }
0x1466   :  { %v1667_v31 = vpop.f32.mrb[36].mxu0 }
0x1467   :  { %v4510_v33 = vpop.f32.mrb[37].mxu0 }
0x1468   :  { %v1670_v34 = vpop.f32.mrb[38].mxu0 }
0x1469   :  { %v4796_v37 = vpack.i.bf16 %v1670_v34, %v1667_v31  ;;  %v4511_v39 = vpop.f32.mrb[39].mxu0  ;;  %v4068_v34 = vld [vmem:[%s6333_s21] ss:$0 sm:$0xff]  ;;  %s6442_s21 = sld [smem:[#allocation22_spill]] }
0x146b   :  { %4797 = vrot.lane.b32.xlu0 %v4796_v37, %s6431_s12 }
0x14dd   :  { %v4798_v47 = vpop.permute.xlu0 %4797 }
0x14de   :  { %v4800_v55 = vunpack.i.h.bf16 %v4798_v47  ;;  %v4799_v56 = vunpack.i.l.bf16 %v4798_v47  ;;  %v4855_v47 = vld [vmem:[%s6336_s24 + $0x20] sm:$0xff]  }
0x14e0   :  { %v1703_v3 = vsel %vm877_vm13, %v1701_v4, %v4800_v55  ;;  %v1702_v6 = vsel %vm877_vm13, %v1700_v1, %v4799_v56  ;;  %v4858_v55 = vld [vmem:[%s6336_s24 + $0x38] sm:$0xff]   ;;  %v4069_v56 = vld [vmem:[%s6335_s23] ss:$0 sm:$0xff] }
0x14e1   :  { %v1708_v58 = vpack.c.bf16 %v1703_v3, %v1702_v6 }
0x14e3   :  { %4517 = vmatmul.mubr.msk.bf16.vlgmr.msra.gmra.mrb[40].mxu0 %vm235_vm4, %v1708_v58 }
0x14e4   :  { %4544 = vmatprep.mubr.msk.bf16.mxu0 %vm5093_vm0, %v5092_v2  ;;  %4529 = vmatpush3.bf16.msra.mxu0 %v4851_v44 }
0x14e5   :  { %4530 = vmatprep.subr.bf16.mxu0 %v5092_v2 }
0x14e8   :  { %4531 = vmatpush3.bf16.msra.mxu0 %v4852_v45  ;;  %v4859_v45 = vld [vmem:[%s6407_s2 + $0x10] sm:$0xff]  }
0x14e9   :  { %4532 = vmatprep.subr.bf16.mxu0 %v5092_v2 }
0x14ec   :  { %4533 = vmatpush3.bf16.msra.mxu0 %v4853_v36  ;;  %v4860_v36 = vld [vmem:[%s6407_s2 + $0x18] sm:$0xff]  }
0x14ed   :  { %4534 = vmatprep.subr.bf16.mxu0 %v5092_v2 }
0x14f0   :  { %4535 = vmatpush3.bf16.msra.mxu0 %v4854_v46 }
0x14f1   :  { %4536 = vmatprep.subr.bf16.mxu0 %v5092_v2 }
0x14f4   :  { %4537 = vmatpush3.bf16.msra.mxu0 %v4855_v47 }
0x14f5   :  { %4538 = vmatprep.subr.bf16.mxu0 %v5092_v2 }
0x14f8   :  { %4539 = vmatpush3.bf16.msra.mxu0 %v4856_v49 }
0x14f9   :  { %4540 = vmatprep.subr.bf16.mxu0 %v5092_v2 }
0x14fc   :  { %4541 = vmatpush3.bf16.msra.mxu0 %v4857_v54 }
0x14fd   :  { %4542 = vmatprep.subr.bf16.mxu0 %v5092_v2 }
0x1500   :  { %4543 = vmatpush3.bf16.msra.mxu0 %v4858_v55 }
0x1501   :  { %4574 = vmatprep.subr.bf16.mxu0 %v5092_v2 }
0x15b6   :  { %v1758_v52 = vpop.f32.mrb[40].mxu0 }
0x15b7   :  { %v1765_v61 = vadd.f32 %v1758_v52, %v5494_v25  ;;  %v4518_v63 = vpop.f32.mrb[41].mxu0 }
0x15b8   :  { %v1761_v0 = vpop.f32.mrb[42].mxu0 }
0x15b9   :  { %v5734_v5 = vadd.f32 %v4066_v48, %v1765_v61  ;;  %v1766_v7 = vadd.f32 %v1761_v0, %v5497_v27  ;;  %v4519_v9 = vpop.f32.mrb[43].mxu0 }
0x15bb   :  { %v5737_v10 = vadd.f32 %v4066_v48, %v1766_v7  ;;  %v1778_v11 = vsel %vm235_vm4, %v5734_v5, 0.0 }
0x15bc   :  { %1779 = vadd.xlane.f32.xlu1 %v1778_v11 }
0x15bd   :  { %v1781_v16 = vsel %vm235_vm4, %v5737_v10, 0.0 }
0x15be   :  { %1782 = vadd.xlane.f32.xlu0 %v1781_v16 }
0x1649   :  { %v1780_v17 = vpop.xlane.xlu1 %1779 }
0x164a   :  { %v1784_v18 = vmul.f32 0.03125, %v1780_v17 }
0x164b   :  { %v1783_v25 = vpop.xlane.xlu0 %1782 }
0x164c   :  { %v1786_v20 = vsub.f32 %v5734_v5, %v1784_v18  ;;  %v1785_v21 = vmul.f32 0.03125, %v1783_v25 }
0x164e   :  { %v1787_v53 = vsub.f32 %v5737_v10, %v1785_v21  ;;  %v1788_v27 = vmul.f32 %v1786_v20, %v1786_v20 }
0x1650   :  { %v1790_v51 = vsel %vm235_vm4, %v1788_v27, 0.0  ;;  %v1789_v60 = vmul.f32 %v1787_v53, %v1787_v53 }
0x1651   :  { %1791 = vadd.xlane.f32.xlu0 %v1790_v51 }
0x1652   :  { %v1793_v23 = vsel %vm235_vm4, %v1789_v60, 0.0 }
0x1653   :  { %1794 = vadd.xlane.f32.xlu1 %v1793_v23 }
0x16de   :  { %v1792_v41 = vpop.xlane.xlu0 %1791 }
0x16df   :  { %v1796_v43 = vmul.f32 0.03125, %v1792_v41  ;;  %v4081_v41 = vld [vmem:[%s6337_s25] ss:$0 sm:$0xff] }
0x16e0   :  { %v1795_v26 = vpop.xlane.xlu1 %1794 }
0x16e1   :  { %v1798_v62 = vadd.f32 1e-05, %v1796_v43  ;;  %v1797_v28 = vmul.f32 0.03125, %v1795_v26 }
0x16e3   :  { %4951 = vrsqrt.f32 %v1798_v62  ;;  %v1799_v29 = vadd.f32 1e-05, %v1797_v28 }
0x16e5   :  { %4953 = vrsqrt.f32 %v1799_v29 }
0x16ed   :  { %v4952_v19 = vpop.eup %4951 }
0x16ee   :  { %v1802_v59 = vmul.f32 %v4952_v19, %v1786_v20 }
0x16ef   :  { %v4954_v22 = vpop.eup %4953 }
0x16f0   :  { %v1810_v31 = vmul.f32 %v4067_v30, %v1802_v59  ;;  %v1803_v33 = vmul.f32 %v4954_v22, %v1787_v53 }
0x16f2   :  { %v1811_v37 = vmul.f32 %v4067_v30, %v1803_v33  ;;  %v1818_v39 = vadd.f32 %v4068_v34, %v1810_v31 }
0x16f4   :  { %v1819_v40 = vadd.f32 %v4068_v34, %v1811_v37 }
0x16f6   :  { %v1824_v42 = vpack.c.bf16 %v1819_v40, %v1818_v39 }
0x16f8   :  { %4525 = vmatmul.mubr.msk.bf16.vlgmr.msra.gmra.mrb[44].mxu1 %vm235_vm4, %v1824_v42 }
0x16f9   :  { %4552 = vmatprep.mubr.msk.bf16.mxu1 %vm5093_vm0, %v5092_v2  ;;  %4549 = vmatpush3.bf16.msra.mxu1 %v4859_v45 }
0x16fa   :  { %4550 = vmatprep.subr.bf16.mxu1 %v5092_v2 }
0x16fd   :  { %4551 = vmatpush3.bf16.msra.mxu1 %v4860_v36 }
0x16fe   :  { %4556 = vmatprep.subr.bf16.mxu1 %v5092_v2 }
0x17cb   :  { %v1881_v1 = vpop.f32.mrb[44].mxu1 }
0x17cc   :  { %v1882_v4 = vadd.f32 %v4069_v56, %v1881_v1  ;;  %v4526_v3 = vpop.f32.mrb[45].mxu1 }
0x17cd   :  { %v1884_v6 = vpop.f32.mrb[46].mxu1 }
0x17ce   :  { %v1890_v58 = vmul.f32 0.044715, %v1882_v4  ;;  %v1885_v52 = vadd.f32 %v4069_v56, %v1884_v6  ;;  %v4527_v48 = vpop.f32.mrb[47].mxu1  ;;  %v1888_v53 = vmul.f32 0.5, %v1882_v4 }
0x17cf   :  { %v4085_v48 = vld [vmem:[%s6409_s0 + $0x1] ss:$0 sm:$0xff]  ;;  %s6433_s0 = smov 48  }
0x17d0   :  { %v1892_v61 = vmul.f32 %v1890_v58, %v1882_v4  ;;  %v1891_v63 = vmul.f32 0.044715, %v1885_v52  ;;  %v1889_v27 = vmul.f32 0.5, %v1885_v52 }
0x17d2   :  { %v1894_v0 = vmul.f32 %v1892_v61, %v1882_v4  ;;  %v1893_v7 = vmul.f32 %v1891_v63, %v1885_v52 }
0x17d4   :  { %v1896_v9 = vadd.f32 %v1894_v0, %v1882_v4  ;;  %v1895_v11 = vmul.f32 %v1893_v7, %v1885_v52  ;;  %v4084_v4 = vld [vmem:[%s6408_s30 + $0x1] ss:$0 sm:$0xff]  ;;  %s6432_s30 = smov 64  }
0x17d6   :  { %v1898_v16 = vmul.f32 0.7978846, %v1896_v9  ;;  %v1897_v17 = vadd.f32 %v1895_v11, %v1885_v52  ;;  %v4091_v9 = vld [vmem:[%s6410_s1 + $0x1] ss:$0 sm:$0xff]  ;;  %s6434_s1 = smov 56  }
0x17d8   :  { %4955 = vtanh.f32 %v1898_v16  ;;  %v1899_v18 = vmul.f32 0.7978846, %v1897_v17 }
0x17da   :  { %4957 = vtanh.f32 %v1899_v18 }
0x17e2   :  { %v4956_v25 = vpop.eup %4955 }
0x17e3   :  { %v1902_v20 = vadd.f32 1.0, %v4956_v25 }
0x17e4   :  { %v4958_v21 = vpop.eup %4957 }
0x17e5   :  { %v1903_v51 = vadd.f32 1.0, %v4958_v21  ;;  %v1904_v60 = vmul.f32 %v1902_v20, %v1888_v53 }
0x17e7   :  { %v1905_v23 = vmul.f32 %v1903_v51, %v1889_v27 }
0x17e9   :  { %v1922_v24 = vpack.c.bf16 %v1905_v23, %v1904_v60 }
0x17eb   :  { %4545 = vmatmul.mubr.bf16.vlgmr.msra.gmra.mrb[44].mxu0 %v1922_v24 }
0x17ec   :  { %4576 = vmatprep.mubr.msk.bf16.mxu0 %vm5093_vm0, %v5092_v2 }
0x18be   :  { %v2005_v38 = vpop.f32.mrb[44].mxu0 }
0x18bf   :  { %v2012_v43 = vadd.f32 %v2005_v38, %v5734_v5  ;;  %v4546_v26 = vpop.f32.mrb[45].mxu0 }
0x18c0   :  { %v2008_v62 = vpop.f32.mrb[46].mxu0 }
0x18c1   :  { %v5805_v28 = vadd.f32 %v4081_v41, %v2012_v43  ;;  %v2013_v29 = vadd.f32 %v2008_v62, %v5737_v10  ;;  %v4547_v19 = vpop.f32.mrb[47].mxu0 }
0x18c3   :  { %v5808_v30 = vadd.f32 %v4081_v41, %v2013_v29  ;;  %v2027_v59 = vsel %vm235_vm4, %v5805_v28, 0.0 }
0x18c4   :  { %2028 = vadd.xlane.f32.xlu0 %v2027_v59 }
0x18c5   :  { %v2030_v22 = vsel %vm235_vm4, %v5808_v30, 0.0 }
0x18c6   :  { %2031 = vadd.xlane.f32.xlu1 %v2030_v22 }
0x1951   :  { %v2029_v31 = vpop.xlane.xlu0 %2028 }
0x1952   :  { %v2033_v33 = vmul.f32 0.03125, %v2029_v31 }
0x1953   :  { %v2032_v5 = vpop.xlane.xlu1 %2031 }
0x1954   :  { %v2035_v34 = vsub.f32 %v5805_v28, %v2033_v33  ;;  %v2034_v37 = vmul.f32 0.03125, %v2032_v5 }
0x1956   :  { %v2036_v39 = vsub.f32 %v5808_v30, %v2034_v37  ;;  %v2037_v10 = vmul.f32 %v2035_v34, %v2035_v34 }
0x1958   :  { %v2039_v40 = vsel %vm235_vm4, %v2037_v10, 0.0  ;;  %v2038_v42 = vmul.f32 %v2036_v39, %v2036_v39 }
0x1959   :  { %2040 = vadd.xlane.f32.xlu0 %v2039_v40 }
0x195a   :  { %v2042_v44 = vsel %vm235_vm4, %v2038_v42, 0.0 }
0x195b   :  { %2043 = vadd.xlane.f32.xlu1 %v2042_v44 }
0x19e6   :  { %v2041_v46 = vpop.xlane.xlu0 %2040 }
0x19e7   :  { %v2045_v47 = vmul.f32 0.03125, %v2041_v46 }
0x19e8   :  { %v2044_v49 = vpop.xlane.xlu1 %2043 }
0x19e9   :  { %v2047_v54 = vadd.f32 1e-05, %v2045_v47  ;;  %v2046_v55 = vmul.f32 0.03125, %v2044_v49 }
0x19eb   :  { %4959 = vrsqrt.f32 %v2047_v54  ;;  %v2048_v56 = vadd.f32 1e-05, %v2046_v55 }
0x19ed   :  { %4961 = vrsqrt.f32 %v2048_v56 }
0x19f5   :  { %v4960_v1 = vpop.eup %4959 }
0x19f6   :  { %v2051_v3 = vmul.f32 %v4960_v1, %v2035_v34 }
0x19f7   :  { %v4962_v6 = vpop.eup %4961 }
0x19f8   :  { %v2059_v58 = vmul.f32 %v4084_v4, %v2051_v3  ;;  %v2052_v52 = vmul.f32 %v4962_v6, %v2036_v39 }
0x19fa   :  { %v2060_v61 = vmul.f32 %v4084_v4, %v2052_v52  ;;  %v2067_v63 = vadd.f32 %v4085_v48, %v2059_v58 }
0x19fc   :  { %v2068_v0 = vadd.f32 %v4085_v48, %v2060_v61 }
0x19fe   :  { %v2074_v7 = vpack.c.bf16 %v2068_v0, %v2067_v63 }
0x1a00   :  { %4553 = vmatmul.mubr.msk.bf16.vlgmr.msra.gmra.mrb[48].mxu1 %vm235_vm4, %v2074_v7 }
0x1a01   :  { %4558 = vmatprep.mubr.msk.bf16.mxu1 %vm5093_vm0, %v5092_v2 }
0x1ad3   :  { %v2132_v11 = vpop.f32.mrb[48].mxu1 }
0x1ad4   :  { %v4554_v16 = vpop.f32.mrb[49].mxu1  ;;  %v2133_v18 = vadd.f32 %v4091_v9, %v2132_v11 }
0x1ad5   :  { %v2135_v17 = vpop.f32.mrb[50].mxu1 }
0x1ad6   :  { %v2136_v25 = vadd.f32 %v4091_v9, %v2135_v17  ;;  %v4555_v20 = vpop.f32.mrb[51].mxu1 }
0x1ad8   :  { %v5838_v21 = vpack.c.bf16 %v2136_v25, %v2133_v18 }
0x1ada   :  { %2141 = vrot.lane.b32.xlu0 %v5838_v21, %s6425_s3 }
0x1ade   :  { %2266 = vrot.lane.b32.xlu0 %v5838_v21, %s6423_s5 }
0x1ae2   :  { %2264 = vrot.lane.b32.xlu0 %v5838_v21, %s6418_s9 }
0x1ae6   :  { %2391 = vrot.lane.b32.xlu0 %v5838_v21, %s6426_s4 }
0x1aea   :  { %2389 = vrot.lane.b32.xlu0 %v5838_v21, %s6424_s11 }
0x1aee   :  { %2514 = vrot.lane.b32.xlu0 %v5838_v21, %s6427_s28 }
0x1b4c   :  { %v2142_v53 = vpop.permute.xlu0 %2141 }
0x1b4d   :  { %v2147_v27 = vsel %vm351_vm5, %v2142_v53, 0 }
0x1b4e   :  { %4557 = vmatpush3.bf16.xpose.msra.mxu1 %v2147_v27 }
0x1b4f   :  { %4562 = vmatprep.subr.bf16.mxu1 %v5092_v2 }
0x1b50   :  { %v2267_v36 = vpop.permute.xlu0 %2266 }
0x1b51   :  { %v2272_v56 = vsel %vm351_vm5, %v2267_v36, 0 }
0x1b54   :  { %v2265_v55 = vpop.permute.xlu0 %2264 }
0x1b55   :  { %4559 = vmatmul.mubr.msk.bf16.vlgmr.msra.gmra.mrb[52].mxu1 %vm351_vm5, %v5838_v21 }
0x1b56   :  { %4564 = vmatprep.mubr.msk.bf16.mxu1 %vm5093_vm0, %v5092_v2 }
0x1b58   :  { %v2392_v1 = vpop.permute.xlu0 %2391 }
0x1b59   :  { %v2397_v4 = vsel %vm351_vm5, %v2392_v1, 0 }
0x1b5c   :  { %v2390_v6 = vpop.permute.xlu0 %2389 }
0x1b60   :  { %v2515_v52 = vpop.permute.xlu0 %2514 }
0x1c28   :  { %v2183_v51 = vpop.f32.mrb[52].mxu1 }
0x1c29   :  { %v2190_v60 = vmul.f32 0.35355338, %v2183_v51  ;;  %v4560_v23 = vpop.f32.mrb[53].mxu1 }
0x1c2a   :  { %v2186_v24 = vpop.f32.mrb[54].mxu1 }
0x1c2b   :  { %v2191_v38 = vmul.f32 0.35355338, %v2186_v24  ;;  %v4561_v41 = vpop.f32.mrb[55].mxu1  ;;  %v2192_v43 = vsel %vm5376_vm10, %v2190_v60, -1e+30 }
0x1c2c   :  { %v2194_v26 = vsel %vm403_vm11, %v2192_v43, -inf }
0x1c2d   :  { %2195 = vmax.xlane.f32.xlu1 %v2194_v26  ;;  %v2193_v62 = vsel %vm5380_vm12, %v2191_v38, -1e+30 }
0x1c2e   :  { %v2197_v29 = vsel %vm403_vm11, %v2193_v62, -inf }
0x1c31   :  { %2198 = vmax.xlane.f32.xlu1 %v2197_v29 }
0x1cba   :  { %v2196_v19 = vpop.xlane.xlu1 %2195 }
0x1cbb   :  { %v2200_v59 = vsub.f32 %v2192_v43, %v2196_v19 }
0x1cbd   :  { %v2202_v22 = vmul.f32 1.442695, %v2200_v59 }
0x1cbe   :  { %v2199_v31 = vpop.xlane.xlu1 %2198 }
0x1cbf   :  { %4963 = vpow2.f32 %v2202_v22  ;;  %v2201_v33 = vsub.f32 %v2193_v62, %v2199_v31 }
0x1cc1   :  { %v2204_v5 = vmul.f32 1.442695, %v2201_v33 }
0x1cc3   :  { %4965 = vpow2.f32 %v2204_v5 }
0x1cc9   :  { %v4964_v34 = vpop.eup %4963 }
0x1cca   :  { %v2206_v37 = vsel %vm403_vm11, %v4964_v34, 0.0 }
0x1ccb   :  { %2207 = vadd.xlane.f32.xlu1 %v2206_v37 }
0x1ccd   :  { %v4966_v39 = vpop.eup %4965 }
0x1cce   :  { %v2209_v10 = vsel %vm403_vm11, %v4966_v39, 0.0 }
0x1ccf   :  { %2210 = vadd.xlane.f32.xlu1 %v2209_v10 }
0x1ce0   :  { %2217 = vrot.lane.b32.xlu1 %v5838_v21, %s6432_s30 }
0x1ce4   :  { %2516 = vrot.lane.b32.xlu1 %v5838_v21, %s6428_s7 }
0x1d58   :  { %v2208_v40 = vpop.xlane.xlu1 %2207 }
0x1d59   :  { %4967 = vrcp.f32 %v2208_v40 }
0x1d5c   :  { %v2211_v42 = vpop.xlane.xlu1 %2210 }
0x1d5d   :  { %4969 = vrcp.f32 %v2211_v42 }
0x1d60   :  { %v2218_v44 = vpop.permute.xlu1 %2217 }
0x1d61   :  { %4563 = vmatpush3.bf16.msra.mxu1 %v2218_v44 }
0x1d62   :  { %4568 = vmatprep.subr.bf16.mxu1 %v5092_v2 }
0x1d63   :  { %v4968_v45 = vpop.eup %4967 }
0x1d64   :  { %v2214_v47 = vmul.f32 %v4968_v45, %v4964_v34  ;;  %v2517_v3 = vpop.permute.xlu1 %2516 }
0x1d65   :  { %v2522_v58 = vsel %vm351_vm5, %v2517_v3, 0 }
0x1d67   :  { %v4970_v46 = vpop.eup %4969 }
0x1d68   :  { %v2215_v49 = vmul.f32 %v4970_v46, %v4966_v39 }
0x1d6a   :  { %v2216_v54 = vpack.c.bf16 %v2215_v49, %v2214_v47 }
0x1d6c   :  { %4565 = vmatmul.mubr.msk.bf16.vlgmr.msra.gmra.mrb[56].mxu1 %vm403_vm11, %v2216_v54 }
0x1d6d   :  { %4569 = vmatpush3.bf16.xpose.msra.mxu1 %v2272_v56  ;;  %4570 = vmatprep.mubr.msk.bf16.mxu1 %vm5093_vm0, %v5092_v2 }
0x1d6e   :  { %4580 = vmatprep.subr.bf16.mxu1 %v5092_v2 }
0x1d74   :  { %4571 = vmatmul.mubr.msk.bf16.vlgmr.msra.gmra.mrb[60].mxu1 %vm351_vm5, %v2265_v55 }
0x1d75   :  { %4581 = vmatpush3.bf16.xpose.msra.mxu1 %v2397_v4  ;;  %4582 = vmatprep.mubr.msk.bf16.mxu1 %vm5093_vm0, %v5092_v2 }
0x1d76   :  { %4592 = vmatprep.subr.bf16.mxu1 %v5092_v2 }
0x1d7c   :  { %4583 = vmatmul.mubr.msk.bf16.vlgmr.msra.gmra.mrb[64].mxu1 %vm351_vm5, %v2390_v6 }
0x1d7d   :  { %4593 = vmatpush3.bf16.xpose.msra.mxu1 %v2522_v58  ;;  %4594 = vmatprep.mubr.msk.bf16.mxu1 %vm5093_vm0, %v5092_v2 }
0x1d7e   :  { %4604 = vmatprep.subr.bf16.mxu1 %v5092_v2 }
0x1d84   :  { %4595 = vmatmul.mubr.msk.bf16.vlgmr.msra.gmra.mrb[68].mxu1 %vm351_vm5, %v2515_v52 }
0x1d85   :  { %4608 = vmatprep.mubr.msk.bf16.mxu1 %vm5093_vm0, %v5092_v2 }
0x1e3f   :  { %v5889_v48 = vpop.f32.mrb[56].mxu1 }
0x1e40   :  { %v4566_v61 = vpop.f32.mrb[57].mxu1 }
0x1e41   :  { %v5891_v63 = vpop.f32.mrb[58].mxu1 }
0x1e42   :  { %v4567_v0 = vpop.f32.mrb[59].mxu1 }
0x1e47   :  { %v2308_v7 = vpop.f32.mrb[60].mxu1 }
0x1e48   :  { %v2315_v9 = vmul.f32 0.35355338, %v2308_v7  ;;  %v4572_v11 = vpop.f32.mrb[61].mxu1 }
0x1e49   :  { %v2311_v16 = vpop.f32.mrb[62].mxu1 }
0x1e4a   :  { %v2316_v17 = vmul.f32 0.35355338, %v2311_v16  ;;  %v4573_v18 = vpop.f32.mrb[63].mxu1  ;;  %v2317_v25 = vsel %vm5376_vm10, %v2315_v9, -1e+30 }
0x1e4b   :  { %v2319_v20 = vsel %vm403_vm11, %v2317_v25, -inf }
0x1e4c   :  { %v2318_v53 = vsel %vm5380_vm12, %v2316_v17, -1e+30  ;;  %2320 = vmax.xlane.f32.xlu1 %v2319_v20 }
0x1e4d   :  { %v2322_v27 = vsel %vm403_vm11, %v2318_v53, -inf }
0x1e4e   :  { %2323 = vmax.xlane.f32.xlu0 %v2322_v27 }
0x1e4f   :  { %v2433_v51 = vpop.f32.mrb[64].mxu1 }
0x1e50   :  { %v2440_v60 = vmul.f32 0.35355338, %v2433_v51  ;;  %v4584_v23 = vpop.f32.mrb[65].mxu1 }
0x1e51   :  { %v2436_v24 = vpop.f32.mrb[66].mxu1 }
0x1e52   :  { %v2442_v38 = vsel %vm5376_vm10, %v2440_v60, -1e+30  ;;  %v2441_v41 = vmul.f32 0.35355338, %v2436_v24  ;;  %v4585_v43 = vpop.f32.mrb[67].mxu1 }
0x1e53   :  { %v2444_v26 = vsel %vm403_vm11, %v2442_v38, -inf }
0x1e54   :  { %2445 = vmax.xlane.f32.xlu0 %v2444_v26  ;;  %v2443_v62 = vsel %vm5380_vm12, %v2441_v41, -1e+30 }
0x1e55   :  { %v2447_v29 = vsel %vm403_vm11, %v2443_v62, -inf }
0x1e56   :  { %2448 = vmax.xlane.f32.xlu1 %v2447_v29 }
0x1e57   :  { %v2558_v19 = vpop.f32.mrb[68].mxu1 }
0x1e58   :  { %v2565_v59 = vmul.f32 0.35355338, %v2558_v19  ;;  %v4596_v22 = vpop.f32.mrb[69].mxu1 }
0x1e59   :  { %v2561_v31 = vpop.f32.mrb[70].mxu1 }
0x1e5a   :  { %v2567_v33 = vsel %vm5376_vm10, %v2565_v59, -1e+30  ;;  %v2566_v5 = vmul.f32 0.35355338, %v2561_v31  ;;  %v4597_v34 = vpop.f32.mrb[71].mxu1 }
0x1e5b   :  { %v2569_v37 = vsel %vm403_vm11, %v2567_v33, -inf }
0x1e5c   :  { %2570 = vmax.xlane.f32.xlu0 %v2569_v37  ;;  %v2568_v39 = vsel %vm5380_vm12, %v2566_v5, -1e+30 }
0x1e5d   :  { %v2572_v10 = vsel %vm403_vm11, %v2568_v39, -inf }
0x1e5e   :  { %2573 = vmax.xlane.f32.xlu1 %v2572_v10 }
0x1ed9   :  { %v2321_v40 = vpop.xlane.xlu1 %2320 }
0x1eda   :  { %v2325_v42 = vsub.f32 %v2317_v25, %v2321_v40 }
0x1edb   :  { %v2324_v44 = vpop.xlane.xlu0 %2323 }
0x1edc   :  { %v2327_v45 = vmul.f32 1.442695, %v2325_v42  ;;  %v2326_v36 = vsub.f32 %v2318_v53, %v2324_v44 }
0x1ede   :  { %4971 = vpow2.f32 %v2327_v45  ;;  %v2329_v46 = vmul.f32 1.442695, %v2326_v36 }
0x1ee0   :  { %4973 = vpow2.f32 %v2329_v46  ;;  %v4861_v46 = vld [vmem:[%s6415_s10 + $0x10] sm:$0xff]  }
0x1ee1   :  { %v2446_v8 = vpop.xlane.xlu0 %2445  ;;  %4605 = vmatpush3.bf16.msra.mxu1 %v4861_v46 }
0x1ee2   :  { %v2450_v47 = vsub.f32 %v2442_v38, %v2446_v8  ;;  %4606 = vmatprep.subr.bf16.mxu1 %v5092_v2 }
0x1ee3   :  { %v2449_v49 = vpop.xlane.xlu1 %2448 }
0x1ee4   :  { %v2452_v54 = vmul.f32 1.442695, %v2450_v47  ;;  %v2451_v55 = vsub.f32 %v2443_v62, %v2449_v49 }
0x1ee6   :  { %4975 = vpow2.f32 %v2452_v54  ;;  %v2454_v56 = vmul.f32 1.442695, %v2451_v55 }
0x1ee8   :  { %v4972_v12 = vpop.eup %4971  ;;  %4977 = vpow2.f32 %v2454_v56 }
0x1ee9   :  { %v2571_v1 = vpop.xlane.xlu0 %2570  ;;  %v2331_v4 = vsel %vm403_vm11, %v4972_v12, 0.0 }
0x1eea   :  { %v4974_v3 = vpop.eup %4973  ;;  %v2575_v6 = vsub.f32 %v2567_v33, %v2571_v1  ;;  %2332 = vadd.xlane.f32.xlu0 %v2331_v4  ;;  %v4862_v1 = vld [vmem:[%s6415_s10 + $0x18] sm:$0xff]   ;;  %s6437_s10 = sld [smem:[#allocation18_spill]] }
0x1eeb   :  { %v2334_v58 = vsel %vm403_vm11, %v4974_v3, 0.0  ;;  %v2574_v17 = vpop.xlane.xlu1 %2573  ;;  %4607 = vmatpush3.bf16.msra.mxu1 %v4862_v1 }
0x1eec   :  { %v2577_v52 = vmul.f32 1.442695, %v2575_v6  ;;  %2335 = vadd.xlane.f32.xlu1 %v2334_v58  ;;  %v2576_v18 = vsub.f32 %v2568_v39, %v2574_v17 }
0x1eee   :  { %4979 = vpow2.f32 %v2577_v52  ;;  %v2579_v25 = vmul.f32 1.442695, %v2576_v18 }
0x1ef0   :  { %v4976_v61 = vpop.eup %4975  ;;  %4981 = vpow2.f32 %v2579_v25 }
0x1ef1   :  { %v2456_v0 = vsel %vm403_vm11, %v4976_v61, 0.0 }
0x1ef2   :  { %v4978_v7 = vpop.eup %4977  ;;  %2457 = vadd.xlane.f32.xlu0 %v2456_v0 }
0x1ef3   :  { %v2459_v9 = vsel %vm403_vm11, %v4978_v7, 0.0 }
0x1ef4   :  { %2460 = vadd.xlane.f32.xlu1 %v2459_v9 }
0x1ef8   :  { %v4980_v11 = vpop.eup %4979 }
0x1ef9   :  { %v2581_v16 = vsel %vm403_vm11, %v4980_v11, 0.0 }
0x1efa   :  { %2582 = vadd.xlane.f32.xlu0 %v2581_v16  ;;  %v4982_v20 = vpop.eup %4981 }
0x1efb   :  { %v2584_v53 = vsel %vm403_vm11, %v4982_v20, 0.0 }
0x1f05   :  { %2467 = vrot.lane.b32.xlu1 %v5838_v21, %s6433_s0  ;;  %s6441_s0 = sld [smem:[#allocation21_spill]] }
0x1f10   :  { %2342 = vrot.lane.b32.xlu0 %v5838_v21, %s6434_s1 }
0x1f29   :  { %2585 = vadd.xlane.f32.xlu1 %v2584_v53 }
0x1f3a   :  { %2592 = vrot.lane.b32.xlu1 %v5838_v21, %s6435_s15 }
0x1f77   :  { %v2333_v51 = vpop.xlane.xlu0 %2332 }
0x1f79   :  { %v2336_v27 = vpop.xlane.xlu1 %2335 }
0x1f7a   :  { %4983 = vrcp.f32 %v2336_v27 }
0x1f7b   :  { %4985 = vrcp.f32 %v2333_v51 }
0x1f7f   :  { %v2458_v23 = vpop.xlane.xlu0 %2457 }
0x1f81   :  { %v2461_v60 = vpop.xlane.xlu1 %2460 }
0x1f82   :  { %4987 = vrcp.f32 %v2461_v60 }
0x1f83   :  { %4989 = vrcp.f32 %v2458_v23 }
0x1f84   :  { %v4984_v24 = vpop.eup %4983 }
0x1f85   :  { %v4986_v41 = vpop.eup %4985  ;;  %v2340_v43 = vmul.f32 %v4984_v24, %v4974_v3  ;;  %v2468_v21 = vpop.permute.xlu1 %2467 }
0x1f86   :  { %v2339_v26 = vmul.f32 %v4986_v41, %v4972_v12 }
0x1f87   :  { %v2583_v38 = vpop.xlane.xlu0 %2582 }
0x1f88   :  { %v2341_v29 = vpack.c.bf16 %v2340_v43, %v2339_v26  ;;  %4991 = vrcp.f32 %v2583_v38 }
0x1f8b   :  { %v2343_v62 = vpop.permute.xlu0 %2342 }
0x1f8c   :  { %4575 = vmatpush3.bf16.msra.mxu0 %v2343_v62  ;;  %v4988_v19 = vpop.eup %4987 }
0x1f8d   :  { %4586 = vmatprep.subr.bf16.mxu0 %v5092_v2  ;;  %v4990_v59 = vpop.eup %4989  ;;  %v2465_v22 = vmul.f32 %v4988_v19, %v4978_v7 }
0x1f8e   :  { %v2464_v31 = vmul.f32 %v4990_v59, %v4976_v61  ;;  %v4864_v59 = vld [vmem:[%s6328_s16 + $0x18] sm:$0xff]  }
0x1f8f   :  { %4577 = vmatmul.mubr.msk.bf16.vlgmr.msra.gmra.mrb[48].mxu0 %vm403_vm11, %v2341_v29 }
0x1f90   :  { %4587 = vmatpush3.bf16.msra.mxu0 %v2468_v21  ;;  %4588 = vmatprep.mubr.msk.bf16.mxu0 %vm5093_vm0, %v5092_v2  ;;  %v2466_v33 = vpack.c.bf16 %v2465_v22, %v2464_v31 }
0x1f91   :  { %4598 = vmatprep.subr.bf16.mxu0 %v5092_v2 }
0x1f92   :  { %v4992_v37 = vpop.eup %4991 }
0x1f93   :  { %v2589_v10 = vmul.f32 %v4992_v37, %v4980_v11 }
0x1f97   :  { %4589 = vmatmul.mubr.msk.bf16.vlgmr.msra.gmra.mrb[52].mxu0 %vm403_vm11, %v2466_v33 }
0x1f98   :  { %4600 = vmatprep.mubr.msk.bf16.mxu0 %vm5093_vm0, %v5092_v2 }
0x1fb6   :  { %v2586_v5 = vpop.xlane.xlu1 %2585 }
0x1fb7   :  { %4993 = vrcp.f32 %v2586_v5 }
0x1fba   :  { %v2593_v34 = vpop.permute.xlu1 %2592 }
0x1fbb   :  { %4599 = vmatpush3.bf16.msra.mxu0 %v2593_v34 }
0x1fbc   :  { %4612 = vmatprep.subr.bf16.mxu0 %v5092_v2 }
0x1fc1   :  { %v4994_v39 = vpop.eup %4993 }
0x1fc2   :  { %v2590_v40 = vmul.f32 %v4994_v39, %v4982_v20 }
0x1fc4   :  { %v2591_v42 = vpack.c.bf16 %v2590_v40, %v2589_v10 }
0x1fc6   :  { %4601 = vmatmul.mubr.msk.bf16.vlgmr.msra.gmra.mrb[56].mxu0 %vm403_vm11, %v2591_v42  ;;  %v4866_v42 = vld [vmem:[%s6326_s14 + $0x18] sm:$0xff]  }
0x1fc7   :  { %4616 = vmatprep.mubr.msk.bf16.mxu0 %vm5093_vm0, %v5092_v2 }
0x2062   :  { %v2382_v44 = vpop.f32.mrb[48].mxu0 }
0x2063   :  { %v4578_v45 = vpop.f32.mrb[49].mxu0 }
0x2064   :  { %v2385_v36 = vpop.f32.mrb[50].mxu0 }
0x2065   :  { %v4801_v8 = vpack.i.bf16 %v2385_v36, %v2382_v44  ;;  %v4579_v47 = vpop.f32.mrb[51].mxu0  ;;  %v4130_v44 = vld [vmem:[%s6329_s17 + $0x1] ss:$0 sm:$0xff] }
0x2067   :  { %4802 = vrot.lane.b32.xlu0 %v4801_v8, %s6429_s6 }
0x206a   :  { %v2507_v49 = vpop.f32.mrb[52].mxu0 }
0x206b   :  { %v4590_v54 = vpop.f32.mrb[53].mxu0 }
0x206c   :  { %v2510_v55 = vpop.f32.mrb[54].mxu0 }
0x206d   :  { %v4806_v56 = vpack.i.bf16 %v2510_v55, %v2507_v49  ;;  %v4591_v12 = vpop.f32.mrb[55].mxu0 }
0x206f   :  { %4807 = vrot.lane.b32.xlu1 %v4806_v56, %s6430_s8 }
0x2099   :  { %v2632_v4 = vpop.f32.mrb[56].mxu0 }
0x209a   :  { %v4602_v3 = vpop.f32.mrb[57].mxu0 }
0x209b   :  { %v2635_v6 = vpop.f32.mrb[58].mxu0 }
0x209c   :  { %v4811_v58 = vpack.i.bf16 %v2635_v6, %v2632_v4  ;;  %v4603_v52 = vpop.f32.mrb[59].mxu0 }
0x209e   :  { %4812 = vrot.lane.b32.xlu0 %v4811_v58, %s6431_s12 }
0x20d9   :  { %v4803_v61 = vpop.permute.xlu0 %4802 }
0x20da   :  { %v4805_v7 = vunpack.i.h.bf16 %v4803_v61  ;;  %v4804_v9 = vunpack.i.l.bf16 %v4803_v61 }
0x20dc   :  { %v2664_v18 = vsel %vm351_vm5, %v5891_v63, %v4805_v7  ;;  %v2663_v25 = vsel %vm351_vm5, %v5889_v48, %v4804_v9  ;;  %v4111_v48 = vld [vmem:[%s6416_s29 + $0x1] ss:$0 sm:$0xff] }
0x20e1   :  { %v4808_v0 = vpop.permute.xlu1 %4807 }
0x20e2   :  { %v4810_v11 = vunpack.i.h.bf16 %v4808_v0  ;;  %v4809_v16 = vunpack.i.l.bf16 %v4808_v0  ;;  %v4114_v0 = vld [vmem:[%s6436_s22 + $0x1] ss:$0 sm:$0xff] }
0x20e4   :  { %v2666_v27 = vsel %vm403_vm11, %v2664_v18, %v4810_v11  ;;  %v2665_v51 = vsel %vm403_vm11, %v2663_v25, %v4809_v16 }
0x2110   :  { %v4813_v17 = vpop.permute.xlu0 %4812 }
0x2111   :  { %v4815_v20 = vunpack.i.h.bf16 %v4813_v17  ;;  %v4814_v53 = vunpack.i.l.bf16 %v4813_v17  ;;  %v4115_v17 = vld [vmem:[%s6437_s10 + $0x1] ss:$0 sm:$0xff] }
0x2113   :  { %v2668_v60 = vsel %vm877_vm13, %v2666_v27, %v4815_v20  ;;  %v2667_v23 = vsel %vm877_vm13, %v2665_v51, %v4814_v53 }
0x2114   :  { %v2674_v24 = vpack.c.bf16 %v2668_v60, %v2667_v23  ;;  %v4121_v60 = vld [vmem:[%s6438_s20 + $0x1] ss:$0 sm:$0xff] }
0x2116   :  { %4609 = vmatmul.mubr.msk.bf16.vlgmr.msra.gmra.mrb[72].mxu1 %vm235_vm4, %v2674_v24 }
0x2117   :  { %4624 = vmatprep.mubr.msk.bf16.mxu1 %vm235_vm4, %v5515_v32 }
0x21e9   :  { %v2724_v63 = vpop.f32.mrb[72].mxu1 }
0x21ea   :  { %v2731_v38 = vadd.f32 %v2724_v63, %v5805_v28  ;;  %v4610_v41 = vpop.f32.mrb[73].mxu1  ;;  %v4863_v28 = vld [vmem:[%s6328_s16 + $0x10] sm:$0xff]  }
0x21eb   :  { %v2727_v43 = vpop.f32.mrb[74].mxu1  ;;  %4620 = vmatprep.subr.bf16.mxu1 %v4863_v28 }
0x21ec   :  { %v5960_v26 = vadd.f32 %v4111_v48, %v2731_v38  ;;  %v2732_v62 = vadd.f32 %v2727_v43, %v5808_v30  ;;  %v4611_v29 = vpop.f32.mrb[75].mxu1  ;;  %4621 = vmatpush3.bf16.msra.mxu1 %v4863_v28 }
0x21ed   :  { %4622 = vmatprep.subr.bf16.mxu1 %v4864_v59 }
0x21ee   :  { %v5963_v19 = vadd.f32 %v4111_v48, %v2732_v62  ;;  %v2747_v21 = vsel %vm235_vm4, %v5960_v26, 0.0 }
0x21ef   :  { %2748 = vadd.xlane.f32.xlu1 %v2747_v21 }
0x21f0   :  { %v2750_v32 = vsel %vm235_vm4, %v5963_v19, 0.0  ;;  %4623 = vmatpush3.bf16.msra.mxu1 %v4864_v59 }
0x21f1   :  { %2751 = vadd.xlane.f32.xlu0 %v2750_v32  ;;  %4636 = vmatprep.subr.bf16.mxu1 %v5092_v2 }
0x21f3   :  { %4625 = vmatmul.mubr.msk.bf16.vlgmr.msra.gmra.mrb[76].mxu1 %vm235_vm4, %v5525_v35  ;;  %v4865_v35 = vld [vmem:[%s6326_s14 + $0x10] sm:$0xff]  }
0x21f4   :  { %4640 = vmatprep.mubr.msk.bf16.mxu1 %vm5093_vm0, %v5092_v2  ;;  %4613 = vmatpush3.bf16.msra.mxu0 %v4865_v35 }
0x21f5   :  { %4614 = vmatprep.subr.bf16.mxu0 %v5092_v2 }
0x21f8   :  { %4615 = vmatpush3.bf16.msra.mxu0 %v4866_v42 }
0x21f9   :  { %4628 = vmatprep.subr.bf16.mxu0 %v5092_v2 }
0x227c   :  { %v2749_v30 = vpop.xlane.xlu1 %2748 }
0x227d   :  { %v2753_v22 = vmul.f32 0.03125, %v2749_v30 }
0x227e   :  { %v2752_v31 = vpop.xlane.xlu0 %2751 }
0x227f   :  { %v2755_v33 = vsub.f32 %v5960_v26, %v2753_v22  ;;  %v2754_v5 = vmul.f32 0.03125, %v2752_v31 }
0x2281   :  { %v2756_v34 = vsub.f32 %v5963_v19, %v2754_v5  ;;  %v2757_v37 = vmul.f32 %v2755_v33, %v2755_v33 }
0x2283   :  { %v2759_v39 = vsel %vm235_vm4, %v2757_v37, 0.0  ;;  %v2758_v10 = vmul.f32 %v2756_v34, %v2756_v34 }
0x2284   :  { %2760 = vadd.xlane.f32.xlu0 %v2759_v39 }
0x2285   :  { %v2762_v40 = vsel %vm235_vm4, %v2758_v10, 0.0 }
0x2286   :  { %2763 = vadd.xlane.f32.xlu1 %v2762_v40 }
0x22c6   :  { %v4626_v45 = vpop.f32.mrb[76].mxu1 }
0x22c7   :  { %v2927_v36 = vadd.f32 %v4626_v45, %v4130_v44  ;;  %v2918_v46 = vpop.f32.mrb[77].mxu1 }
0x22c8   :  { %v2919_v8 = vadd.f32 %v4130_v44, %v2918_v46  ;;  %v4627_v47 = vpop.f32.mrb[78].mxu1 }
0x22c9   :  { %v2930_v49 = vadd.f32 %v4627_v47, %v4130_v44  ;;  %v2921_v54 = vpop.f32.mrb[79].mxu1 }
0x22ca   :  { %v2922_v55 = vadd.f32 %v4130_v44, %v2921_v54 }
0x22cb   :  { %v5995_v56 = vpack.c.bf16 %v2930_v49, %v2927_v36 }
0x22cc   :  { %v5997_v12 = vpack.c.bf16 %v2922_v55, %v2919_v8 }
0x22cd   :  { %v2943_v51 = vsel %vm351_vm5, %v5995_v56, 0 }
0x22ce   :  { %v2940_v27 = vsel %vm351_vm5, %v5997_v12, 0 }
0x2311   :  { %v2761_v1 = vpop.xlane.xlu0 %2760 }
0x2312   :  { %v2765_v4 = vmul.f32 0.03125, %v2761_v1 }
0x2313   :  { %v2764_v3 = vpop.xlane.xlu1 %2763 }
0x2314   :  { %v2767_v6 = vadd.f32 1e-05, %v2765_v4  ;;  %v2766_v58 = vmul.f32 0.03125, %v2764_v3 }
0x2316   :  { %4995 = vrsqrt.f32 %v2767_v6  ;;  %v2768_v52 = vadd.f32 1e-05, %v2766_v58 }
0x2318   :  { %4997 = vrsqrt.f32 %v2768_v52 }
0x2320   :  { %v4996_v61 = vpop.eup %4995 }
0x2321   :  { %v2771_v7 = vmul.f32 %v4996_v61, %v2755_v33 }
0x2322   :  { %v4998_v9 = vpop.eup %4997 }
0x2323   :  { %v2779_v11 = vmul.f32 %v4114_v0, %v2771_v7  ;;  %v2772_v16 = vmul.f32 %v4998_v9, %v2756_v34 }
0x2325   :  { %v2780_v18 = vmul.f32 %v4114_v0, %v2772_v16  ;;  %v2787_v25 = vadd.f32 %v4115_v17, %v2779_v11 }
0x2327   :  { %v2788_v20 = vadd.f32 %v4115_v17, %v2780_v18 }
0x2329   :  { %v2794_v53 = vpack.c.bf16 %v2788_v20, %v2787_v25 }
0x232b   :  { %4617 = vmatmul.mubr.msk.bf16.vlgmr.msra.gmra.mrb[60].mxu0 %vm235_vm4, %v2794_v53 }
0x232c   :  { %4629 = vmatpush3.bf16.xpose.msra.mxu0 %v2940_v27  ;;  %4632 = vmatprep.mubr.msk.bf16.mxu0 %vm5093_vm0, %v5092_v2 }
0x232d   :  { %4630 = vmatprep.subr.bf16.mxu0 %v5092_v2 }
0x2334   :  { %4631 = vmatpush3.bf16.xpose.msra.mxu0 %v2943_v51 }
0x2335   :  { %4652 = vmatprep.subr.bf16.mxu0 %v5092_v2 }
0x23fe   :  { %v2852_v23 = vpop.f32.mrb[60].mxu0 }
0x23ff   :  { %v4618_v24 = vpop.f32.mrb[61].mxu0  ;;  %v2853_v48 = vadd.f32 %v4121_v60, %v2852_v23 }
0x2400   :  { %v2855_v63 = vpop.f32.mrb[62].mxu0 }
0x2401   :  { %v2856_v38 = vadd.f32 %v4121_v60, %v2855_v63  ;;  %v4619_v41 = vpop.f32.mrb[63].mxu0 }
0x2403   :  { %v6017_v43 = vpack.c.bf16 %v2856_v38, %v2853_v48 }
0x2405   :  { %4633 = vmatmul.mubr.msk.bf16.vlgmr.msra.gmra.mrb[64].mxu0 %vm351_vm5, %v6017_v43 }
0x2406   :  { %4656 = vmatprep.mubr.msk.bf16.mxu0 %vm5093_vm0, %v5092_v2 }
0x24d8   :  { %v2979_v62 = vpop.f32.mrb[64].mxu0 }
0x24d9   :  { %v2986_v29 = vmul.f32 0.35355338, %v2979_v62  ;;  %v4634_v21 = vpop.f32.mrb[65].mxu0 }
0x24da   :  { %v2982_v32 = vpop.f32.mrb[66].mxu0 }
0x24db   :  { %v2988_v28 = vsel %vm5591_vm14, %v2986_v29, -1e+30  ;;  %v2987_v59 = vmul.f32 0.35355338, %v2982_v32  ;;  %v4635_v30 = vpop.f32.mrb[67].mxu0 }
0x24dc   :  { %v2990_v22 = vsel %vm235_vm4, %v2988_v28, -inf }
0x24dd   :  { %v2989_v31 = vsel %vm5600_vm15, %v2987_v59, -1e+30  ;;  %2991 = vmax.xlane.f32.xlu0 %v2990_v22 }
0x24de   :  { %v2993_v33 = vsel %vm235_vm4, %v2989_v31, -inf }
0x24df   :  { %2994 = vmax.xlane.f32.xlu1 %v2993_v33 }
0x24f0   :  { %3017 = vrot.lane.b32.xlu1 %v5995_v56, %s6425_s3 }
0x256a   :  { %v2992_v5 = vpop.xlane.xlu0 %2991 }
0x256b   :  { %v2996_v34 = vsub.f32 %v2988_v28, %v2992_v5 }
0x256c   :  { %v2995_v37 = vpop.xlane.xlu1 %2994 }
0x256d   :  { %v2998_v39 = vmul.f32 1.442695, %v2996_v34  ;;  %v2997_v10 = vsub.f32 %v2989_v31, %v2995_v37 }
0x256f   :  { %4999 = vpow2.f32 %v2998_v39  ;;  %v3000_v40 = vmul.f32 1.442695, %v2997_v10 }
0x2570   :  { %v3018_v36 = vpop.permute.xlu1 %3017 }
0x2571   :  { %5001 = vpow2.f32 %v3000_v40 }
0x2579   :  { %v5000_v35 = vpop.eup %4999 }
0x257a   :  { %v3002_v42 = vsel %vm235_vm4, %v5000_v35, 0.0 }
0x257b   :  { %v5002_v44 = vpop.eup %5001  ;;  %3003 = vadd.xlane.f32.xlu0 %v3002_v42 }
0x257c   :  { %v3005_v45 = vsel %vm235_vm4, %v5002_v44, 0.0 }
0x257d   :  { %3006 = vadd.xlane.f32.xlu1 %v3005_v45 }
0x258e   :  { %3068 = vrot.lane.b32.xlu1 %v5997_v12, %s6418_s9 }
0x2591   :  { %3015 = vrot.lane.b32.xlu0 %v5997_v12, %s6425_s3  ;;  %s6445_s3 = sld [smem:[#allocation10_spill]] }
0x2592   :  { %3066 = vrot.lane.b32.xlu1 %v6017_v43, %s6418_s9 }
0x2595   :  { %3070 = vrot.lane.b32.xlu0 %v5995_v56, %s6418_s9  ;;  %s6444_s9 = sld [smem:[#allocation9_spill]] }
0x2608   :  { %v3004_v46 = vpop.xlane.xlu0 %3003 }
0x2609   :  { %5003 = vrcp.f32 %v3004_v46 }
0x260a   :  { %v3007_v8 = vpop.xlane.xlu1 %3006 }
0x260b   :  { %5005 = vrcp.f32 %v3007_v8 }
0x260c   :  { %v3016_v47 = vpop.permute.xlu0 %3015 }
0x260d   :  { %4637 = vmatpush3.bf16.msra.mxu1 %v3016_v47 }
0x260e   :  { %4638 = vmatprep.subr.bf16.mxu1 %v5092_v2  ;;  %v3069_v4 = vpop.permute.xlu1 %3068 }
0x260f   :  { %v3076_v6 = vsel %vm351_vm5, %v3069_v4, 0 }
0x2610   :  { %v3071_v58 = vpop.permute.xlu0 %3070 }
0x2611   :  { %4639 = vmatpush3.bf16.msra.mxu1 %v3018_v36  ;;  %v3079_v52 = vsel %vm351_vm5, %v3071_v58, 0 }
0x2612   :  { %4644 = vmatprep.subr.bf16.mxu1 %v5092_v2  ;;  %v3067_v61 = vpop.permute.xlu1 %3066 }
0x2613   :  { %v5004_v49 = vpop.eup %5003 }
0x2614   :  { %v3010_v55 = vmul.f32 %v5004_v49, %v5000_v35 }
0x2615   :  { %v5006_v54 = vpop.eup %5005 }
0x2616   :  { %v3011_v1 = vmul.f32 %v5006_v54, %v5002_v44 }
0x2618   :  { %v3012_v3 = vpack.c.bf16 %v3011_v1, %v3010_v55 }
0x261a   :  { %4641 = vmatmul.mubr.msk.bf16.vlgmr.msra.gmra.mrb[80].mxu1 %vm235_vm4, %v3012_v3 }
0x261b   :  { %4645 = vmatpush3.bf16.xpose.msra.mxu1 %v3076_v6  ;;  %4648 = vmatprep.mubr.msk.bf16.mxu1 %vm5093_vm0, %v5092_v2 }
0x261c   :  { %4646 = vmatprep.subr.bf16.mxu1 %v5092_v2 }
0x2623   :  { %4647 = vmatpush3.bf16.xpose.msra.mxu1 %v3079_v52 }
0x2624   :  { %4668 = vmatprep.subr.bf16.mxu1 %v5092_v2 }
0x262a   :  { %4649 = vmatmul.mubr.msk.bf16.vlgmr.msra.gmra.mrb[84].mxu1 %vm351_vm5, %v3067_v61 }
0x262b   :  { %4672 = vmatprep.mubr.msk.bf16.mxu1 %vm5093_vm0, %v5092_v2 }
0x26ed   :  { %v6053_v0 = vpop.f32.mrb[80].mxu1 }
0x26ee   :  { %v4642_v7 = vpop.f32.mrb[81].mxu1 }
0x26ef   :  { %v6055_v9 = vpop.f32.mrb[82].mxu1 }
0x26f0   :  { %v4643_v11 = vpop.f32.mrb[83].mxu1 }
0x26fd   :  { %v3115_v16 = vpop.f32.mrb[84].mxu1 }
0x26fe   :  { %v3122_v17 = vmul.f32 0.35355338, %v3115_v16  ;;  %v4650_v18 = vpop.f32.mrb[85].mxu1 }
0x26ff   :  { %v3118_v25 = vpop.f32.mrb[86].mxu1 }
0x2700   :  { %v3124_v20 = vsel %vm5591_vm14, %v3122_v17, -1e+30  ;;  %v3123_v53 = vmul.f32 0.35355338, %v3118_v25  ;;  %v4651_v27 = vpop.f32.mrb[87].mxu1 }
0x2701   :  { %v3126_v51 = vsel %vm235_vm4, %v3124_v20, -inf }
0x2702   :  { %v3125_v60 = vsel %vm5600_vm15, %v3123_v53, -1e+30  ;;  %3127 = vmax.xlane.f32.xlu0 %v3126_v51 }
0x2703   :  { %v3129_v23 = vsel %vm235_vm4, %v3125_v60, -inf }
0x2704   :  { %3130 = vmax.xlane.f32.xlu1 %v3129_v23 }
0x2715   :  { %3149 = vrot.lane.b32.xlu1 %v5997_v12, %s6423_s5 }
0x2719   :  { %3201 = vrot.lane.b32.xlu1 %v5997_v12, %s6424_s11 }
0x271d   :  { %3203 = vrot.lane.b32.xlu1 %v5995_v56, %s6424_s11 }
0x278f   :  { %v3128_v24 = vpop.xlane.xlu0 %3127 }
0x2790   :  { %v3132_v63 = vsub.f32 %v3124_v20, %v3128_v24 }
0x2791   :  { %v3131_v48 = vpop.xlane.xlu1 %3130 }
0x2792   :  { %v3134_v38 = vmul.f32 1.442695, %v3132_v63  ;;  %v3133_v41 = vsub.f32 %v3125_v60, %v3131_v48 }
0x2794   :  { %5007 = vpow2.f32 %v3134_v38  ;;  %v3136_v62 = vmul.f32 1.442695, %v3133_v41 }
0x2795   :  { %v3150_v29 = vpop.permute.xlu1 %3149 }
0x2796   :  { %5009 = vpow2.f32 %v3136_v62  ;;  %4653 = vmatpush3.bf16.msra.mxu0 %v3150_v29 }
0x2797   :  { %4654 = vmatprep.subr.bf16.mxu0 %v5092_v2 }
0x2799   :  { %v3202_v39 = vpop.permute.xlu1 %3201 }
0x279a   :  { %v3209_v40 = vsel %vm351_vm5, %v3202_v39, 0 }
0x279d   :  { %v3204_v35 = vpop.permute.xlu1 %3203 }
0x279e   :  { %v5008_v21 = vpop.eup %5007  ;;  %v3212_v42 = vsel %vm351_vm5, %v3204_v35, 0 }
0x279f   :  { %v3138_v32 = vsel %vm235_vm4, %v5008_v21, 0.0 }
0x27a0   :  { %v5010_v28 = vpop.eup %5009  ;;  %3139 = vadd.xlane.f32.xlu0 %v3138_v32 }
0x27a1   :  { %v3141_v59 = vsel %vm235_vm4, %v5010_v28, 0.0 }
0x27a4   :  { %3142 = vadd.xlane.f32.xlu0 %v3141_v59 }
0x27ba   :  { %3151 = vrot.lane.b32.xlu0 %v5995_v56, %s6423_s5 }
0x27be   :  { %3199 = vrot.lane.b32.xlu0 %v6017_v43, %s6424_s11 }
0x282d   :  { %v3140_v30 = vpop.xlane.xlu0 %3139 }
0x282e   :  { %5011 = vrcp.f32 %v3140_v30 }
0x2831   :  { %v3143_v22 = vpop.xlane.xlu0 %3142 }
0x2832   :  { %5013 = vrcp.f32 %v3143_v22 }
0x2835   :  { %v3152_v31 = vpop.permute.xlu0 %3151 }
0x2836   :  { %4655 = vmatpush3.bf16.msra.mxu0 %v3152_v31 }
0x2837   :  { %4660 = vmatprep.subr.bf16.mxu0 %v5092_v2 }
0x2838   :  { %v5012_v33 = vpop.eup %5011 }
0x2839   :  { %v3146_v34 = vmul.f32 %v5012_v33, %v5008_v21  ;;  %v3200_v44 = vpop.permute.xlu0 %3199 }
0x283c   :  { %v5014_v5 = vpop.eup %5013 }
0x283d   :  { %v3147_v37 = vmul.f32 %v5014_v5, %v5010_v28 }
0x283f   :  { %v3148_v10 = vpack.c.bf16 %v3147_v37, %v3146_v34 }
0x2841   :  { %4657 = vmatmul.mubr.msk.bf16.vlgmr.msra.gmra.mrb[68].mxu0 %vm235_vm4, %v3148_v10 }
0x2842   :  { %4661 = vmatpush3.bf16.xpose.msra.mxu0 %v3209_v40  ;;  %4664 = vmatprep.mubr.msk.bf16.mxu0 %vm5093_vm0, %v5092_v2 }
0x2843   :  { %4662 = vmatprep.subr.bf16.mxu0 %v5092_v2 }
0x284a   :  { %4663 = vmatpush3.bf16.xpose.msra.mxu0 %v3212_v42 }
0x284b   :  { %4684 = vmatprep.subr.bf16.mxu0 %v5092_v2 }
0x2851   :  { %4665 = vmatmul.mubr.msk.bf16.vlgmr.msra.gmra.mrb[72].mxu0 %vm351_vm5, %v3200_v44 }
0x2852   :  { %4688 = vmatprep.mubr.msk.bf16.mxu0 %vm5093_vm0, %v5092_v2 }
0x2914   :  { %v6087_v45 = vpop.f32.mrb[68].mxu0 }
0x2915   :  { %v4658_v36 = vpop.f32.mrb[69].mxu0 }
0x2916   :  { %v6089_v46 = vpop.f32.mrb[70].mxu0 }
0x2917   :  { %v4816_v8 = vpack.i.bf16 %v6089_v46, %v6087_v45  ;;  %v4659_v47 = vpop.f32.mrb[71].mxu0 }
0x2924   :  { %v3248_v49 = vpop.f32.mrb[72].mxu0 }
0x2925   :  { %v3255_v54 = vmul.f32 0.35355338, %v3248_v49  ;;  %v4666_v55 = vpop.f32.mrb[73].mxu0 }
0x2926   :  { %v3251_v1 = vpop.f32.mrb[74].mxu0 }
0x2927   :  { %v3257_v4 = vsel %vm5591_vm14, %v3255_v54, -1e+30  ;;  %v3256_v3 = vmul.f32 0.35355338, %v3251_v1  ;;  %v4667_v6 = vpop.f32.mrb[75].mxu0 }
0x2928   :  { %v3259_v58 = vsel %vm235_vm4, %v3257_v4, -inf }
0x2929   :  { %v3258_v52 = vsel %vm5600_vm15, %v3256_v3, -1e+30  ;;  %3260 = vmax.xlane.f32.xlu1 %v3259_v58 }
0x292a   :  { %v3262_v61 = vsel %vm235_vm4, %v3258_v52, -inf }
0x292b   :  { %3263 = vmax.xlane.f32.xlu0 %v3262_v61 }
0x293a   :  { %3284 = vrot.lane.b32.xlu1 %v5995_v56, %s6426_s4 }
0x29b6   :  { %v3261_v7 = vpop.xlane.xlu1 %3260 }
0x29b7   :  { %v3265_v11 = vsub.f32 %v3257_v4, %v3261_v7 }
0x29b8   :  { %v3264_v16 = vpop.xlane.xlu0 %3263 }
0x29b9   :  { %v3267_v17 = vmul.f32 1.442695, %v3265_v11  ;;  %v3266_v18 = vsub.f32 %v3258_v52, %v3264_v16 }
0x29ba   :  { %v3285_v60 = vpop.permute.xlu1 %3284 }
0x29bb   :  { %5015 = vpow2.f32 %v3267_v17  ;;  %v3269_v25 = vmul.f32 1.442695, %v3266_v18  ;;  %v4868_v17 = vld [vmem:[%s6330_s18 + $0x18] sm:$0xff]  }
0x29bd   :  { %5017 = vpow2.f32 %v3269_v25 }
0x29c5   :  { %v5016_v20 = vpop.eup %5015 }
0x29c6   :  { %v3271_v53 = vsel %vm235_vm4, %v5016_v20, 0.0 }
0x29c7   :  { %v5018_v27 = vpop.eup %5017  ;;  %3272 = vadd.xlane.f32.xlu0 %v3271_v53 }
0x29c8   :  { %v3274_v51 = vsel %vm235_vm4, %v5018_v27, 0.0 }
0x29c9   :  { %3275 = vadd.xlane.f32.xlu1 %v3274_v51 }
0x29da   :  { %3334 = vrot.lane.b32.xlu1 %v5997_v12, %s6427_s28 }
0x29dd   :  { %3282 = vrot.lane.b32.xlu0 %v5997_v12, %s6426_s4  ;;  %s6439_s4 = sld [smem:[#allocation20_spill]] }
0x29de   :  { %3332 = vrot.lane.b32.xlu1 %v6017_v43, %s6427_s28 }
0x29e1   :  { %3336 = vrot.lane.b32.xlu0 %v5995_v56, %s6427_s28 }
0x2a54   :  { %v3273_v23 = vpop.xlane.xlu0 %3272 }
0x2a55   :  { %5019 = vrcp.f32 %v3273_v23 }
0x2a56   :  { %v3276_v24 = vpop.xlane.xlu1 %3275 }
0x2a57   :  { %5021 = vrcp.f32 %v3276_v24 }
0x2a58   :  { %v3283_v63 = vpop.permute.xlu0 %3282 }
0x2a59   :  { %4669 = vmatpush3.bf16.msra.mxu1 %v3283_v63 }
0x2a5a   :  { %4670 = vmatprep.subr.bf16.mxu1 %v5092_v2  ;;  %v3335_v43 = vpop.permute.xlu1 %3334 }
0x2a5b   :  { %v3342_v21 = vsel %vm351_vm5, %v3335_v43, 0 }
0x2a5c   :  { %v3337_v32 = vpop.permute.xlu0 %3336 }
0x2a5d   :  { %4671 = vmatpush3.bf16.msra.mxu1 %v3285_v60  ;;  %v3345_v28 = vsel %vm351_vm5, %v3337_v32, 0 }
0x2a5e   :  { %4676 = vmatprep.subr.bf16.mxu1 %v5092_v2  ;;  %v3333_v59 = vpop.permute.xlu1 %3332 }
0x2a5f   :  { %v5020_v48 = vpop.eup %5019 }
0x2a60   :  { %v3279_v41 = vmul.f32 %v5020_v48, %v5016_v20 }
0x2a61   :  { %v5022_v38 = vpop.eup %5021 }
0x2a62   :  { %v3280_v62 = vmul.f32 %v5022_v38, %v5018_v27 }
0x2a64   :  { %v3281_v29 = vpack.c.bf16 %v3280_v62, %v3279_v41 }
0x2a66   :  { %4673 = vmatmul.mubr.msk.bf16.vlgmr.msra.gmra.mrb[88].mxu1 %vm235_vm4, %v3281_v29 }
0x2a67   :  { %4677 = vmatpush3.bf16.xpose.msra.mxu1 %v3342_v21  ;;  %4680 = vmatprep.mubr.msk.bf16.mxu1 %vm5093_vm0, %v5092_v2 }
0x2a68   :  { %4678 = vmatprep.subr.bf16.mxu1 %v5092_v2 }
0x2a6f   :  { %4679 = vmatpush3.bf16.xpose.msra.mxu1 %v3345_v28 }
0x2a70   :  { %4700 = vmatprep.subr.bf16.mxu1 %v5092_v2 }
0x2a76   :  { %4681 = vmatmul.mubr.msk.bf16.vlgmr.msra.gmra.mrb[92].mxu1 %vm351_vm5, %v3333_v59 }
0x2a77   :  { %4704 = vmatprep.mubr.msk.bf16.mxu1 %vm5093_vm0, %v5092_v2 }
0x2b39   :  { %v3325_v30 = vpop.f32.mrb[88].mxu1 }
0x2b3a   :  { %v4674_v22 = vpop.f32.mrb[89].mxu1 }
0x2b3b   :  { %v3328_v31 = vpop.f32.mrb[90].mxu1 }
0x2b3c   :  { %v4821_v33 = vpack.i.bf16 %v3328_v31, %v3325_v30  ;;  %v4675_v5 = vpop.f32.mrb[91].mxu1 }
0x2b49   :  { %v3381_v34 = vpop.f32.mrb[92].mxu1 }
0x2b4a   :  { %v3388_v37 = vmul.f32 0.35355338, %v3381_v34  ;;  %v4682_v39 = vpop.f32.mrb[93].mxu1 }
0x2b4b   :  { %v3384_v10 = vpop.f32.mrb[94].mxu1 }
0x2b4c   :  { %v3390_v40 = vsel %vm5591_vm14, %v3388_v37, -1e+30  ;;  %v3389_v35 = vmul.f32 0.35355338, %v3384_v10  ;;  %v4683_v42 = vpop.f32.mrb[95].mxu1 }
0x2b4d   :  { %v3392_v44 = vsel %vm235_vm4, %v3390_v40, -inf }
0x2b4e   :  { %v3391_v36 = vsel %vm5600_vm15, %v3389_v35, -1e+30  ;;  %3393 = vmax.xlane.f32.xlu0 %v3392_v44 }
0x2b4f   :  { %v3395_v47 = vsel %vm235_vm4, %v3391_v36, -inf }
0x2b50   :  { %3396 = vmax.xlane.f32.xlu1 %v3395_v47 }
0x2b61   :  { %3415 = vrot.lane.b32.xlu1 %v5997_v12, %s6428_s7 }
0x2b65   :  { %4817 = vrot.lane.b32.xlu1 %v4816_v8, %s6429_s6 }
0x2b69   :  { %4822 = vrot.lane.b32.xlu1 %v4821_v33, %s6430_s8  ;;  %s6440_s8 = sld [smem:[#allocation23_spill]] }
0x2bdb   :  { %v3394_v50 = vpop.xlane.xlu0 %3393 }
0x2bdc   :  { %v3398_v49 = vsub.f32 %v3390_v40, %v3394_v50 }
0x2bdd   :  { %v3397_v54 = vpop.xlane.xlu1 %3396 }
0x2bde   :  { %v3400_v55 = vmul.f32 1.442695, %v3398_v49  ;;  %v3399_v57 = vsub.f32 %v3391_v36, %v3397_v54 }
0x2be0   :  { %5023 = vpow2.f32 %v3400_v55  ;;  %v3402_v1 = vmul.f32 1.442695, %v3399_v57  ;;  %v4869_v55 = vld [vmem:[%s6440_s8 + $0x10] sm:$0xff]   ;;  %v4870_v57 = vld [vmem:[%s6440_s8 + $0x18] sm:$0xff]  }
0x2be1   :  { %v3416_v4 = vpop.permute.xlu1 %3415  ;;  %4701 = vmatpush3.bf16.msra.mxu1 %v4869_v55 }
0x2be2   :  { %5025 = vpow2.f32 %v3402_v1  ;;  %4685 = vmatpush3.bf16.msra.mxu0 %v3416_v4  ;;  %4702 = vmatprep.subr.bf16.mxu1 %v5092_v2 }
0x2be3   :  { %4686 = vmatprep.subr.bf16.mxu0 %v5092_v2 }
0x2be5   :  { %v4818_v51 = vpop.permute.xlu1 %4817  ;;  %4703 = vmatpush3.bf16.msra.mxu1 %v4870_v57 }
0x2be6   :  { %v4820_v23 = vunpack.i.h.bf16 %v4818_v51  ;;  %v4819_v24 = vunpack.i.l.bf16 %v4818_v51  ;;  %4728 = vmatprep.subr.bf16.mxu1 %v5092_v2  ;;  %v4875_v51 = vld [vmem:[%s6336_s24 + $0x60] sm:$0xff]  }
0x2be8   :  { %v3490_v41 = vsel %vm351_vm5, %v6055_v9, %v4820_v23  ;;  %v3489_v62 = vsel %vm351_vm5, %v6053_v0, %v4819_v24  ;;  %v4151_v0 = vld [vmem:[%s6439_s4 + $0x1] ss:$0 sm:$0xff]  ;;  %v4877_v23 = vld [vmem:[%s6336_s24 + $0x70] sm:$0xff]   ;;  %v4878_v24 = vld [vmem:[%s6336_s24 + $0x78] sm:$0xff]  }
0x2be9   :  { %v4823_v60 = vpop.permute.xlu1 %4822 }
0x2bea   :  { %v5024_v12 = vpop.eup %5023  ;;  %v4825_v63 = vunpack.i.h.bf16 %v4823_v60  ;;  %v4824_v48 = vunpack.i.l.bf16 %v4823_v60  ;;  %v4876_v60 = vld [vmem:[%s6336_s24 + $0x68] sm:$0xff]  }
0x2beb   :  { %v3404_v3 = vsel %vm235_vm4, %v5024_v12, 0.0 }
0x2bec   :  { %v5026_v6 = vpop.eup %5025  ;;  %3405 = vadd.xlane.f32.xlu0 %v3404_v3  ;;  %v3491_v21 = vsel %vm403_vm11, %v3489_v62, %v4824_v48  ;;  %v3492_v32 = vsel %vm403_vm11, %v3490_v41, %v4825_v63  ;;  %v4161_v63 = vld [vmem:[%s6335_s23 + $0x1] ss:$0 sm:$0xff] }
0x2bed   :  { %v3407_v45 = vsel %vm235_vm4, %v5026_v6, 0.0 }
0x2bf0   :  { %3408 = vadd.xlane.f32.xlu0 %v3407_v45 }
0x2c06   :  { %3417 = vrot.lane.b32.xlu0 %v5995_v56, %s6428_s7  ;;  %v4867_v56 = vld [vmem:[%s6330_s18 + $0x10] sm:$0xff]  }
0x2c79   :  { %v3406_v46 = vpop.xlane.xlu0 %3405 }
0x2c7a   :  { %5027 = vrcp.f32 %v3406_v46 }
0x2c7d   :  { %v3409_v8 = vpop.xlane.xlu0 %3408 }
0x2c7e   :  { %5029 = vrcp.f32 %v3409_v8  ;;  %v4154_v8 = vld [vmem:[%s6441_s0 + $0x1] ss:$0 sm:$0xff] }
0x2c81   :  { %v3418_v58 = vpop.permute.xlu0 %3417 }
0x2c82   :  { %4687 = vmatpush3.bf16.msra.mxu0 %v3418_v58 }
0x2c83   :  { %4692 = vmatprep.subr.bf16.mxu0 %v5092_v2 }
0x2c84   :  { %v5028_v52 = vpop.eup %5027 }
0x2c85   :  { %v3412_v7 = vmul.f32 %v5028_v52, %v5024_v12 }
0x2c88   :  { %v5030_v61 = vpop.eup %5029 }
0x2c89   :  { %v3413_v11 = vmul.f32 %v5030_v61, %v5026_v6 }
0x2c8b   :  { %v3414_v16 = vpack.c.bf16 %v3413_v11, %v3412_v7  ;;  %v4155_v11 = vld [vmem:[%s6442_s21 + $0x1] ss:$0 sm:$0xff] }
0x2c8d   :  { %4689 = vmatmul.mubr.msk.bf16.vlgmr.msra.gmra.mrb[76].mxu0 %vm235_vm4, %v3414_v16 }
0x2c8e   :  { %4696 = vmatprep.mubr.msk.bf16.mxu0 %vm5093_vm0, %v5092_v2  ;;  %4693 = vmatpush3.bf16.msra.mxu0 %v4867_v56 }
0x2c8f   :  { %4694 = vmatprep.subr.bf16.mxu0 %v5092_v2 }
0x2c92   :  { %4695 = vmatpush3.bf16.msra.mxu0 %v4868_v17 }
0x2c93   :  { %4708 = vmatprep.subr.bf16.mxu0 %v5092_v2 }
0x2d60   :  { %v3458_v18 = vpop.f32.mrb[76].mxu0 }
0x2d61   :  { %v4690_v25 = vpop.f32.mrb[77].mxu0 }
0x2d62   :  { %v3461_v20 = vpop.f32.mrb[78].mxu0  ;;  %v4871_v25 = vld [vmem:[%s6336_s24 + $0x40] sm:$0xff]  }
0x2d63   :  { %v4826_v53 = vpack.i.bf16 %v3461_v20, %v3458_v18  ;;  %v4691_v27 = vpop.f32.mrb[79].mxu0  ;;  %v4872_v20 = vld [vmem:[%s6336_s24 + $0x48] sm:$0xff]  }
0x2d64   :  { %v4874_v27 = vld [vmem:[%s6336_s24 + $0x58] sm:$0xff]  }
0x2d65   :  { %4827 = vrot.lane.b32.xlu0 %v4826_v53, %s6431_s12  ;;  %v4873_v53 = vld [vmem:[%s6336_s24 + $0x50] sm:$0xff]   ;;  %s5109_s12 = smov [#allocation2]  }
0x2d66   :  { %s3999_s18 = sshll.u32 %s5109_s12, 4  ;;  %s4000_s18 = int_to_ptr.vmem [resolvable:$true] %s3999_s18 }
0x2d67   :  { %s5067_s4 = scalar_lea.vmem %s4000_s18, 256  ;;  %p5072_p1 = scmp.lt.s32.totalorder %s4000_s18, %s4000_s18 }
0x2d68   :  { %p5068_p0 = scmp.ne.s32.totalorder %s4000_s18, %s5067_s4  ;;  %p5073_p2 = scmp.lt.s32.totalorder %s5067_s4, %s5067_s4 }
0x2d6a   :  { %p5074_p3 = por %p5073_p2, %p5072_p1 }
0x2d6c   :  { %p5075_p4 = pnand %p5074_p3, %p5068_p0 }
0x2dd7   :  { %v4828_v38 = vpop.permute.xlu0 %4827 }
0x2dd8   :  { %v4830_v43 = vunpack.i.h.bf16 %v4828_v38  ;;  %v4829_v29 = vunpack.i.l.bf16 %v4828_v38 }
0x2dda   :  { %v3494_v28 = vsel %vm877_vm13, %v3492_v32, %v4830_v43  ;;  %v3493_v59 = vsel %vm877_vm13, %v3491_v21, %v4829_v29 }
0x2ddb   :  { %v3500_v30 = vpack.c.bf16 %v3494_v28, %v3493_v59 }
0x2ddd   :  { %4697 = vmatmul.mubr.msk.bf16.vlgmr.msra.gmra.mrb[80].mxu0 %vm235_vm4, %v3500_v30 }
0x2dde   :  { %4724 = vmatprep.mubr.msk.bf16.mxu0 %vm5093_vm0, %v5092_v2  ;;  %4709 = vmatpush3.bf16.msra.mxu0 %v4871_v25 }
0x2ddf   :  { %4710 = vmatprep.subr.bf16.mxu0 %v5092_v2 }
0x2de2   :  { %4711 = vmatpush3.bf16.msra.mxu0 %v4872_v20 }
0x2de3   :  { %4712 = vmatprep.subr.bf16.mxu0 %v5092_v2 }
0x2de6   :  { %4713 = vmatpush3.bf16.msra.mxu0 %v4873_v53 }
0x2de7   :  { %4714 = vmatprep.subr.bf16.mxu0 %v5092_v2 }
0x2dea   :  { %4715 = vmatpush3.bf16.msra.mxu0 %v4874_v27 }
0x2deb   :  { %4716 = vmatprep.subr.bf16.mxu0 %v5092_v2 }
0x2dee   :  { %4717 = vmatpush3.bf16.msra.mxu0 %v4875_v51 }
0x2def   :  { %4718 = vmatprep.subr.bf16.mxu0 %v5092_v2 }
0x2df2   :  { %4719 = vmatpush3.bf16.msra.mxu0 %v4876_v60  ;;  %v5064_v60 = vld [vmem:[%s6443_s13 + $0x28] sm:$0xff]  }
0x2df3   :  { %4720 = vmatprep.subr.bf16.mxu0 %v5092_v2 }
0x2df6   :  { %4721 = vmatpush3.bf16.msra.mxu0 %v4877_v23  ;;  %v3886_v23 = vsel %vm235_vm4, %v5064_v60, 0 }
0x2df7   :  { %4722 = vmatprep.subr.bf16.mxu0 %v5092_v2 }
0x2dfa   :  { %4723 = vmatpush3.bf16.msra.mxu0 %v4878_v24  ;;  %v5065_v24 = vld [vmem:[%s6443_s13 + $0x30] sm:$0xff]  }
0x2eb0   :  { %v3550_v9 = vpop.f32.mrb[80].mxu0 }
0x2eb1   :  { %v3557_v22 = vadd.f32 %v3550_v9, %v5960_v26  ;;  %v4698_v31 = vpop.f32.mrb[81].mxu0 }
0x2eb2   :  { %v3553_v33 = vpop.f32.mrb[82].mxu0 }
0x2eb3   :  { %v6169_v5 = vadd.f32 %v4151_v0, %v3557_v22  ;;  %v3558_v34 = vadd.f32 %v3553_v33, %v5963_v19  ;;  %v4699_v37 = vpop.f32.mrb[83].mxu0 }
0x2eb5   :  { %v6172_v39 = vadd.f32 %v4151_v0, %v3558_v34  ;;  %v3573_v10 = vsel %vm235_vm4, %v6169_v5, 0.0 }
0x2eb6   :  { %3574 = vadd.xlane.f32.xlu1 %v3573_v10 }
0x2eb7   :  { %v3576_v40 = vsel %vm235_vm4, %v6172_v39, 0.0 }
0x2eb8   :  { %3577 = vadd.xlane.f32.xlu0 %v3576_v40 }
0x2f43   :  { %v3575_v35 = vpop.xlane.xlu1 %3574 }
0x2f44   :  { %v3579_v42 = vmul.f32 0.03125, %v3575_v35 }
0x2f45   :  { %v3578_v26 = vpop.xlane.xlu0 %3577 }
0x2f46   :  { %v3581_v44 = vsub.f32 %v6169_v5, %v3579_v42  ;;  %v3580_v36 = vmul.f32 0.03125, %v3578_v26 }
0x2f48   :  { %v3582_v47 = vsub.f32 %v6172_v39, %v3580_v36  ;;  %v3583_v19 = vmul.f32 %v3581_v44, %v3581_v44 }
0x2f4a   :  { %v3585_v50 = vsel %vm235_vm4, %v3583_v19, 0.0  ;;  %v3584_v49 = vmul.f32 %v3582_v47, %v3582_v47  ;;  %v4190_v19 = vld [vmem:[%s6337_s25 + $0x1] ss:$0 sm:$0xff] }
0x2f4b   :  { %3586 = vadd.xlane.f32.xlu0 %v3585_v50 }
0x2f4c   :  { %v3588_v54 = vsel %vm235_vm4, %v3584_v49, 0.0 }
0x2f4d   :  { %3589 = vadd.xlane.f32.xlu1 %v3588_v54 }
0x2fd8   :  { %v3587_v1 = vpop.xlane.xlu0 %3586 }
0x2fd9   :  { %v3591_v4 = vmul.f32 0.03125, %v3587_v1 }
0x2fda   :  { %v3590_v12 = vpop.xlane.xlu1 %3589 }
0x2fdb   :  { %v3593_v3 = vadd.f32 1e-05, %v3591_v4  ;;  %v3592_v6 = vmul.f32 0.03125, %v3590_v12 }
0x2fdd   :  { %5031 = vrsqrt.f32 %v3593_v3  ;;  %v3594_v45 = vadd.f32 1e-05, %v3592_v6  ;;  %v5059_v6 = vld [vmem:[%s6443_s13] sm:$0xff]  }
0x2fdf   :  { %5033 = vrsqrt.f32 %v3594_v45  ;;  %v3871_v45 = vsel %vm235_vm4, %v5059_v6, 0 }
0x2fe7   :  { %v5032_v46 = vpop.eup %5031 }
0x2fe8   :  { %v3597_v58 = vmul.f32 %v5032_v46, %v3581_v44  ;;  %v5061_v46 = vld [vmem:[%s6443_s13 + $0x10] sm:$0xff]  }
0x2fe9   :  { %v5034_v52 = vpop.eup %5033 }
0x2fea   :  { %v3605_v61 = vmul.f32 %v4154_v8, %v3597_v58  ;;  %v3598_v7 = vmul.f32 %v5034_v52, %v3582_v47  ;;  %v5062_v58 = vld [vmem:[%s6443_s13 + $0x18] sm:$0xff]  }
0x2feb   :  { %v3880_v52 = vsel %vm235_vm4, %v5062_v58, 0 }
0x2fec   :  { %v3606_v16 = vmul.f32 %v4154_v8, %v3598_v7  ;;  %v3613_v56 = vadd.f32 %v4155_v11, %v3605_v61  ;;  %v3877_v8 = vsel %vm235_vm4, %v5061_v46, 0  ;;  %v5063_v61 = vld [vmem:[%s6443_s13 + $0x20] sm:$0xff]  }
0x2fed   :  { %v3883_v7 = vsel %vm235_vm4, %v5063_v61, 0 }
0x2fee   :  { %v3614_v17 = vadd.f32 %v4155_v11, %v3606_v16 }
0x2ff0   :  { %v3620_v18 = vpack.c.bf16 %v3614_v17, %v3613_v56 }
0x2ff2   :  { %4705 = vmatmul.mubr.msk.bf16.vlgmr.msra.gmra.mrb[96].mxu1 %vm235_vm4, %v3620_v18 }
0x2ff3   :  { %4744 = vmatprep.mubr.msk.bf16.mxu1 %vm5093_vm0, %v5092_v2  ;;  %4729 = vmatpush3.bf16.xpose.msra.mxu1 %v3871_v45  ;;  %vm3975_vm0 = vcmask 7168  }
0x2ff4   :  { %4730 = vmatprep.subr.bf16.mxu1 %v5092_v2 }
0x30c5   :  { %v3678_v48 = vpop.f32.mrb[96].mxu1 }
0x30c6   :  { %v3679_v38 = vadd.f32 %v4161_v63, %v3678_v48  ;;  %v4706_v41 = vpop.f32.mrb[97].mxu1  ;;  %v5066_v48 = vld [vmem:[%s6443_s13 + $0x38] sm:$0xff]  }
0x30c7   :  { %v3681_v62 = vpop.f32.mrb[98].mxu1 }
0x30c8   :  { %v3687_v43 = vmul.f32 0.044715, %v3679_v38  ;;  %v3682_v29 = vadd.f32 %v4161_v63, %v3681_v62  ;;  %v4707_v21 = vpop.f32.mrb[99].mxu1  ;;  %v3685_v40 = vmul.f32 0.5, %v3679_v38  ;;  %v3889_v63 = vsel %vm235_vm4, %v5065_v24, 0 }
0x30ca   :  { %v3689_v32 = vmul.f32 %v3687_v43, %v3679_v38  ;;  %v3688_v28 = vmul.f32 0.044715, %v3682_v29  ;;  %v3686_v35 = vmul.f32 0.5, %v3682_v29 }
0x30cc   :  { %v3691_v59 = vmul.f32 %v3689_v32, %v3679_v38  ;;  %v3690_v30 = vmul.f32 %v3688_v28, %v3682_v29 }
0x30ce   :  { %v3693_v9 = vadd.f32 %v3691_v59, %v3679_v38  ;;  %v3692_v0 = vmul.f32 %v3690_v30, %v3682_v29  ;;  %v3892_v38 = vsel %vm235_vm4, %v5066_v48, 0  ;;  %v4191_v59 = vld [vmem:[%s6444_s9] ss:$0 sm:$0xff] }
0x30d0   :  { %v3695_v22 = vmul.f32 0.7978846, %v3693_v9  ;;  %v3694_v31 = vadd.f32 %v3692_v0, %v3682_v29 }
0x30d2   :  { %5035 = vtanh.f32 %v3695_v22  ;;  %v3696_v33 = vmul.f32 0.7978846, %v3694_v31  ;;  %v4192_v31 = vld [vmem:[%s6445_s3] ss:$0 sm:$0xff] }
0x30d4   :  { %5037 = vtanh.f32 %v3696_v33 }
0x30dc   :  { %v5036_v34 = vpop.eup %5035 }
0x30dd   :  { %v3699_v37 = vadd.f32 1.0, %v5036_v34 }
0x30de   :  { %v5038_v10 = vpop.eup %5037 }
0x30df   :  { %v3700_v42 = vadd.f32 1.0, %v5038_v10  ;;  %v3701_v26 = vmul.f32 %v3699_v37, %v3685_v40 }
0x30e1   :  { %v3702_v44 = vmul.f32 %v3700_v42, %v3686_v35 }
0x30e3   :  { %v3720_v36 = vpack.c.bf16 %v3702_v44, %v3701_v26 }
0x30e5   :  { %4725 = vmatmul.mubr.bf16.vlgmr.msra.gmra.mrb[84].mxu0 %v3720_v36 }
0x31b8   :  { %v3803_v47 = vpop.f32.mrb[84].mxu0 }
0x31b9   :  { %v3810_v50 = vadd.f32 %v3803_v47, %v6169_v5  ;;  %v4726_v49 = vpop.f32.mrb[85].mxu0  ;;  %v5060_v5 = vld [vmem:[%s6443_s13 + $0x8] sm:$0xff]  }
0x31ba   :  { %v3806_v54 = vpop.f32.mrb[86].mxu0 }
0x31bb   :  { %v3820_v55 = vadd.f32 %v4190_v19, %v3810_v50  ;;  %v3811_v57 = vadd.f32 %v3806_v54, %v6172_v39  ;;  %v4727_v1 = vpop.f32.mrb[87].mxu0  ;;  %v3874_v39 = vsel %vm235_vm4, %v5060_v5, 0 }
0x31bc   :  { %4731 = vmatpush3.bf16.xpose.msra.mxu1 %v3874_v39 }
0x31bd   :  { %v3821_v4 = vadd.f32 %v4190_v19, %v3811_v57  ;;  %v3824_v12 = vsel %vm235_vm4, %v3820_v55, 0.0  ;;  %4732 = vmatprep.subr.bf16.mxu1 %v5092_v2 }
0x31be   :  { %3825 = vadd.xlane.f32.xlu0 %v3824_v12 }
0x31bf   :  { %v3827_v3 = vsel %vm235_vm4, %v3821_v4, 0.0 }
0x31c0   :  { %3828 = vadd.xlane.f32.xlu1 %v3827_v3 }
0x31c4   :  { %4733 = vmatpush3.bf16.xpose.msra.mxu1 %v3877_v8  ;;  %v4014_v8 = vsel %vm112_vm1, 1.0, %v5092_v2 }
0x31c5   :  { %4734 = vmatprep.subr.bf16.mxu1 %v5092_v2 }
0x31cc   :  { %4735 = vmatpush3.bf16.xpose.msra.mxu1 %v3880_v52  ;;  %v4015_v52 = vsel %vm113_vm2, 1.0, %v5092_v2 }
0x31cd   :  { %4736 = vmatprep.subr.bf16.mxu1 %v5092_v2 }
0x31d4   :  { %4737 = vmatpush3.bf16.xpose.msra.mxu1 %v3883_v7 }
0x31d5   :  { %4738 = vmatprep.subr.bf16.mxu1 %v5092_v2 }
0x31dc   :  { %4739 = vmatpush3.bf16.xpose.msra.mxu1 %v3886_v23 }
0x31dd   :  { %4740 = vmatprep.subr.bf16.mxu1 %v5092_v2 }
0x31e4   :  { %4741 = vmatpush3.bf16.xpose.msra.mxu1 %v3889_v63 }
0x31e5   :  { %4742 = vmatprep.subr.bf16.mxu1 %v5092_v2 }
0x31ec   :  { %4743 = vmatpush3.bf16.xpose.msra.mxu1 %v3892_v38 }
0x324b   :  { %v3826_v11 = vpop.xlane.xlu0 %3825 }
0x324c   :  { %v3830_v16 = vmul.f32 0.03125, %v3826_v11 }
0x324d   :  { %v3829_v56 = vpop.xlane.xlu1 %3828 }
0x324e   :  { %v3832_v17 = vsub.f32 %v3820_v55, %v3830_v16  ;;  %v3831_v18 = vmul.f32 0.03125, %v3829_v56 }
0x3250   :  { %v3833_v25 = vsub.f32 %v3821_v4, %v3831_v18  ;;  %v3834_v20 = vmul.f32 %v3832_v17, %v3832_v17 }
0x3252   :  { %v3836_v53 = vsel %vm235_vm4, %v3834_v20, 0.0  ;;  %v3835_v27 = vmul.f32 %v3833_v25, %v3833_v25 }
0x3253   :  { %3837 = vadd.xlane.f32.xlu0 %v3836_v53 }
0x3254   :  { %v3839_v51 = vsel %vm235_vm4, %v3835_v27, 0.0 }
0x3255   :  { %3840 = vadd.xlane.f32.xlu1 %v3839_v51 }
0x32e0   :  { %v3838_v41 = vpop.xlane.xlu0 %3837 }
0x32e1   :  { %v3842_v62 = vmul.f32 0.03125, %v3838_v41 }
0x32e2   :  { %v3841_v43 = vpop.xlane.xlu1 %3840 }
0x32e3   :  { %v3844_v29 = vadd.f32 1e-05, %v3842_v62  ;;  %v3843_v21 = vmul.f32 0.03125, %v3841_v43 }
0x32e5   :  { %5039 = vrsqrt.f32 %v3844_v29  ;;  %v3845_v32 = vadd.f32 1e-05, %v3843_v21 }
0x32e7   :  { %5041 = vrsqrt.f32 %v3845_v32 }
0x32ef   :  { %v5040_v28 = vpop.eup %5039 }
0x32f0   :  { %v3848_v30 = vmul.f32 %v5040_v28, %v3832_v17 }
0x32f1   :  { %v5042_v9 = vpop.eup %5041 }
0x32f2   :  { %v3856_v0 = vmul.f32 %v4191_v59, %v3848_v30  ;;  %v3849_v22 = vmul.f32 %v5042_v9, %v3833_v25 }
0x32f4   :  { %v3857_v33 = vmul.f32 %v4191_v59, %v3849_v22  ;;  %v3864_v34 = vadd.f32 %v4192_v31, %v3856_v0 }
0x32f6   :  { %v3865_v37 = vadd.f32 %v4192_v31, %v3857_v33 }
0x32f8   :  { %v3866_v10 = vpack.c.bf16 %v3865_v37, %v3864_v34 }
0x32fa   :  { %4745 = vmatmul.mubr.msk.bf16.vlgmr.msra.gmra.mrb[100].mxu1 %vm235_vm4, %v3866_v10 }
0x33cd   :  { %v3928_v40 = vpop.f32.mrb[100].mxu1 }
0x33ce   :  { %3935 = vmax.xlane.f32.xlu0 %v3928_v40  ;;  %v4746_v35 = vpop.f32.mrb[101].mxu1 }
0x33cf   :  { %v3931_v42 = vpop.f32.mrb[102].mxu1 }
0x33d0   :  { %3937 = vmax.xlane.f32.xlu1 %v3931_v42  ;;  %v4747_v26 = vpop.f32.mrb[103].mxu1 }
0x345b   :  { %v3936_v44 = vpop.xlane.xlu0 %3935 }
0x345c   :  { %v3939_v36 = vsub.f32 %v3928_v40, %v3936_v44 }
0x345d   :  { %v3938_v47 = vpop.xlane.xlu1 %3937 }
0x345e   :  { %v3941_v19 = vmul.f32 1.442695, %v3939_v36  ;;  %v3940_v50 = vsub.f32 %v3931_v42, %v3938_v47 }
0x3460   :  { %5043 = vpow2.f32 %v3941_v19  ;;  %v3943_v49 = vmul.f32 1.442695, %v3940_v50 }
0x3462   :  { %5045 = vpow2.f32 %v3943_v49 }
0x346a   :  { %v5044_v54 = vpop.eup %5043 }
0x346b   :  { %3945 = vadd.xlane.f32.xlu0 %v5044_v54 }
0x346c   :  { %v5046_v55 = vpop.eup %5045 }
0x346d   :  { %3947 = vadd.xlane.f32.xlu1 %v5046_v55 }
0x34f8   :  { %v3946_v57 = vpop.xlane.xlu0 %3945 }
0x34f9   :  { %5047 = vrcp.f32 %v3946_v57 }
0x34fa   :  { %v3948_v1 = vpop.xlane.xlu1 %3947 }
0x34fb   :  { %5049 = vrcp.f32 %v3948_v1 }
0x3503   :  { %v5048_v4 = vpop.eup %5047 }
0x3504   :  { %v3950_v12 = vmul.f32 %v5048_v4, %v5044_v54 }
0x3505   :  { %v5050_v3 = vpop.eup %5049 }
0x3506   :  { %v3955_v6 = vmul.f32 1.442695, %v3950_v12  ;;  %3953 = vst [vmem:[#allocation2] sm:$0xff] %v3950_v12  ;;  %v3952_v45 = vmul.f32 %v5050_v3, %v5046_v55  ;;  %v3967_v58 = vmul.f32 %v4014_v8, %v3950_v12 }
0x3508   :  { %5051 = vpow2.f32 %v3955_v6  ;;  %v3957_v5 = vmul.f32 1.442695, %v3952_v45  ;;  %3954 = vst [vmem:[#allocation2 + $0x8] sm:$0xff] %v3952_v45  ;;  %v3968_v61 = vmul.f32 %v4015_v52, %v3952_v45 }
0x350a   :  { %5053 = vpow2.f32 %v3957_v5 }
0x3512   :  { %v5052_v39 = vpop.eup %5051 }
0x3513   :  { %3959 = vadd.xlane.f32.xlu0 %v5052_v39 }
0x3514   :  { %v5054_v46 = vpop.eup %5053 }
0x3515   :  { %3961 = vadd.xlane.f32.xlu1 %v5054_v46 }
0x3517   :  { %3969 = vadd.xlane.f32.xlu0 %v3967_v58 }
0x3519   :  { %3971 = vadd.xlane.f32.xlu1 %v3968_v61 }
0x35a0   :  { %v3960_v7 = vpop.xlane.xlu0 %3959 }
0x35a1   :  { %5055 = vlog2.f32 %v3960_v7 }
0x35a2   :  { %v3962_v11 = vpop.xlane.xlu1 %3961 }
0x35a3   :  { %5057 = vlog2.f32 %v3962_v11 }
0x35a4   :  { %v3970_v18 = vpop.xlane.xlu0 %3969 }
0x35a6   :  { %v3972_v20 = vpop.xlane.xlu1 %3971 }
0x35ab   :  { %v5056_v16 = vpop.eup %5055 }
0x35ac   :  { %v3964_v56 = vmul.f32 0.6931472, %v5056_v16 }
0x35ad   :  { %v5058_v17 = vpop.eup %5057 }
0x35ae   :  { %v3973_v13 = vsub.f32 %v3964_v56, %v3970_v18  ;;  %v3966_v25 = vmul.f32 0.6931472, %v5058_v17 }
0x35b0   :  { %v3974_v53 = vsub.f32 %v3966_v25, %v3972_v20  ;;  %v3976_v27 = vsel %vm3975_vm0, %v3973_v13, 0.0 }
0x35b2   :  { %v3977_v51 = vsel %vm3975_vm0, %v3974_v53, 0.0 }
0x35b3   :  { %v3978_v14 = vadd.f32 %v3977_v51, %v3976_v27 }
0x35b5   :  { %3979 = vadd.xlane.f32.xlu0 %v3978_v14 }
0x35b6   :  { %5078 = shalt.err (!%p5075_p4)
}
0x35b7   :  { %s6446_s23 = sld [smem:[#allocation24_spill]] }
0x35bd   :  { %s5079_s24 = scalar_lea.hbm %s6446_s23, 256 }
0x35be   :  { %p5080_p5 = scmp.ne.s32.totalorder %s6446_s23, %s5079_s24  ;;  %p5083_p6 = scmp.lt.u32.totalorder %s5079_s24, %s6446_s23 }
0x35c0   :  { %p5085_p7 = pnand %p5083_p6, %p5080_p5 }
0x35c2   :  { %5088 = shalt.err (!%p5085_p7)
}
0x35c3   :  { %s5110_s16 = smov 128   ;;  %s6447_s17 = sld [smem:[#allocation25_spill]] }
0x35c4   :  { %4005 = dma.vmem_to_hbm [thread:$0]  %s4000_s18, 256, %s6446_s23, [#allocation3], %s5110_s16, %s5110_s16, %s6429_s6  }
0x3642   :  { %v3980_v2 = vpop.xlane.xlu0 %3979 }
0x3643   :  { %v3981_v15 = vrot.slane %v3980_v2, 4 }
0x3645   :  { %v3982_v60 = vadd.f32 %v3981_v15, %v3980_v2 }
0x3647   :  { %v3983_v23 = vrot.slane %v3982_v60, 2 }
0x3649   :  { %v3984_v24 = vadd.f32 %v3983_v23, %v3982_v60 }
0x364b   :  { %v3985_v63 = vrot.slane %v3984_v24, 1 }
0x364d   :  { %v3986_v48 = vadd.f32 %v3985_v63, %v3984_v24 }
0x364f   :  { %4748 = vpush %v3986_v48 }
0x3680   :  { %s4749_s1 = spop %4748 }
0x3681   :  { %s3990_s15 = smul.f32 0.0625, %s4749_s1 }
0x3683   :  { %v3991_v38 = vstv %s3990_s15 }
0x3684   :  { %3993 = vst [vmem:[%s6447_s17] sm:$0xff] %v3991_v38 }
0x3685   :  { %5089 = dma.done.wait [#allocation3], 256  }
0x3686   :  { %5090 = vsyncadd [#allocation3], 4294967040 }
0x3687   :  { %4013 = vsyncpa [#allocation3], 1 }

</bundles_post_ra>
